<compile_context>
chip_gen: v7x
topology: tpu7x:2x2x1
jax: 0.10.0
libtpu: 0.0.40
codegen_flags: <defaults>
</compile_context>

<pallas_src>
import functools

import jax
import jax.numpy as jnp
from jax.experimental import pallas as pl
from jax.experimental.pallas import tpu as pltpu

BN_EPS = 1e-5  # PyTorch BatchNorm1d default eps


def _round_up(x, m):
    return (x + m - 1) // m * m


def _fast_recip(d):
    # EUP approximate reciprocal + one Newton-Raphson refinement; keeps the
    # per-element divide off the VPU (refinement only touches the (TN, 1) denom).
    r = pl.reciprocal(d, approx=True)
    return r * (2.0 - d * r)


def _vmem_limit_bytes():
    # Generation-aware scoped-VMEM cap: ~3/4 of physical VMEM (≈96 MiB on
    # v5e/v6e's 128 MiB, ≈48 MiB on v7x's 64 MiB), never below 32 MiB.
    try:
        cap = int(pltpu.get_tpu_info().vmem_capacity_bytes)
    except Exception:
        cap = 64 * 1024 * 1024
    return int(max(32 * 1024 * 1024, min(100 * 1024 * 1024, (cap * 3) // 4)))


def etm_kernel(x_ref, w1_ref, b1_ref, w2_ref, b2_ref, beta_ref, bbias_ref,
               recon_ref, params_ref, *, num_topics):
    K = num_topics

    # ---------------- EncoderLN ----------------
    # x streamed as f32; cast to bf16 here (VPU work hidden under DMA/MXU) and
    # run Linear(V, 512-padded) on the MXU with f32 accumulation, then ReLU.
    x = x_ref[...].astype(jnp.bfloat16)
    h = jnp.dot(x, w1_ref[...], preferred_element_type=jnp.float32)
    h = jnp.maximum(h + b1_ref[...], 0.0)                             # (TN, Hp)
    # Dropout(p=0.25): identity in eval mode.

    # Single fused Linear(512, 2K); eval-mode BatchNorm1d(2K, affine=False)
    # already folded into w2/b2 by the wrapper.
    alpha = jnp.dot(h, w2_ref[...], preferred_element_type=jnp.float32)
    alpha = alpha + b2_ref[...]                                        # (TN, 2K)
    sp = jax.nn.softplus(alpha)
    mu = sp[:, :K]                                                     # (TN, K)
    sigma = jnp.maximum(sp[:, K:], jnp.float32(1e-5))                  # (TN, K)
    params_ref[...] = jnp.concatenate([mu, sigma], axis=-1)            # mu | sigma

    # -------- LogNormal(mu, sigma).mean + softmax over topics --------
    s = jnp.exp(mu + 0.5 * sigma * sigma)
    s = s - jnp.max(s, axis=-1, keepdims=True)
    es = jnp.exp(s)
    z = es * _fast_recip(jnp.sum(es, axis=-1, keepdims=True))          # (TN, K)

    # ---------------- Decoder ----------------
    # beta = topic_embeddings @ vocab_embeddings^T with eval BatchNorm1d(V)
    # folded in (bf16); single (TN,K)x(K,V) matmul with f32 accumulation.
    r = jnp.dot(z.astype(jnp.bfloat16), beta_ref[...],
                preferred_element_type=jnp.float32) + bbias_ref[...]
    r = r - jnp.max(r, axis=-1, keepdims=True)
    er = jnp.exp(r)
    recon = er * _fast_recip(jnp.sum(er, axis=-1, keepdims=True))
    recon_ref[...] = recon.astype(recon_ref.dtype)


@functools.partial(jax.jit,
                   static_argnames=("num_topics", "tile_n", "recon_dtype"))
def etm_forward(x, w1, b1, w2, b2, bn1m, bn1v, wt, wvt, bn2m, bn2v,
                *, num_topics, tile_n=512, recon_dtype=jnp.float32):
    """Eval-mode ETM forward.  Returns (x_recon, (mu, sigma))."""
    N, V = x.shape
    K = num_topics
    H = w1.shape[1]
    Hp = _round_up(H, 128)                       # 500 -> 512 lane alignment
    f32 = jnp.float32

    # ---- fold eval-mode BatchNorms (affine=False) into adjacent weights ----
    inv1 = jax.lax.rsqrt(bn1v.astype(f32) + BN_EPS)                 # (1, 2K)
    w2f = w2.astype(f32) * inv1
    b2f = (b2.astype(f32) - bn1m.astype(f32)) * inv1
    inv2 = jax.lax.rsqrt(bn2v.astype(f32) + BN_EPS)                 # (1, V)
    beta = (jnp.dot(wt.astype(f32), wvt.astype(f32)) * inv2)        # (K, V)
    beta = beta.astype(jnp.bfloat16)
    bbias = -bn2m.astype(f32) * inv2                                # (1, V)

    # ---- pad hidden dim 500 -> 512 (padded hidden units are exactly zero) ----
    w1p = jnp.pad(w1.astype(f32), ((0, 0), (0, Hp - H))).astype(jnp.bfloat16)
    b1p = jnp.pad(b1.astype(f32), ((0, 0), (0, Hp - H)))
    w2p = jnp.pad(w2f, ((0, Hp - H), (0, 0)))                       # (Hp, 2K)

    # ---- batch tiling: large tiles, but keep >= 2 grid steps for megacore ----
    n8 = _round_up(N, 8)
    tn = min(tile_n, n8)
    if tn == n8 and n8 >= 256:
        tn = _round_up(n8 // 2, 8)
    Np = _round_up(N, tn)

    xp = x.astype(f32)                           # no bf16 materialization of x
    if Np != N:
        xp = jnp.pad(xp, ((0, Np - N), (0, 0)))

    grid = (Np // tn,)
    row = lambda i: (i, 0)
    const = lambda i: (0, 0)

    flops = 2 * Np * (V * Hp + Hp * 2 * K + K * V)
    transcendentals = Np * (V + 8 * K)
    bytes_accessed = (xp.size * 4
                      + w1p.size * 2 + w2p.size * 4 + beta.size * 2
                      + (b1p.size + b2f.size + bbias.size) * 4
                      + Np * V * jnp.dtype(recon_dtype).itemsize
                      + Np * 2 * K * 4)

    recon, params = pl.pallas_call(
        functools.partial(etm_kernel, num_topics=K),
        out_shape=(
            jax.ShapeDtypeStruct((Np, V), recon_dtype),
            jax.ShapeDtypeStruct((Np, 2 * K), jnp.float32),
        ),
        grid=grid,
        in_specs=[
            pl.BlockSpec((tn, V), row),      # x        (batch-tiled, f32 in HBM)
            pl.BlockSpec((V, Hp), const),    # w1       (VMEM-resident, bf16)
            pl.BlockSpec((1, Hp), const),    # b1
            pl.BlockSpec((Hp, 2 * K), const),  # w2     (BN1-folded, fused mu|sigma)
            pl.BlockSpec((1, 2 * K), const),   # b2     (BN1-folded)
            pl.BlockSpec((K, V), const),     # beta = wt @ wvt (BN2-folded, bf16)
            pl.BlockSpec((1, V), const),     # decoder bias from BN2 fold
        ],
        out_specs=(
            pl.BlockSpec((tn, V), row),          # recon
            pl.BlockSpec((tn, 2 * K), row),      # mu | sigma packed
        ),
        compiler_params=pltpu.CompilerParams(
            dimension_semantics=("parallel",),
            vmem_limit_bytes=_vmem_limit_bytes()),
        cost_estimate=pl.CostEstimate(
            flops=flops, transcendentals=transcendentals,
            bytes_accessed=bytes_accessed),
    )(xp, w1p, b1p, w2p, b2f, beta, bbias)

    mu = params[:N, :K]
    sigma = params[:N, K:]
    return recon[:N], (mu, sigma)


def ref_forward(x, w1, b1, w2, b2, bn1m, bn1v, wt, wvt, bn2m, bn2v, K,
                matmul_dtype=jnp.bfloat16):
    # Pure-JAX reference (same bf16 cast for the dominant matmul so the check
    # is apples-to-apples with the kernel).
    h = jnp.dot(x.astype(matmul_dtype), w1.astype(matmul_dtype),
                preferred_element_type=jnp.float32)
    h = jnp.maximum(h + b1, 0.0)
    a = h @ w2 + b2
    a = (a - bn1m) / jnp.sqrt(bn1v + BN_EPS)
    alpha = jax.nn.softplus(a)
    mu = alpha[:, :K]
    sigma = jnp.maximum(1e-5, alpha[:, K:])
    z = jax.nn.softmax(jnp.exp(mu + 0.5 * sigma ** 2), axis=-1)
    recon = (z @ wt) @ wvt
    recon = (recon - bn2m) / jnp.sqrt(bn2v + BN_EPS)
    return jax.nn.softmax(recon, axis=1), mu, sigma


if __name__ == "__main__":
    # Small, module-consistent shapes (batch gives a 2-step "parallel" grid).
    N = 256          # batch
    V = 256          # vocab_size
    E = 32           # embed_dim
    K = 8            # num_topics
    H = 500          # encoder hidden (fixed by the module)

    key = jax.random.PRNGKey(0)
    ks = jax.random.split(key, 12)

    vocab_embeddings = jax.random.normal(ks[0], (V, E), jnp.float32) * 0.1

    # torch Linear weights (out,in) are stored pre-transposed for row-major
    # matmuls inside the kernel.
    x = jax.random.uniform(ks[1], (N, V), jnp.float32)             # BoW counts
    w1 = jax.random.normal(ks[2], (V, H), jnp.float32) * 0.05      # Linear(V,500)
    b1 = jax.random.normal(ks[3], (1, H), jnp.float32) * 0.01
    w2 = jax.random.normal(ks[4], (H, 2 * K), jnp.float32) * 0.05  # Linear(500,2K)
    b2 = jax.random.normal(ks[5], (1, 2 * K), jnp.float32) * 0.01
    bn1m = jax.random.normal(ks[6], (1, 2 * K), jnp.float32) * 0.01
    bn1v = 1.0 + jnp.abs(jax.random.normal(ks[7], (1, 2 * K), jnp.float32)) * 0.1
    wt = jax.random.normal(ks[8], (K, E), jnp.float32) * 0.05      # topic_emb W^T
    wvt = vocab_embeddings.T                                       # (E, V)
    bn2m = jax.random.normal(ks[9], (1, V), jnp.float32) * 0.01
    bn2v = 1.0 + jnp.abs(jax.random.normal(ks[10], (1, V), jnp.float32)) * 0.1

    x_recon, (mu, sigma) = etm_forward(
        x, w1, b1, w2, b2, bn1m, bn1v, wt, wvt, bn2m, bn2v, num_topics=K)
    jax.block_until_ready(x_recon)

    r_recon, r_mu, r_sigma = ref_forward(
        x, w1, b1, w2, b2, bn1m, bn1v, wt, wvt, bn2m, bn2v, K)

    assert x_recon.shape == (N, V) and mu.shape == (N, K) and sigma.shape == (N, K)
    assert jnp.allclose(mu, r_mu, rtol=1e-3, atol=1e-4), \
        float(jnp.max(jnp.abs(mu - r_mu)))
    assert jnp.allclose(sigma, r_sigma, rtol=1e-3, atol=1e-4), \
        float(jnp.max(jnp.abs(sigma - r_sigma)))
    assert jnp.allclose(x_recon, r_recon, rtol=2e-3, atol=1e-5), \
        float(jnp.max(jnp.abs(x_recon - r_recon)))
    assert jnp.allclose(jnp.sum(x_recon, axis=1), 1.0, atol=2e-3)

    print("KERNEL_OK")
</pallas_src>

<mosaic_0001>
module attributes {stable_mosaic.version = 11 : i64} {
  func.func @etm_kernel(%arg0: i32, %arg1: memref<128x256xf32, #tpu.memory_space<vmem>>, %arg2: memref<256x512xbf16, #tpu.memory_space<vmem>>, %arg3: memref<1x512xf32, #tpu.memory_space<vmem>>, %arg4: memref<512x16xf32, #tpu.memory_space<vmem>>, %arg5: memref<1x16xf32, #tpu.memory_space<vmem>>, %arg6: memref<8x256xbf16, #tpu.memory_space<vmem>>, %arg7: memref<1x256xf32, #tpu.memory_space<vmem>>, %arg8: memref<128x256xf32, #tpu.memory_space<vmem>>, %arg9: memref<128x16xf32, #tpu.memory_space<vmem>>) attributes {dimension_semantics = [#tpu.dimension_semantics<parallel>], iteration_bounds = array<i64: 2>, scalar_prefetch = 0 : i64, scratch_operands = 0 : i64, tpu.core_type = #tpu.core_type<tc>, window_params = [{transform_indices = @transform_0, window_bounds = array<i64: 128, 256>}, {pipeline_mode = #tpu.pipeline_mode<synchronous>, transform_indices = @transform_1, window_bounds = array<i64: 256, 512>}, {pipeline_mode = #tpu.pipeline_mode<synchronous>, transform_indices = @transform_2, window_bounds = array<i64: 1, 512>}, {pipeline_mode = #tpu.pipeline_mode<synchronous>, transform_indices = @transform_3, window_bounds = array<i64: 512, 16>}, {pipeline_mode = #tpu.pipeline_mode<synchronous>, transform_indices = @transform_4, window_bounds = array<i64: 1, 16>}, {pipeline_mode = #tpu.pipeline_mode<synchronous>, transform_indices = @transform_5, window_bounds = array<i64: 8, 256>}, {pipeline_mode = #tpu.pipeline_mode<synchronous>, transform_indices = @transform_6, window_bounds = array<i64: 1, 256>}, {transform_indices = @transform_7, window_bounds = array<i64: 128, 256>}, {transform_indices = @transform_8, window_bounds = array<i64: 128, 16>}]} {
    %c0 = arith.constant 0 : index
    %c0_0 = arith.constant 0 : index
    %0 = vector.load %arg1[%c0, %c0_0] : memref<128x256xf32, #tpu.memory_space<vmem>>, vector<128x256xf32>
    %1 = arith.truncf %0 : vector<128x256xf32> to vector<128x256xbf16>
    %c0_1 = arith.constant 0 : index
    %c0_2 = arith.constant 0 : index
    %2 = vector.load %arg2[%c0_1, %c0_2] : memref<256x512xbf16, #tpu.memory_space<vmem>>, vector<256x512xbf16>
    %cst = arith.constant dense<0.000000e+00> : vector<128x512xf32>
    %3 = tpu.matmul %1, %2, %cst {dimension_numbers = #tpu.dot_dimension_numbers<[1], [0], [0], [1], [0, 0, 1, 1], [], []>} : vector<128x256xbf16>, vector<256x512xbf16>, vector<128x512xf32> -> vector<128x512xf32>
    %c0_3 = arith.constant 0 : index
    %c0_4 = arith.constant 0 : index
    %4 = vector.load %arg3[%c0_3, %c0_4] : memref<1x512xf32, #tpu.memory_space<vmem>>, vector<1x512xf32>
    %5 = vector.broadcast %4 : vector<1x512xf32> to vector<128x512xf32>
    %6 = arith.addf %3, %5 : vector<128x512xf32>
    %cst_5 = arith.constant 0.000000e+00 : f32
    %7 = vector.broadcast %cst_5 : f32 to vector<128x512xf32>
    %8 = arith.maximumf %6, %7 : vector<128x512xf32>
    %c0_6 = arith.constant 0 : index
    %c0_7 = arith.constant 0 : index
    %9 = vector.load %arg4[%c0_6, %c0_7] : memref<512x16xf32, #tpu.memory_space<vmem>>, vector<512x16xf32>
    %cst_8 = arith.constant dense<0.000000e+00> : vector<128x16xf32>
    %10 = tpu.matmul %8, %9, %cst_8 {dimension_numbers = #tpu.dot_dimension_numbers<[1], [0], [0], [1], [0, 0, 1, 1], [], []>} : vector<128x512xf32>, vector<512x16xf32>, vector<128x16xf32> -> vector<128x16xf32>
    %c0_9 = arith.constant 0 : index
    %c0_10 = arith.constant 0 : index
    %11 = vector.load %arg5[%c0_9, %c0_10] : memref<1x16xf32, #tpu.memory_space<vmem>>, vector<1x16xf32>
    %12 = vector.broadcast %11 : vector<1x16xf32> to vector<128x16xf32>
    %13 = arith.addf %10, %12 : vector<128x16xf32>
    %cst_11 = arith.constant 0.000000e+00 : f32
    %14 = vector.broadcast %cst_11 : f32 to vector<128x16xf32>
    %15 = arith.maximumf %13, %14 : vector<128x16xf32>
    %16 = vector.broadcast %cst_11 : f32 to vector<128x16xf32>
    %17 = arith.subf %13, %16 : vector<128x16xf32>
    %18 = arith.cmpf one, %17, %17 : vector<128x16xf32>
    %19 = vector.broadcast %cst_11 : f32 to vector<128x16xf32>
    %20 = arith.addf %13, %19 : vector<128x16xf32>
    %21 = math.absf %17 : vector<128x16xf32>
    %cst_12 = arith.constant 0.000000e+00 : f32
    %22 = vector.broadcast %cst_12 : f32 to vector<128x16xf32>
    %23 = arith.subf %22, %21 : vector<128x16xf32>
    %24 = math.exp %23 : vector<128x16xf32>
    %25 = math.log1p %24 : vector<128x16xf32>
    %26 = arith.addf %15, %25 : vector<128x16xf32>
    %27 = arith.select %18, %20, %26 : vector<128x16xi1>, vector<128x16xf32>
    %28 = vector.extract_strided_slice %27 {offsets = [0, 0], sizes = [128, 8], strides = [1, 1]} : vector<128x16xf32> to vector<128x8xf32>
    %29 = vector.extract_strided_slice %27 {offsets = [0, 8], sizes = [128, 8], strides = [1, 1]} : vector<128x16xf32> to vector<128x8xf32>
    %cst_13 = arith.constant 9.99999974E-6 : f32
    %30 = vector.broadcast %cst_13 : f32 to vector<128x8xf32>
    %31 = arith.maximumf %29, %30 : vector<128x8xf32>
    %32 = tpu.concatenate %28, %31 in 1 : vector<128x8xf32>, vector<128x8xf32> -> vector<128x16xf32>
    %c0_14 = arith.constant 0 : index
    %c0_15 = arith.constant 0 : index
    %33 = vector.load %arg9[%c0_14, %c0_15] : memref<128x16xf32, #tpu.memory_space<vmem>>, vector<128x16xf32>
    tpu.vector_store %arg9[%c0_14, %c0_15], %32 {strides = array<i32>} : memref<128x16xf32, #tpu.memory_space<vmem>>, vector<128x16xf32>,
    %cst_16 = arith.constant 5.000000e-01 : f32
    %34 = vector.broadcast %cst_16 : f32 to vector<128x8xf32>
    %35 = arith.mulf %34, %31 : vector<128x8xf32>
    %36 = arith.mulf %35, %31 : vector<128x8xf32>
    %37 = arith.addf %28, %36 : vector<128x8xf32>
    %38 = math.exp %37 : vector<128x8xf32>
    %cst_17 = arith.constant dense<0xFF800000> : vector<128xf32>
    %39 = vector.multi_reduction <maximumf>, %38, %cst_17 [1] : vector<128x8xf32> to vector<128xf32>
    %40 = vector.shape_cast %39 : vector<128xf32> to vector<128x1xf32>
    %41 = vector.broadcast %40 : vector<128x1xf32> to vector<128x8xf32>
    %42 = arith.subf %38, %41 : vector<128x8xf32>
    %43 = math.exp %42 : vector<128x8xf32>
    %cst_18 = arith.constant dense<0.000000e+00> : vector<128xf32>
    %44 = vector.multi_reduction <add>, %43, %cst_18 [1] : vector<128x8xf32> to vector<128xf32>
    %45 = vector.shape_cast %44 : vector<128xf32> to vector<128x1xf32>
    %46 = tpu.reciprocal %45 {approx = true} : vector<128x1xf32> -> vector<128x1xf32>
    %47 = arith.mulf %45, %46 : vector<128x1xf32>
    %cst_19 = arith.constant 2.000000e+00 : f32
    %48 = vector.broadcast %cst_19 : f32 to vector<128x1xf32>
    %49 = arith.subf %48, %47 : vector<128x1xf32>
    %50 = arith.mulf %46, %49 : vector<128x1xf32>
    %51 = vector.broadcast %50 : vector<128x1xf32> to vector<128x8xf32>
    %52 = arith.mulf %43, %51 : vector<128x8xf32>
    %53 = arith.truncf %52 : vector<128x8xf32> to vector<128x8xbf16>
    %c0_20 = arith.constant 0 : index
    %c0_21 = arith.constant 0 : index
    %54 = vector.load %arg6[%c0_20, %c0_21] : memref<8x256xbf16, #tpu.memory_space<vmem>>, vector<8x256xbf16>
    %cst_22 = arith.constant dense<0.000000e+00> : vector<128x256xf32>
    %55 = tpu.matmul %53, %54, %cst_22 {dimension_numbers = #tpu.dot_dimension_numbers<[1], [0], [0], [1], [0, 0, 1, 1], [], []>} : vector<128x8xbf16>, vector<8x256xbf16>, vector<128x256xf32> -> vector<128x256xf32>
    %c0_23 = arith.constant 0 : index
    %c0_24 = arith.constant 0 : index
    %56 = vector.load %arg7[%c0_23, %c0_24] : memref<1x256xf32, #tpu.memory_space<vmem>>, vector<1x256xf32>
    %57 = vector.broadcast %56 : vector<1x256xf32> to vector<128x256xf32>
    %58 = arith.addf %55, %57 : vector<128x256xf32>
    %cst_25 = arith.constant dense<0xFF800000> : vector<128xf32>
    %59 = vector.multi_reduction <maximumf>, %58, %cst_25 [1] : vector<128x256xf32> to vector<128xf32>
    %60 = vector.shape_cast %59 : vector<128xf32> to vector<128x1xf32>
    %61 = vector.broadcast %60 : vector<128x1xf32> to vector<128x256xf32>
    %62 = arith.subf %58, %61 : vector<128x256xf32>
    %63 = math.exp %62 : vector<128x256xf32>
    %cst_26 = arith.constant dense<0.000000e+00> : vector<128xf32>
    %64 = vector.multi_reduction <add>, %63, %cst_26 [1] : vector<128x256xf32> to vector<128xf32>
    %65 = vector.shape_cast %64 : vector<128xf32> to vector<128x1xf32>
    %66 = tpu.reciprocal %65 {approx = true} : vector<128x1xf32> -> vector<128x1xf32>
    %67 = arith.mulf %65, %66 : vector<128x1xf32>
    %cst_27 = arith.constant 2.000000e+00 : f32
    %68 = vector.broadcast %cst_27 : f32 to vector<128x1xf32>
    %69 = arith.subf %68, %67 : vector<128x1xf32>
    %70 = arith.mulf %66, %69 : vector<128x1xf32>
    %71 = vector.broadcast %70 : vector<128x1xf32> to vector<128x256xf32>
    %72 = arith.mulf %63, %71 : vector<128x256xf32>
    %c0_28 = arith.constant 0 : index
    %c0_29 = arith.constant 0 : index
    %73 = vector.load %arg8[%c0_28, %c0_29] : memref<128x256xf32, #tpu.memory_space<vmem>>, vector<128x256xf32>
    tpu.vector_store %arg8[%c0_28, %c0_29], %72 {strides = array<i32>} : memref<128x256xf32, #tpu.memory_space<vmem>>, vector<128x256xf32>,
    return
  }
  func.func @transform_0(%arg0: i32) -> (i32, i32) {
    %c0_i32 = arith.constant 0 : i32
    %c0_i32_0 = arith.constant 0 : i32
    return %arg0, %c0_i32 : i32, i32
  }
  func.func @transform_1(%arg0: i32) -> (i32, i32) {
    %c0_i32 = arith.constant 0 : i32
    %c0_i32_0 = arith.constant 0 : i32
    %c0_i32_1 = arith.constant 0 : i32
    return %c0_i32, %c0_i32_0 : i32, i32
  }
  func.func @transform_2(%arg0: i32) -> (i32, i32) {
    %c0_i32 = arith.constant 0 : i32
    %c0_i32_0 = arith.constant 0 : i32
    %c0_i32_1 = arith.constant 0 : i32
    return %c0_i32, %c0_i32_0 : i32, i32
  }
  func.func @transform_3(%arg0: i32) -> (i32, i32) {
    %c0_i32 = arith.constant 0 : i32
    %c0_i32_0 = arith.constant 0 : i32
    %c0_i32_1 = arith.constant 0 : i32
    return %c0_i32, %c0_i32_0 : i32, i32
  }
  func.func @transform_4(%arg0: i32) -> (i32, i32) {
    %c0_i32 = arith.constant 0 : i32
    %c0_i32_0 = arith.constant 0 : i32
    %c0_i32_1 = arith.constant 0 : i32
    return %c0_i32, %c0_i32_0 : i32, i32
  }
  func.func @transform_5(%arg0: i32) -> (i32, i32) {
    %c0_i32 = arith.constant 0 : i32
    %c0_i32_0 = arith.constant 0 : i32
    %c0_i32_1 = arith.constant 0 : i32
    return %c0_i32, %c0_i32_0 : i32, i32
  }
  func.func @transform_6(%arg0: i32) -> (i32, i32) {
    %c0_i32 = arith.constant 0 : i32
    %c0_i32_0 = arith.constant 0 : i32
    %c0_i32_1 = arith.constant 0 : i32
    return %c0_i32, %c0_i32_0 : i32, i32
  }
  func.func @transform_7(%arg0: i32) -> (i32, i32) {
    %c0_i32 = arith.constant 0 : i32
    %c0_i32_0 = arith.constant 0 : i32
    return %arg0, %c0_i32 : i32, i32
  }
  func.func @transform_8(%arg0: i32) -> (i32, i32) {
    %c0_i32 = arith.constant 0 : i32
    %c0_i32_0 = arith.constant 0 : i32
    return %arg0, %c0_i32 : i32, i32
  }
}

</mosaic_0001>

<bundles_post_ra>
// kernel: etm_forward.1
= control target key start
LH: loop header
LB: loop body
LE: loop exit
PB: predicated region body
PF: predicated region fallthrough
CT: control target
= control target key end

     0   :  { %14 = vsyncpa [#allocation3], 0  ;;  %s5392_s0 = inlined_call_operand.vmem [shape: f32[256,256], index: 0, kind: input, shape index: {}]   ;;  %s5393_s1 = inlined_call_operand.vmem [shape: bf16[256,512], index: 1, kind: input, shape index: {}]   ;;  %s5394_s2 = inlined_call_operand.vmem [shape: f32[1,512], index: 2, kind: input, shape index: {}]   ;;  %s5395_s3 = inlined_call_operand.vmem [shape: f32[512,16], index: 3, kind: input, shape index: {}]   ;;  %s5396_s4 = inlined_call_operand.vmem [shape: f32[1,16], index: 4, kind: input, shape index: {}]   ;;  %s5397_s5 = inlined_call_operand.vmem [shape: bf16[8,256], index: 5, kind: input, shape index: {}]   ;;  %s5398_s6 = inlined_call_operand.vmem [shape: f32[1,256], index: 6, kind: input, shape index: {}]   ;;  %s5399_s7 = inlined_call_operand.hbm [shape: f32[256,256], index: 7, kind: output, shape index: {0}]   ;;  %s5400_s8 = inlined_call_operand.vmem [shape: f32[256,16], index: 8, kind: output, shape index: {1}]  }
   0x1   :  { %16 = vsyncpa [#allocation3 + $0x1], 0  ;;  %s3583_s27 = smov 0   ;;  %s3585_s28 = smov 0  }
   0x2   :  { %s3587_s29 = smov 0   ;;  %s3589_s30 = smov 0  }
   0x3 LB: > { %s3604_s9 = sadd.s32 4294967295, %s3531_s30   ;;  %s2737_s10 = sadd.s32 4294967294, %s3531_s30   ;;  %s3531_s30 = sphi %s3589_s30, %s5430_s30   ;;  %s3527_s29 = sphi %s3587_s29, %s5429_s29   ;;  %s3523_s28 = sphi %s3585_s28, %s5428_s28   ;;  %s3519_s27 = sphi %s3583_s27, %s5427_s27  }
   0x4   : > { %s3608_s11 = sadd.s32 1, %s3531_s30   ;;  %s181_s12 = sadd.s32 1, %s3527_s29 }
   0x5   : > { %s178_s13 = ssub.s32 %s3531_s30, %s3608_s11  ;;  %p191_p0 = scmp.ne.s32.totalorder %s3527_s29, %s3523_s28 }
   0x6   : > { %p179_p1 = scmp.eq.s32.totalorder %s178_s13, 0  ;;  %p192_p2 = scmp.eq.s32.totalorder %s3604_s9, 1 }
   0x7   : > { %p197_p3 = scmp.ne.s32.totalorder %s3523_s28, %s3519_s27  ;;  %p198_p4 = scmp.eq.s32.totalorder %s2737_s10, 1 }
   0x8   : > { %s3619_s14 = scalar_select %p179_p1, %s3527_s29, %s181_s12  }
   0x9   : > { %p3621_p5 = por %p192_p2, %p191_p0  ;;  %p3625_p6 = por %p198_p4, %p197_p3 }
   0xa   : > { %p2740_p7 = scmp.ge.s32.totalorder %s3531_s30, 1  ;;  %p270_p8 = scmp.lt.s32.totalorder %s3531_s30, 3 }
   0xc   : > { %p271_p9 = pnand %p2740_p7, %p270_p8 }
   0xd   : > { %v3115_v0 = vld [vmem:[%s5393_s1 + $0x4] ss:$16 sps:$4 sm:$0xff] (!%p271_p9)   ;;  %v3117_v1 = vld [vmem:[%s5393_s1] ss:$16 sps:$4 sm:$0xff] (!%p271_p9)   ;;  %s2742_s10 = sshll.u32 (!%p271_p9), %s3604_s9, 4  ;;  %v1086_v55 = vld [vmem:[%s5395_s3 + $0x88] sm:$0xff] (!%p271_p9) }
   0xe   : > { %274 = sbr.rel (%p271_p9) target bundleno = 1705 (0x6a9), region = 48  ;;  %779 = vmatprep.subr.bf16.mxu0 (!%p271_p9), %v3115_v0  ;;  %v3118_v2 = vld [vmem:[%s5393_s1 + $0x24] ss:$16 sps:$4 sm:$0xff] (!%p271_p9)   ;;  %v3120_v3 = vld [vmem:[%s5393_s1 + $0x20] ss:$16 sps:$4 sm:$0xff] (!%p271_p9)   ;;  %p311_p10 = scmp.lt.s32.totalorder (!%p271_p9), %s2742_s10, 31 }
   0xf   : > { %780 = vmatpush1.bf16.msra.mxu0 (!%p271_p9), %v3117_v1  ;;  %v3121_v4 = vld [vmem:[%s5393_s1 + $0x44] ss:$16 sps:$4 sm:$0xff] (!%p271_p9)   ;;  %v3123_v5 = vld [vmem:[%s5393_s1 + $0x40] ss:$16 sps:$4 sm:$0xff] (!%p271_p9)   ;;  %v3163_v13 = vld [vmem:[%s5393_s1 + $0xc] ss:$16 sps:$4 sm:$0xff] (!%p271_p9)  }
  0x10   : > { %781 = vmatprep.subr.bf16.mxu0 (!%p271_p9), %v3118_v2  ;;  %v3124_v6 = vld [vmem:[%s5393_s1 + $0x64] ss:$16 sps:$4 sm:$0xff] (!%p271_p9)   ;;  %v3126_v7 = vld [vmem:[%s5393_s1 + $0x60] ss:$16 sps:$4 sm:$0xff] (!%p271_p9)   ;;  %v3165_v14 = vld [vmem:[%s5393_s1 + $0x8] ss:$16 sps:$4 sm:$0xff] (!%p271_p9)   ;;  %892 = vmatprep.subr.bf16.mxu1 (!%p271_p9), %v3163_v13 }
  0x11   : > { %v3127_v8 = vld [vmem:[%s5393_s1 + $0x84] ss:$16 sps:$4 sm:$0xff] (!%p271_p9)   ;;  %v3129_v9 = vld [vmem:[%s5393_s1 + $0x80] ss:$16 sps:$4 sm:$0xff] (!%p271_p9)   ;;  %v3166_v20 = vld [vmem:[%s5393_s1 + $0x2c] ss:$16 sps:$4 sm:$0xff] (!%p271_p9)   ;;  %893 = vmatpush1.bf16.msra.mxu1 (!%p271_p9), %v3165_v14 }
  0x12   : > { %v3130_v10 = vld [vmem:[%s5393_s1 + $0xa4] ss:$16 sps:$4 sm:$0xff] (!%p271_p9)   ;;  %v3132_v11 = vld [vmem:[%s5393_s1 + $0xa0] ss:$16 sps:$4 sm:$0xff] (!%p271_p9)   ;;  %v3168_v21 = vld [vmem:[%s5393_s1 + $0x28] ss:$16 sps:$4 sm:$0xff] (!%p271_p9)   ;;  %894 = vmatprep.subr.bf16.mxu1 (!%p271_p9), %v3166_v20 }
  0x13   : > { %782 = vmatpush1.bf16.msra.mxu0 (!%p271_p9), %v3120_v3  ;;  %v3133_v12 = vld [vmem:[%s5393_s1 + $0xc4] ss:$16 sps:$4 sm:$0xff] (!%p271_p9)   ;;  %v3135_v16 = vld [vmem:[%s5393_s1 + $0xc0] ss:$16 sps:$4 sm:$0xff] (!%p271_p9)   ;;  %v3169_v22 = vld [vmem:[%s5393_s1 + $0x4c] ss:$16 sps:$4 sm:$0xff] (!%p271_p9)  }
  0x14   : > { %783 = vmatprep.subr.bf16.mxu0 (!%p271_p9), %v3121_v4  ;;  %v3136_v17 = vld [vmem:[%s5393_s1 + $0xe4] ss:$16 sps:$4 sm:$0xff] (!%p271_p9)   ;;  %v3138_v23 = vld [vmem:[%s5393_s1 + $0xe0] ss:$16 sps:$4 sm:$0xff] (!%p271_p9)   ;;  %v3171_v25 = vld [vmem:[%s5393_s1 + $0x48] ss:$16 sps:$4 sm:$0xff] (!%p271_p9)  }
  0x15   : > { %s5432_s10 = smov (!%p311_p10, %s2742_s10), 31  ;;  %v3139_v24 = vld [vmem:[%s5393_s1 + $0x104] ss:$16 sps:$4 sm:$0xff]   ;;  %895 = vmatpush1.bf16.msra.mxu1 %v3168_v21  ;;  %v3172_v26 = vld [vmem:[%s5393_s1 + $0x6c] ss:$16 sps:$4 sm:$0xff]   ;;  %vm1734_vm2 = vcmask 64512  }
  0x16   : > { %s2829_s12 = sshll.u32 %s5432_s10, 4  ;;  %896 = vmatprep.subr.bf16.mxu1 %v3169_v22  ;;  %v3141_v27 = vld [vmem:[%s5393_s1 + $0x100] ss:$16 sps:$4 sm:$0xff]   ;;  %v3142_v28 = vld [vmem:[%s5393_s1 + $0x124] ss:$16 sps:$4 sm:$0xff]   ;;  %v1070_v0 = vld [vmem:[%s5395_s3 + $0x8] sm:$0xff] }
  0x17   : > { %784 = vmatpush1.bf16.msra.mxu0 %v3123_v5  ;;  %s3674_s20 = scalar_lea.vmem %s5392_s0, %s2829_s12  ;;  %v3174_v29 = vld [vmem:[%s5393_s1 + $0x68] ss:$16 sps:$4 sm:$0xff]   ;;  %v3175_v30 = vld [vmem:[%s5393_s1 + $0x8c] ss:$16 sps:$4 sm:$0xff]   ;;  %v3144_v31 = vld [vmem:[%s5393_s1 + $0x120] ss:$16 sps:$4 sm:$0xff]  }
  0x18   : > { %785 = vmatprep.subr.bf16.mxu0 %v3124_v6  ;;  %v326_v15 = vld [vmem:[%s3674_s20 + $0x8] sm:$0xff]  ;;  %v328_v18 = vld [vmem:[%s3674_s20 + $0x18] sm:$0xff]  ;;  %v3145_v32 = vld [vmem:[%s5393_s1 + $0x144] ss:$16 sps:$4 sm:$0xff]   ;;  %vm1751_vm3 = vcmask 130048   ;;  %s2746_s18 = sshll.u32 %s5432_s10, 3 }
  0x19   : > { %v358_v19 = vpack.c.bf16 %v328_v18, %v326_v15  ;;  %897 = vmatpush1.bf16.msra.mxu1 %v3171_v25  ;;  %v3177_v33 = vld [vmem:[%s5393_s1 + $0x88] ss:$16 sps:$4 sm:$0xff]   ;;  %v3178_v34 = vld [vmem:[%s5393_s1 + $0xac] ss:$16 sps:$4 sm:$0xff]   ;;  %v3147_v35 = vld [vmem:[%s5393_s1 + $0x140] ss:$16 sps:$4 sm:$0xff]   ;;  %s4465_s21 = scalar_lea.vmem %s5400_s8, %s2746_s18 }
  0x1a   : > { %898 = vmatprep.subr.bf16.mxu1 %v3172_v26  ;;  %v3148_v36 = vld [vmem:[%s5393_s1 + $0x164] ss:$16 sps:$4 sm:$0xff]   ;;  %v3180_v37 = vld [vmem:[%s5393_s1 + $0xa8] ss:$16 sps:$4 sm:$0xff]   ;;  %v3181_v38 = vld [vmem:[%s5393_s1 + $0xcc] ss:$16 sps:$4 sm:$0xff]  }
  0x1b   : > { %786 = vmatpush1.bf16.msra.mxu0 %v3126_v7  ;;  %811 = vmatprep.mubr.bf16.mxu0 %v358_v19  ;;  %v3150_v39 = vld [vmem:[%s5393_s1 + $0x160] ss:$16 sps:$4 sm:$0xff]   ;;  %v3151_v40 = vld [vmem:[%s5393_s1 + $0x184] ss:$16 sps:$4 sm:$0xff]   ;;  %v3183_v41 = vld [vmem:[%s5393_s1 + $0xc8] ss:$16 sps:$4 sm:$0xff]  }
  0x1c   : > { %787 = vmatprep.subr.bf16.mxu0 %v3127_v8  ;;  %924 = vmatprep.mubr.bf16.mxu1 %v358_v19  ;;  %v3184_v42 = vld [vmem:[%s5393_s1 + $0xec] ss:$16 sps:$4 sm:$0xff]   ;;  %v3153_v43 = vld [vmem:[%s5393_s1 + $0x180] ss:$16 sps:$4 sm:$0xff]   ;;  %v3154_v44 = vld [vmem:[%s5393_s1 + $0x1a4] ss:$16 sps:$4 sm:$0xff]  }
  0x1d   : > { %899 = vmatpush1.bf16.msra.mxu1 %v3174_v29  ;;  %v3186_v45 = vld [vmem:[%s5393_s1 + $0xe8] ss:$16 sps:$4 sm:$0xff]   ;;  %v3187_v46 = vld [vmem:[%s5393_s1 + $0x10c] ss:$16 sps:$4 sm:$0xff]   ;;  %v3156_v47 = vld [vmem:[%s5393_s1 + $0x1a0] ss:$16 sps:$4 sm:$0xff]  }
  0x1e   : > { %900 = vmatprep.subr.bf16.mxu1 %v3175_v30  ;;  %v3157_v48 = vld [vmem:[%s5393_s1 + $0x1c4] ss:$16 sps:$4 sm:$0xff]   ;;  %v3189_v49 = vld [vmem:[%s5393_s1 + $0x108] ss:$16 sps:$4 sm:$0xff]   ;;  %v3190_v50 = vld [vmem:[%s5393_s1 + $0x12c] ss:$16 sps:$4 sm:$0xff]  }
  0x1f   : > { %788 = vmatpush1.bf16.msra.mxu0 %v3129_v9  ;;  %v3159_v51 = vld [vmem:[%s5393_s1 + $0x1c0] ss:$16 sps:$4 sm:$0xff]   ;;  %v3160_v52 = vld [vmem:[%s5393_s1 + $0x1e4] ss:$16 sps:$4 sm:$0xff]   ;;  %v3192_v53 = vld [vmem:[%s5393_s1 + $0x128] ss:$16 sps:$4 sm:$0xff]  }
  0x20   : > { %789 = vmatprep.subr.bf16.mxu0 %v3130_v10  ;;  %v1085_v54 = vld [vmem:[%s5395_s3 + $0x80] sm:$0xff]  ;;  %v3193_v57 = vld [vmem:[%s5393_s1 + $0x14c] ss:$16 sps:$4 sm:$0xff]   ;;  %v327_v59 = vld [vmem:[%s3674_s20 + $0x10] sm:$0xff]  ;;  %s3533_s22 = smov 120   ;;  %s2831_s17 = sshll.u32 %s3604_s9, 12 }
  0x21   : > { %901 = vmatpush1.bf16.msra.mxu1 %v3177_v33  ;;  %v3162_v56 = vld [vmem:[%s5393_s1 + $0x1e0] ss:$16 sps:$4 sm:$0xff]   ;;  %v330_v60 = vld [vmem:[%s3674_s20 + $0x28] sm:$0xff]  ;;  %v332_v61 = vld [vmem:[%s3674_s20 + $0x38] sm:$0xff]  ;;  %v3811_v62 = vpack.c.bf16 %v1086_v55, %v1085_v54  ;;  %s3535_s23 = smov [#allocation2]  }
  0x22   : > { %902 = vmatprep.subr.bf16.mxu1 %v3178_v34  ;;  %v325_v58 = vld [vmem:[%s3674_s20] sm:$0xff]  ;;  %v3195_v1 = vld [vmem:[%s5393_s1 + $0x148] ss:$16 sps:$4 sm:$0xff]   ;;  %v1087_v2 = vld [vmem:[%s5395_s3 + $0x90] sm:$0xff]  ;;  %v3833_v6 = vpack.c.bf16 %v332_v61, %v330_v60  ;;  %s3473_s24 = sshll.u32 %s3535_s23, 4  ;;  %s3474_s24 = int_to_ptr.vmem [resolvable:$false] %s3473_s24 }
  0x23   : > { %790 = vmatpush1.bf16.msra.mxu0 %v3132_v11  ;;  %v1069_v63 = vld [vmem:[%s5395_s3] sm:$0xff]  ;;  %v1088_v3 = vld [vmem:[%s5395_s3 + $0x98] sm:$0xff]  ;;  %v3828_v4 = vpack.c.bf16 %v327_v59, %v325_v58  ;;  %v1071_v9 = vld [vmem:[%s5395_s3 + $0x10] sm:$0xff]  ;;  %s3475_s25 = scalar_lea.vmem %s3474_s24, 8192 }
  0x24   : > { %791 = vmatprep.subr.bf16.mxu0 %v3133_v12  ;;  %v3196_v5 = vld [vmem:[%s5393_s1 + $0x16c] ss:$16 sps:$4 sm:$0xff]   ;;  %v3835_v7 = vpack.c.bf16 %v1070_v0, %v1069_v63  ;;  %v3838_v8 = vpack.c.bf16 %v1088_v3, %v1087_v2  ;;  %v3198_v11 = vld [vmem:[%s5393_s1 + $0x168] ss:$16 sps:$4 sm:$0xff]   ;;  %v1089_v12 = vld [vmem:[%s5395_s3 + $0xa0] sm:$0xff] }
  0x25   : > { %903 = vmatpush1.bf16.msra.mxu1 %v3180_v37  ;;  %v1072_v10 = vld [vmem:[%s5395_s3 + $0x18] sm:$0xff]  ;;  %v1090_v13 = vld [vmem:[%s5395_s3 + $0xa8] sm:$0xff]  ;;  %v329_v15 = vld [vmem:[%s3674_s20 + $0x20] sm:$0xff] }
  0x26   : > { %904 = vmatprep.subr.bf16.mxu1 %v3181_v38  ;;  %v3199_v14 = vld [vmem:[%s5393_s1 + $0x18c] ss:$16 sps:$4 sm:$0xff]   ;;  %v3864_v18 = vpack.c.bf16 %v1072_v10, %v1071_v9  ;;  %v3868_v20 = vpack.c.bf16 %v1090_v13, %v1089_v12  ;;  %v1073_v21 = vld [vmem:[%s5395_s3 + $0x20] sm:$0xff]  ;;  %v3204_v33 = vld [vmem:[%s5393_s1 + $0x1a8] ss:$16 sps:$4 sm:$0xff]  }
  0x27   : > { %792 = vmatpush1.bf16.msra.mxu0 %v3135_v16  ;;  %v331_v16 = vld [vmem:[%s3674_s20 + $0x30] sm:$0xff]  ;;  %v336_v19 = vld [vmem:[%s3674_s20 + $0x58] sm:$0xff]  ;;  %v1074_v22 = vld [vmem:[%s5395_s3 + $0x28] sm:$0xff] }
  0x28   : > { %793 = vmatprep.subr.bf16.mxu0 %v3136_v17  ;;  %v334_v17 = vld [vmem:[%s3674_s20 + $0x48] sm:$0xff]  ;;  %v1092_v25 = vld [vmem:[%s5395_s3 + $0xb8] sm:$0xff]  ;;  %v3885_v26 = vpack.c.bf16 %v331_v16, %v329_v15  ;;  %v3893_v29 = vpack.c.bf16 %v1074_v22, %v1073_v21  ;;  %v1093_v34 = vld [vmem:[%s5395_s3 + $0xc0] sm:$0xff] }
  0x29   : > { %905 = vmatpush1.bf16.msra.mxu1 %v3183_v41  ;;  %v333_v37 = vld [vmem:[%s3674_s20 + $0x40] sm:$0xff]  ;;  %v335_v38 = vld [vmem:[%s3674_s20 + $0x50] sm:$0xff]  ;;  %v340_v41 = vld [vmem:[%s3674_s20 + $0x78] sm:$0xff] }
  0x2a   : > { %906 = vmatprep.subr.bf16.mxu1 %v3184_v42  ;;  %v1080_v54 = vld [vmem:[%s5395_s3 + $0x58] sm:$0xff]  ;;  %v337_v58 = vld [vmem:[%s3674_s20 + $0x60] sm:$0xff]  ;;  %v339_v59 = vld [vmem:[%s3674_s20 + $0x70] sm:$0xff] }
  0x2b   : > { %794 = vmatpush1.bf16.msra.mxu0 %v3138_v23  ;;  %v3201_v23 = vld [vmem:[%s5393_s1 + $0x188] ss:$16 sps:$4 sm:$0xff]   ;;  %v341_v3 = vld [vmem:[%s3674_s20 + $0x80] sm:$0xff]  ;;  %v351_v15 = vld [vmem:[%s3674_s20 + $0xd0] sm:$0xff] }
  0x2c   : > { %795 = vmatprep.subr.bf16.mxu0 %v3139_v24  ;;  %v1091_v24 = vld [vmem:[%s5395_s3 + $0xb0] sm:$0xff]  ;;  %v3210_v55 = vld [vmem:[%s5393_s1 + $0x1e8] ss:$16 sps:$4 sm:$0xff]  }
  0x2d   : > { %907 = vmatpush1.bf16.msra.mxu1 %v3186_v45  ;;  %v3896_v30 = vpack.c.bf16 %v1092_v25, %v1091_v24  ;;  %v3207_v45 = vld [vmem:[%s5393_s1 + $0x1c8] ss:$16 sps:$4 sm:$0xff]   ;;  %v355_v21 = vld [vmem:[%s3674_s20 + $0xf0] sm:$0xff] }
  0x2e   : > { %908 = vmatprep.subr.bf16.mxu1 %v3187_v46  ;;  %v1095_v46 = vld [vmem:[%s5395_s3 + $0xd0] sm:$0xff]  ;;  %v342_v61 = vld [vmem:[%s3674_s20 + $0x88] sm:$0xff]  ;;  %v344_v63 = vld [vmem:[%s3674_s20 + $0x98] sm:$0xff] }
  0x2f   : > { %796 = vmatpush1.bf16.msra.mxu0 %v3141_v27  ;;  %v3202_v27 = vld [vmem:[%s5393_s1 + $0x1ac] ss:$16 sps:$4 sm:$0xff]   ;;  %v366_v2 = vpack.c.bf16 %v344_v63, %v342_v61 }
  0x30   : > { %797 = vmatprep.subr.bf16.mxu0 %v3142_v28  ;;  %v3890_v28 = vpack.c.bf16 %v336_v19, %v334_v17  ;;  %v348_v9 = vld [vmem:[%s3674_s20 + $0xb8] sm:$0xff]  ;;  %v350_v10 = vld [vmem:[%s3674_s20 + $0xc8] sm:$0xff] }
  0x31   : > { %909 = vmatpush1.bf16.msra.mxu1 %v3189_v49  ;;  %v3208_v49 = vld [vmem:[%s5393_s1 + $0x1ec] ss:$16 sps:$4 sm:$0xff]  }
  0x32   : > { %910 = vmatprep.subr.bf16.mxu1 %v3190_v50  ;;  %v354_v16 = vld [vmem:[%s3674_s20 + $0xe8] sm:$0xff]  ;;  %v356_v17 = vld [vmem:[%s3674_s20 + $0xf8] sm:$0xff] }
  0x33   : > { %798 = vmatpush1.bf16.msra.mxu0 %v3144_v31  ;;  %v1075_v31 = vld [vmem:[%s5395_s3 + $0x30] sm:$0xff]  ;;  %v372_v19 = vpack.c.bf16 %v356_v17, %v354_v16  ;;  %v1082_v24 = vld [vmem:[%s5395_s3 + $0x68] sm:$0xff] }
  0x34   : > { %799 = vmatprep.subr.bf16.mxu0 %v3145_v32  ;;  %v1076_v32 = vld [vmem:[%s5395_s3 + $0x38] sm:$0xff] }
  0x35   : > { %911 = vmatpush1.bf16.msra.mxu1 %v3192_v53  ;;  %v1079_v53 = vld [vmem:[%s5395_s3 + $0x50] sm:$0xff] }
  0x36   : > { %912 = vmatprep.subr.bf16.mxu1 %v3193_v57  ;;  %v1098_v57 = vld [vmem:[%s5395_s3 + $0xe8] sm:$0xff]  ;;  %v3014_v60 = vpack.c.bf16 %v1080_v54, %v1079_v53 }
  0x37   : > { %800 = vmatpush1.bf16.msra.mxu0 %v3147_v35  ;;  %v1094_v35 = vld [vmem:[%s5395_s3 + $0xc8] sm:$0xff] }
  0x38   : > { %801 = vmatprep.subr.bf16.mxu0 %v3148_v36  ;;  %v3205_v36 = vld [vmem:[%s5393_s1 + $0x1cc] ss:$16 sps:$4 sm:$0xff]   ;;  %v3926_v42 = vpack.c.bf16 %v1094_v35, %v1093_v34  ;;  %v439_v35 = vlaneseq }
  0x39   : > { %913 = vmatpush1.bf16.msra.mxu1 %v3195_v1  ;;  %v363_v1 = vpack.c.bf16 %v339_v59, %v337_v58 }
  0x3a   : > { %914 = vmatprep.subr.bf16.mxu1 %v3196_v5  ;;  %v343_v5 = vld [vmem:[%s3674_s20 + $0x90] sm:$0xff] }
  0x3b   : > { %802 = vmatpush1.bf16.msra.mxu0 %v3150_v39  ;;  %v338_v39 = vld [vmem:[%s3674_s20 + $0x68] sm:$0xff] }
  0x3c   : > { %803 = vmatprep.subr.bf16.mxu0 %v3151_v40  ;;  %v3922_v40 = vpack.c.bf16 %v1076_v32, %v1075_v31  ;;  %v364_v50 = vpack.c.bf16 %v340_v41, %v338_v39  ;;  %v1117_v32 = vld [vmem:[%s5395_s3 + $0x180] sm:$0xff] }
  0x3d   : > { %915 = vmatpush1.bf16.msra.mxu1 %v3198_v11  ;;  %v352_v11 = vld [vmem:[%s3674_s20 + $0xd8] sm:$0xff] }
  0x3e   : > { %916 = vmatprep.subr.bf16.mxu1 %v3199_v14  ;;  %v370_v13 = vpack.c.bf16 %v352_v11, %v350_v10  ;;  %v349_v14 = vld [vmem:[%s3674_s20 + $0xc0] sm:$0xff] }
  0x3f   : > { %804 = vmatpush1.bf16.msra.mxu0 %v3153_v43  ;;  %v1077_v43 = vld [vmem:[%s5395_s3 + $0x40] sm:$0xff] }
  0x40   : > { %805 = vmatprep.subr.bf16.mxu0 %v3154_v44  ;;  %v1078_v44 = vld [vmem:[%s5395_s3 + $0x48] sm:$0xff] }
  0x41   : > { %917 = vmatpush1.bf16.msra.mxu1 %v3201_v23  ;;  %v1081_v23 = vld [vmem:[%s5395_s3 + $0x60] sm:$0xff] }
  0x42   : > { %918 = vmatprep.subr.bf16.mxu1 %v3202_v27  ;;  %v3018_v25 = vpack.c.bf16 %v1082_v24, %v1081_v23  ;;  %v1100_v27 = vld [vmem:[%s5395_s3 + $0xf8] sm:$0xff] }
  0x43   : > { %806 = vmatpush1.bf16.msra.mxu0 %v3156_v47  ;;  %v1096_v47 = vld [vmem:[%s5395_s3 + $0xd8] sm:$0xff] }
  0x44   : > { %807 = vmatprep.subr.bf16.mxu0 %v3157_v48  ;;  %v361_v48 = vpack.c.bf16 %v335_v38, %v333_v37  ;;  %v4024_v38 = vld [vmem:[%s5394_s2] sm:$0xf] }
  0x45   : > { %919 = vmatpush1.bf16.msra.mxu1 %v3204_v33  ;;  %v1118_v33 = vld [vmem:[%s5395_s3 + $0x188] sm:$0xff] }
  0x46   : > { %920 = vmatprep.subr.bf16.mxu1 %v3205_v36  ;;  %v3024_v34 = vpack.c.bf16 %v1118_v33, %v1117_v32  ;;  %v4018_v36 = vshrl.u32 %v439_v35, 7 }
  0x47   : > { %808 = vmatpush1.bf16.msra.mxu0 %v3159_v51  ;;  %v3010_v51 = vpack.c.bf16 %v1078_v44, %v1077_v43 }
  0x48   : > { %809 = vmatprep.subr.bf16.mxu0 %v3160_v52  ;;  %v3012_v52 = vpack.c.bf16 %v1096_v47, %v1095_v46  ;;  %v441_v37 = vsub.s32 0, %v4018_v36  ;;  %v445_v39 = vsub.s32 1, %v4018_v36 }
  0x49   : > { %921 = vmatpush1.bf16.msra.mxu1 %v3207_v45 }
  0x4a   : > { %922 = vmatprep.subr.bf16.mxu1 %v3208_v49  ;;  %v4035_v41 = vrot.slane %v4024_v38, %v445_v39 }
  0x4b   : > { %810 = vmatpush1.bf16.msra.mxu0 %v3162_v56  ;;  %v1097_v56 = vld [vmem:[%s5395_s3 + $0xe0] sm:$0xff] }
  0x4c   : > { %2993 = vmatprep.subr.bf16.mxu0 %v3811_v62  ;;  %v3016_v0 = vpack.c.bf16 %v1098_v57, %v1097_v56 }
  0x4d   : > { %923 = vmatpush1.bf16.msra.mxu1 %v3210_v55 }
  0x4e   : > { %812 = vmatmul.mubr.bf16.vlgmr.msra.gmra.mrb[0].mxu0 %v3828_v4  ;;  %3056 = vmatprep.subr.bf16.mxu1 %v3811_v62  ;;  %v346_v62 = vld [vmem:[%s3674_s20 + $0xa8] sm:$0xff] }
  0x4f   : > { %821 = vmatprep.mubr.bf16.mxu0 %v3833_v6  ;;  %2995 = vmatpush3.bf16.msra.mxu0 %v3835_v7 }
  0x50   : > { %2997 = vmatprep.subr.bf16.mxu0 %v3838_v8  ;;  %925 = vmatmul.mubr.bf16.vlgmr.msra.gmra.mrb[0].mxu1 %v3828_v4  ;;  %v365_v4 = vpack.c.bf16 %v343_v5, %v341_v3 }
  0x51   : > { %934 = vmatprep.mubr.bf16.mxu1 %v3833_v6  ;;  %3064 = vmatpush3.bf16.msra.mxu1 %v3835_v7  ;;  %v368_v6 = vpack.c.bf16 %v348_v9, %v346_v62  ;;  %v345_v7 = vld [vmem:[%s3674_s20 + $0xa0] sm:$0xff] }
  0x52   : > { %3057 = vmatprep.subr.bf16.mxu1 %v3838_v8  ;;  %v347_v8 = vld [vmem:[%s3674_s20 + $0xb0] sm:$0xff] }
  0x53   : > { %2999 = vmatpush3.bf16.msra.mxu0 %v3864_v18  ;;  %v367_v12 = vpack.c.bf16 %v347_v8, %v345_v7 }
  0x54   : > { %3001 = vmatprep.subr.bf16.mxu0 %v3868_v20 }
  0x55   : > { %3065 = vmatpush3.bf16.msra.mxu1 %v3864_v18  ;;  %v369_v18 = vpack.c.bf16 %v351_v15, %v349_v14 }
  0x56   : > { %822 = vmatmul.mubr.bf16.gmra.mrb[4].mxu0 %v3885_v26  ;;  %3058 = vmatprep.subr.bf16.mxu1 %v3868_v20  ;;  %v353_v20 = vld [vmem:[%s3674_s20 + $0xe0] sm:$0xff]  ;;  %s300_s20 = sand.u32 1, %s3523_s28  }
  0x57   : > { %831 = vmatprep.mubr.bf16.mxu0 %v3890_v28  ;;  %3003 = vmatpush3.bf16.msra.mxu0 %v3893_v29  ;;  %v371_v22 = vpack.c.bf16 %v355_v21, %v353_v20  ;;  %s2741_s13 = sshll.u32 %s300_s20, 8  ;;  %s5351_s9 = scalar_lea.sflag [#allocation3], %s300_s20 }
  0x58   : > { %3005 = vmatprep.subr.bf16.mxu0 %v3896_v30  ;;  %935 = vmatmul.mubr.bf16.gmra.mrb[4].mxu1 %v3885_v26  ;;  %v1099_v26 = vld [vmem:[%s5395_s3 + $0xf0] sm:$0xff]  ;;  %s5276_s12 = scalar_lea.vmem [#allocation2], %s2741_s13 }
  0x59   : > { %944 = vmatprep.mubr.bf16.mxu1 %v3890_v28  ;;  %3066 = vmatpush3.bf16.msra.mxu1 %v3893_v29  ;;  %v3020_v28 = vpack.c.bf16 %v1100_v27, %v1099_v26  ;;  %v1083_v29 = vld [vmem:[%s5395_s3 + $0x70] sm:$0xff]  ;;  %s2646_s18 = sshll.u32 %s5276_s12, 4  ;;  %s5341_s18 = int_to_ptr.vmem [resolvable:$true] %s2646_s18 }
  0x5a   : > { %3059 = vmatprep.subr.bf16.mxu1 %v3896_v30  ;;  %v1084_v30 = vld [vmem:[%s5395_s3 + $0x78] sm:$0xff]  ;;  %p3476_p0 = scmp.lt.s32.totalorder %s5341_s18, %s3474_s24 }
  0x5b   : > { %3007 = vmatpush3.bf16.msra.mxu0 %v3922_v40  ;;  %v3022_v31 = vpack.c.bf16 %v1084_v30, %v1083_v29 }
  0x5c   : > { %3009 = vmatprep.subr.bf16.mxu0 %v3926_v42 }
  0x5d   : > { %3067 = vmatpush3.bf16.msra.mxu1 %v3922_v40  ;;  %v4030_v40 = vrot.slane %v4024_v38, %v441_v37 }
  0x5e   : > { %832 = vmatmul.mubr.bf16.gmra.mrb[8].mxu0 %v361_v48  ;;  %3060 = vmatprep.subr.bf16.mxu1 %v3926_v42 }
  0x5f   : > { %841 = vmatprep.mubr.bf16.mxu0 %v364_v50  ;;  %3011 = vmatpush3.bf16.msra.mxu0 %v3010_v51 }
  0x60   : > { %3013 = vmatprep.subr.bf16.mxu0 %v3012_v52  ;;  %945 = vmatmul.mubr.bf16.gmra.mrb[8].mxu1 %v361_v48 }
  0x61   : > { %954 = vmatprep.mubr.bf16.mxu1 %v364_v50  ;;  %3068 = vmatpush3.bf16.msra.mxu1 %v3010_v51 }
  0x62   : > { %3061 = vmatprep.subr.bf16.mxu1 %v3012_v52 }
  0x63   : > { %3015 = vmatpush3.bf16.msra.mxu0 %v3014_v60 }
  0x64   : > { %3017 = vmatprep.subr.bf16.mxu0 %v3016_v0 }
  0x65   : > { %3069 = vmatpush3.bf16.msra.mxu1 %v3014_v60 }
  0x66   : > { %842 = vmatmul.mubr.bf16.gmra.mrb[12].mxu0 %v363_v1  ;;  %3062 = vmatprep.subr.bf16.mxu1 %v3016_v0 }
  0x67   : > { %851 = vmatprep.mubr.bf16.mxu0 %v366_v2  ;;  %3019 = vmatpush3.bf16.msra.mxu0 %v3018_v25 }
  0x68   : > { %955 = vmatmul.mubr.bf16.gmra.mrb[12].mxu1 %v363_v1  ;;  %3021 = vmatprep.subr.bf16.mxu0 %v3020_v28 }
  0x69   : > { %964 = vmatprep.mubr.bf16.mxu1 %v366_v2  ;;  %3070 = vmatpush3.bf16.msra.mxu1 %v3018_v25 }
  0x6a   : > { %3063 = vmatprep.subr.bf16.mxu1 %v3020_v28 }
  0x6b   : > { %3023 = vmatpush3.bf16.msra.mxu0 %v3022_v31 }
  0x6d   : > { %3071 = vmatpush3.bf16.msra.mxu1 %v3022_v31 }
  0x6e   : > { %852 = vmatmul.mubr.bf16.gmra.mrb[16].mxu0 %v365_v4  ;;  %3025 = vmatprep.subr.bf16.mxu1 %v3024_v34 }
  0x6f   : > { %861 = vmatprep.mubr.bf16.mxu0 %v368_v6 }
  0x70   : > { %965 = vmatmul.mubr.bf16.gmra.mrb[16].mxu1 %v365_v4 }
  0x71   : > { %974 = vmatprep.mubr.bf16.mxu1 %v368_v6 }
  0x76   : > { %862 = vmatmul.mubr.bf16.gmra.mrb[20].mxu0 %v367_v12 }
  0x77   : > { %871 = vmatprep.mubr.bf16.mxu0 %v370_v13 }
  0x78   : > { %975 = vmatmul.mubr.bf16.gmra.mrb[20].mxu1 %v367_v12 }
  0x79   : > { %984 = vmatprep.mubr.bf16.mxu1 %v370_v13 }
  0x7e   : > { %872 = vmatmul.mubr.bf16.gmra.mrb[24].mxu0 %v369_v18 }
  0x7f   : > { %881 = vmatprep.mubr.bf16.mxu0 %v372_v19 }
  0x80   : > { %985 = vmatmul.mubr.bf16.gmra.mrb[24].mxu1 %v369_v18 }
  0x81   : > { %994 = vmatprep.mubr.bf16.mxu1 %v372_v19 }
  0x86   : > { %882 = vmatmul.mubr.bf16.gmra.mrb[28].mxu0 %v371_v22 }
  0x88   : > { %995 = vmatmul.mubr.bf16.gmra.mrb[28].mxu1 %v371_v22 }
 0x121   : > { %v813_v42 = vpop.f32.mrb[0].mxu0 }
 0x122   : > { %v814_v43 = vadd.f32 %v813_v42, %v4030_v40  ;;  %v815_v44 = vpop.f32.mrb[1].mxu0  ;;  %v1101_v42 = vld [vmem:[%s5395_s3 + $0x100] sm:$0xff] }
 0x123   : > { %v816_v45 = vadd.f32 %v815_v44, %v4035_v41  ;;  %v817_v46 = vpop.f32.mrb[2].mxu0  ;;  %v4049_v13 = vpop.f32.mrb[0].mxu1 }
 0x124   : > { %v819_v47 = vpop.f32.mrb[3].mxu0  ;;  %v1005_v50 = vmax.f32 %v814_v43, 0.0  ;;  %v818_v51 = vadd.f32 %v817_v46, %v4030_v40  ;;  %v4051_v14 = vpop.f32.mrb[1].mxu1  ;;  %v1102_v43 = vld [vmem:[%s5395_s3 + $0x108] sm:$0xff] }
 0x125   : > { %v1006_v48 = vmax.f32 %v816_v45, 0.0  ;;  %v820_v49 = vadd.f32 %v819_v47, %v4035_v41  ;;  %v4053_v16 = vpop.f32.mrb[2].mxu1  ;;  %v1119_v47 = vld [vmem:[%s5395_s3 + $0x190] sm:$0xff] }
 0x126   : > { %v1009_v54 = vmax.f32 %v818_v51, 0.0  ;;  %v4056_v20 = vpop.f32.mrb[3].mxu1 }
 0x127   : > { %v1010_v52 = vmax.f32 %v820_v49, 0.0  ;;  %1204 = vmatprep.mubr.f32.mxu0 %v1006_v48  ;;  %v1120_v48 = vld [vmem:[%s5395_s3 + $0x198] sm:$0xff] }
 0x128   : > { %1205 = vmatmul.mubr.f32.vlgmr.msra.gmra.mrb[32].mxu0 %v1005_v50 }
 0x129   : > { %v823_v53 = vpop.f32.mrb[4].mxu0  ;;  %1209 = vmatprep.mubr.f32.mxu0 %v1010_v52  ;;  %v3026_v52 = vpack.c.bf16 %v1102_v43, %v1101_v42 }
 0x12a   : > { %v824_v55 = vadd.f32 %v823_v53, %v4030_v40  ;;  %v825_v56 = vpop.f32.mrb[5].mxu0 }
 0x12b   : > { %v826_v57 = vadd.f32 %v825_v56, %v4035_v41  ;;  %v827_v58 = vpop.f32.mrb[6].mxu0  ;;  %v4061_v29 = vpop.f32.mrb[4].mxu1  ;;  %v1103_v56 = vld [vmem:[%s5395_s3 + $0x110] sm:$0xff] }
 0x12c   : > { %v829_v59 = vpop.f32.mrb[7].mxu0  ;;  %1210 = vmatmul.mubr.f32.gmra.mrb[34].mxu0 %v1009_v54  ;;  %v1013_v63 = vmax.f32 %v824_v55, 0.0  ;;  %v828_v0 = vadd.f32 %v827_v58, %v4030_v40  ;;  %v4063_v30 = vpop.f32.mrb[5].mxu1  ;;  %v3028_v55 = vpack.c.bf16 %v1120_v48, %v1119_v47  ;;  %v1109_v48 = vld [vmem:[%s5395_s3 + $0x140] sm:$0xff] }
 0x12d   : > { %v1014_v60 = vmax.f32 %v826_v57, 0.0  ;;  %v830_v61 = vadd.f32 %v829_v59, %v4035_v41  ;;  %v4065_v32 = vpop.f32.mrb[6].mxu1  ;;  %v1104_v57 = vld [vmem:[%s5395_s3 + $0x118] sm:$0xff]  ;;  %v1121_v59 = vld [vmem:[%s5395_s3 + $0x1a0] sm:$0xff] }
 0x12e   : > { %v1017_v3 = vmax.f32 %v828_v0, 0.0  ;;  %v4074_v44 = vpop.f32.mrb[7].mxu1 }
 0x12f   : > { %v1018_v1 = vmax.f32 %v830_v61, 0.0  ;;  %1214 = vmatprep.mubr.f32.mxu0 %v1014_v60  ;;  %v1122_v60 = vld [vmem:[%s5395_s3 + $0x1a8] sm:$0xff] }
 0x130   : > { %1215 = vmatmul.mubr.f32.gmra.mrb[36].mxu0 %v1013_v63 }
 0x131   : > { %v833_v2 = vpop.f32.mrb[8].mxu0  ;;  %1219 = vmatprep.mubr.f32.mxu0 %v1018_v1  ;;  %v3030_v1 = vpack.c.bf16 %v1104_v57, %v1103_v56 }
 0x132   : > { %v834_v5 = vadd.f32 %v833_v2, %v4030_v40  ;;  %v835_v62 = vpop.f32.mrb[9].mxu0 }
 0x133   : > { %v836_v9 = vadd.f32 %v835_v62, %v4035_v41  ;;  %v837_v4 = vpop.f32.mrb[10].mxu0  ;;  %v4097_v61 = vpop.f32.mrb[8].mxu1 }
 0x134   : > { %v839_v6 = vpop.f32.mrb[11].mxu0  ;;  %1220 = vmatmul.mubr.f32.gmra.mrb[38].mxu0 %v1017_v3  ;;  %v1021_v10 = vmax.f32 %v834_v5, 0.0  ;;  %v838_v11 = vadd.f32 %v837_v4, %v4030_v40  ;;  %v4099_v63 = vpop.f32.mrb[9].mxu1  ;;  %v1105_v4 = vld [vmem:[%s5395_s3 + $0x120] sm:$0xff] }
 0x135   : > { %v1022_v7 = vmax.f32 %v836_v9, 0.0  ;;  %v840_v8 = vadd.f32 %v839_v6, %v4035_v41  ;;  %v4101_v2 = vpop.f32.mrb[10].mxu1  ;;  %v3032_v9 = vpack.c.bf16 %v1122_v60, %v1121_v59  ;;  %v1106_v6 = vld [vmem:[%s5395_s3 + $0x128] sm:$0xff]  ;;  %v453_v59 = vsub.s32 3, %v4018_v36 }
 0x136   : > { %v1025_v17 = vmax.f32 %v838_v11, 0.0  ;;  %v1123_v11 = vld [vmem:[%s5395_s3 + $0x1b0] sm:$0xff] }
 0x137   : > { %v1026_v12 = vmax.f32 %v840_v8, 0.0  ;;  %1224 = vmatprep.mubr.f32.mxu0 %v1022_v7  ;;  %v4110_v7 = vpop.f32.mrb[11].mxu1 }
 0x138   : > { %1225 = vmatmul.mubr.f32.gmra.mrb[40].mxu0 %v1021_v10 }
 0x139   : > { %v843_v15 = vpop.f32.mrb[12].mxu0  ;;  %1229 = vmatprep.mubr.f32.mxu0 %v1026_v12  ;;  %v1124_v12 = vld [vmem:[%s5395_s3 + $0x1b8] sm:$0xff] }
 0x13a   : > { %v844_v18 = vadd.f32 %v843_v15, %v4030_v40  ;;  %v845_v19 = vpop.f32.mrb[13].mxu0 }
 0x13b   : > { %v846_v21 = vadd.f32 %v845_v19, %v4035_v41  ;;  %v847_v22 = vpop.f32.mrb[14].mxu0  ;;  %v3034_v19 = vpack.c.bf16 %v1106_v6, %v1105_v4  ;;  %v1130_v4 = vld [vmem:[%s5395_s3 + $0x1e8] sm:$0xff] }
 0x13c   : > { %v849_v23 = vpop.f32.mrb[15].mxu0  ;;  %1230 = vmatmul.mubr.f32.gmra.mrb[42].mxu0 %v1025_v17  ;;  %v1029_v26 = vmax.f32 %v844_v18, 0.0  ;;  %v848_v27 = vadd.f32 %v847_v22, %v4030_v40 }
 0x13d   : > { %v1030_v24 = vmax.f32 %v846_v21, 0.0  ;;  %v850_v25 = vadd.f32 %v849_v23, %v4035_v41  ;;  %v3036_v23 = vpack.c.bf16 %v1124_v12, %v1123_v11  ;;  %v4175_v12 = vrot.slane %v4024_v38, %v453_v59 }
 0x13e   : > { %v1033_v33 = vmax.f32 %v848_v27, 0.0  ;;  %v1125_v27 = vld [vmem:[%s5395_s3 + $0x1c0] sm:$0xff] }
 0x13f   : > { %v1034_v28 = vmax.f32 %v850_v25, 0.0  ;;  %1234 = vmatprep.mubr.f32.mxu0 %v1030_v24  ;;  %v1107_v24 = vld [vmem:[%s5395_s3 + $0x130] sm:$0xff]  ;;  %v1108_v25 = vld [vmem:[%s5395_s3 + $0x138] sm:$0xff] }
 0x140   : > { %1235 = vmatmul.mubr.f32.gmra.mrb[44].mxu0 %v1029_v26 }
 0x141   : > { %v853_v31 = vpop.f32.mrb[16].mxu0  ;;  %1239 = vmatprep.mubr.f32.mxu0 %v1034_v28  ;;  %v1126_v28 = vld [vmem:[%s5395_s3 + $0x1c8] sm:$0xff] }
 0x142   : > { %v854_v34 = vadd.f32 %v853_v31, %v4030_v40  ;;  %v855_v35 = vpop.f32.mrb[17].mxu0  ;;  %v4133_v31 = vpop.f32.mrb[12].mxu1  ;;  %v3040_v47 = vpack.c.bf16 %v1126_v28, %v1125_v27  ;;  %v1131_v28 = vld [vmem:[%s5395_s3 + $0x1f0] sm:$0xff] }
 0x143   : > { %v856_v45 = vadd.f32 %v855_v35, %v4035_v41  ;;  %v857_v46 = vpop.f32.mrb[18].mxu0  ;;  %v3038_v35 = vpack.c.bf16 %v1108_v25, %v1107_v24  ;;  %v1114_v24 = vld [vmem:[%s5395_s3 + $0x168] sm:$0xff] }
 0x144   : > { %v859_v49 = vpop.f32.mrb[19].mxu0  ;;  %1240 = vmatmul.mubr.f32.gmra.mrb[46].mxu0 %v1033_v33  ;;  %v1037_v53 = vmax.f32 %v854_v34, 0.0  ;;  %v858_v54 = vadd.f32 %v857_v46, %v4030_v40  ;;  %v4135_v33 = vpop.f32.mrb[13].mxu1 }
 0x145   : > { %v1038_v50 = vmax.f32 %v856_v45, 0.0  ;;  %v860_v51 = vadd.f32 %v859_v49, %v4035_v41  ;;  %v4137_v42 = vpop.f32.mrb[14].mxu1  ;;  %v1110_v49 = vld [vmem:[%s5395_s3 + $0x148] sm:$0xff] }
 0x146   : > { %v1041_v3 = vmax.f32 %v858_v54, 0.0  ;;  %v1128_v54 = vld [vmem:[%s5395_s3 + $0x1d8] sm:$0xff] }
 0x147   : > { %v1042_v58 = vmax.f32 %v860_v51, 0.0  ;;  %1244 = vmatprep.mubr.f32.mxu1 %v1038_v50  ;;  %v4146_v50 = vpop.f32.mrb[15].mxu1 }
 0x148   : > { %1245 = vmatmul.mubr.f32.vlgmr.msra.gmra.mrb[32].mxu1 %v1037_v53  ;;  %v1127_v53 = vld [vmem:[%s5395_s3 + $0x1d0] sm:$0xff]  ;;  %v4170_v6 = vpop.f32.mrb[16].mxu1 }
 0x149   : > { %3027 = vmatpush3.bf16.msra.mxu1 %v3026_v52  ;;  %v863_v0 = vpop.f32.mrb[20].mxu0  ;;  %1249 = vmatprep.mubr.f32.mxu1 %v1042_v58  ;;  %v3042_v58 = vpack.c.bf16 %v1110_v49, %v1109_v48 }
 0x14a   : > { %v864_v5 = vadd.f32 %v863_v0, %v4030_v40  ;;  %v865_v62 = vpop.f32.mrb[21].mxu0  ;;  %3029 = vmatprep.subr.bf16.mxu1 %v3028_v55 }
 0x14b   : > { %v866_v8 = vadd.f32 %v865_v62, %v4035_v41  ;;  %v867_v10 = vpop.f32.mrb[22].mxu0 }
 0x14c   : > { %v869_v15 = vpop.f32.mrb[23].mxu0  ;;  %1250 = vmatmul.mubr.f32.gmra.mrb[34].mxu1 %v1041_v3  ;;  %v1045_v21 = vmax.f32 %v864_v5, 0.0  ;;  %v868_v22 = vadd.f32 %v867_v10, %v4030_v40  ;;  %v1111_v3 = vld [vmem:[%s5395_s3 + $0x150] sm:$0xff]  ;;  %v1112_v5 = vld [vmem:[%s5395_s3 + $0x158] sm:$0xff] }
 0x14d   : > { %v1046_v17 = vmax.f32 %v866_v8, 0.0  ;;  %v870_v18 = vadd.f32 %v869_v15, %v4035_v41  ;;  %3031 = vmatpush3.bf16.msra.mxu1 %v3030_v1  ;;  %v3044_v1 = vpack.c.bf16 %v1128_v54, %v1127_v53  ;;  %v4172_v8 = vpop.f32.mrb[17].mxu1  ;;  %v3046_v11 = vpack.c.bf16 %v1112_v5, %v1111_v3  ;;  %v1115_v53 = vld [vmem:[%s5395_s3 + $0x170] sm:$0xff] }
 0x14e   : > { %3033 = vmatprep.subr.bf16.mxu1 %v3032_v9  ;;  %v1049_v43 = vmax.f32 %v868_v22, 0.0  ;;  %v1129_v9 = vld [vmem:[%s5395_s3 + $0x1e0] sm:$0xff]  ;;  %v4177_v15 = vpop.f32.mrb[18].mxu1 }
 0x14f   : > { %v1050_v26 = vmax.f32 %v870_v18, 0.0  ;;  %1254 = vmatprep.mubr.f32.mxu1 %v1046_v17  ;;  %v3048_v22 = vpack.c.bf16 %v1130_v4, %v1129_v9  ;;  %v4187_v25 = vpop.f32.mrb[19].mxu1 }
 0x150   : > { %1255 = vmatmul.mubr.f32.gmra.mrb[36].mxu1 %v1045_v21  ;;  %v449_v21 = vsub.s32 2, %v4018_v36 }
 0x151   : > { %3035 = vmatpush3.bf16.msra.mxu1 %v3034_v19  ;;  %v873_v34 = vpop.f32.mrb[24].mxu0  ;;  %1259 = vmatprep.mubr.f32.mxu1 %v1050_v26 }
 0x152   : > { %v874_v45 = vadd.f32 %v873_v34, %v4030_v40  ;;  %v875_v46 = vpop.f32.mrb[25].mxu0  ;;  %3037 = vmatprep.subr.bf16.mxu1 %v3036_v23  ;;  %v1113_v23 = vld [vmem:[%s5395_s3 + $0x160] sm:$0xff]  ;;  %v1132_v34 = vld [vmem:[%s5395_s3 + $0x1f8] sm:$0xff] }
 0x153   : > { %v876_v51 = vadd.f32 %v875_v46, %v4035_v41  ;;  %v877_v52 = vpop.f32.mrb[26].mxu0  ;;  %v929_v46 = vadd.f32 %v4051_v14, %v4175_v12  ;;  %v4209_v14 = vpop.f32.mrb[20].mxu1 }
 0x154   : > { %v879_v55 = vpop.f32.mrb[27].mxu0  ;;  %1260 = vmatmul.mubr.f32.gmra.mrb[38].mxu1 %v1049_v43  ;;  %v1053_v60 = vmax.f32 %v874_v45, 0.0  ;;  %v878_v0 = vadd.f32 %v877_v52, %v4030_v40  ;;  %v3052_v52 = vpack.c.bf16 %v1132_v34, %v1131_v28 }
 0x155   : > { %v1054_v56 = vmax.f32 %v876_v51, 0.0  ;;  %v880_v57 = vadd.f32 %v879_v55, %v4035_v41  ;;  %3039 = vmatpush3.bf16.msra.mxu1 %v3038_v35  ;;  %v4201_v51 = vrot.slane %v4024_v38, %v449_v21  ;;  %v4211_v55 = vpop.f32.mrb[21].mxu1 }
 0x156   : > { %3041 = vmatprep.subr.bf16.mxu1 %v3040_v47  ;;  %v1057_v17 = vmax.f32 %v878_v0, 0.0  ;;  %v3050_v47 = vpack.c.bf16 %v1114_v24, %v1113_v23  ;;  %v939_v0 = vadd.f32 %v4063_v30, %v4175_v12  ;;  %v943_v30 = vadd.f32 %v4074_v44, %v4175_v12 }
 0x157   : > { %v1058_v62 = vmax.f32 %v880_v57, 0.0  ;;  %1264 = vmatprep.mubr.f32.mxu1 %v1054_v56  ;;  %v4213_v56 = vpop.f32.mrb[22].mxu1  ;;  %v931_v3 = vadd.f32 %v4053_v16, %v4201_v51  ;;  %v949_v16 = vadd.f32 %v4099_v63, %v4175_v12  ;;  %v947_v44 = vadd.f32 %v4097_v61, %v4201_v51 }
 0x158   : > { %1265 = vmatmul.mubr.f32.gmra.mrb[40].mxu1 %v1053_v60  ;;  %v4217_v59 = vpop.f32.mrb[23].mxu1  ;;  %v933_v60 = vadd.f32 %v4056_v20, %v4175_v12  ;;  %v1016_v9 = vmax.f32 %v939_v0, 0.0  ;;  %v953_v63 = vadd.f32 %v4110_v7, %v4175_v12  ;;  %v951_v28 = vadd.f32 %v4101_v2, %v4201_v51 }
 0x159   : > { %3043 = vmatpush3.bf16.msra.mxu1 %v3042_v58  ;;  %v883_v10 = vpop.f32.mrb[28].mxu0  ;;  %1269 = vmatprep.mubr.f32.mxu1 %v1058_v62  ;;  %v927_v58 = vadd.f32 %v4049_v13, %v4201_v51  ;;  %v4225_v62 = vpop.f32.mrb[24].mxu1  ;;  %v1011_v20 = vmax.f32 %v931_v3, 0.0  ;;  %v957_v61 = vadd.f32 %v4133_v31, %v4201_v51  ;;  %v963_v7 = vadd.f32 %v4146_v50, %v4175_v12 }
 0x15a   : > { %v884_v18 = vadd.f32 %v883_v10, %v4030_v40  ;;  %v885_v19 = vpop.f32.mrb[29].mxu0  ;;  %3045 = vmatprep.subr.bf16.mxu1 %v3044_v1  ;;  %v1012_v5 = vmax.f32 %v933_v60, 0.0  ;;  %v988_v13 = vpop.f32.mrb[25].mxu1  ;;  %v937_v10 = vadd.f32 %v4061_v29, %v4201_v51  ;;  %v1024_v29 = vmax.f32 %v949_v16, 0.0 }
 0x15b   : > { %v886_v26 = vadd.f32 %v885_v19, %v4035_v41  ;;  %v887_v27 = vpop.f32.mrb[30].mxu0  ;;  %v1007_v1 = vmax.f32 %v927_v58, 0.0  ;;  %v4227_v4 = vpop.f32.mrb[26].mxu1  ;;  %v1020_v19 = vmax.f32 %v943_v30, 0.0  ;;  %v1028_v34 = vmax.f32 %v953_v63, 0.0 }
 0x15c   : > { %v889_v35 = vpop.f32.mrb[31].mxu0  ;;  %1270 = vmatmul.mubr.f32.gmra.mrb[42].mxu1 %v1057_v17  ;;  %v1061_v48 = vmax.f32 %v884_v18, 0.0  ;;  %v888_v49 = vadd.f32 %v887_v27, %v4030_v40  ;;  %v1008_v40 = vmax.f32 %v929_v46, 0.0  ;;  %v1015_v17 = vmax.f32 %v937_v10, 0.0 }
 0x15d   : > { %v1062_v43 = vmax.f32 %v886_v26, 0.0  ;;  %v890_v45 = vadd.f32 %v889_v35, %v4035_v41  ;;  %3047 = vmatpush3.bf16.msra.mxu1 %v3046_v11  ;;  %v1116_v41 = vld [vmem:[%s5395_s3 + $0x178] sm:$0xff]  ;;  %v4231_v11 = vpop.f32.mrb[27].mxu1  ;;  %v941_v18 = vadd.f32 %v4065_v32, %v4201_v51  ;;  %v959_v32 = vadd.f32 %v4135_v33, %v4175_v12 }
 0x15e   : > { %3049 = vmatprep.subr.bf16.mxu1 %v3048_v22  ;;  %v3054_v38 = vpack.c.bf16 %v1116_v41, %v1115_v53  ;;  %v1065_v57 = vmax.f32 %v888_v49, 0.0  ;;  %v4239_v21 = vpop.f32.mrb[28].mxu1  ;;  %v1023_v27 = vmax.f32 %v947_v44, 0.0  ;;  %v969_v33 = vadd.f32 %v4172_v8, %v4175_v12 }
 0x15f   : > { %v1066_v54 = vmax.f32 %v890_v45, 0.0  ;;  %1274 = vmatprep.mubr.f32.mxu1 %v1062_v43  ;;  %v998_v22 = vpop.f32.mrb[29].mxu1  ;;  %v1019_v24 = vmax.f32 %v941_v18, 0.0  ;;  %v1032_v35 = vmax.f32 %v959_v32, 0.0  ;;  %v1027_v43 = vmax.f32 %v951_v28, 0.0 }
 0x160   : > { %1275 = vmatmul.mubr.f32.gmra.mrb[44].mxu1 %v1061_v48  ;;  %v4241_v23 = vpop.f32.mrb[30].mxu1  ;;  %v1031_v45 = vmax.f32 %v957_v61, 0.0  ;;  %v961_v2 = vadd.f32 %v4137_v42, %v4201_v51  ;;  %v1036_v46 = vmax.f32 %v963_v7, 0.0  ;;  %v967_v31 = vadd.f32 %v4170_v6, %v4201_v51 }
 0x161   : > { %3051 = vmatpush3.bf16.msra.mxu1 %v3050_v47  ;;  %1279 = vmatprep.mubr.f32.mxu1 %v1066_v54  ;;  %v1002_v26 = vpop.f32.mrb[31].mxu1  ;;  %v1040_v47 = vmax.f32 %v969_v33, 0.0  ;;  %v973_v50 = vadd.f32 %v4187_v25, %v4175_v12  ;;  %v979_v8 = vadd.f32 %v4211_v55, %v4175_v12  ;;  %v971_v42 = vadd.f32 %v4177_v15, %v4201_v51 }
 0x162   : > { %3053 = vmatprep.subr.bf16.mxu1 %v3052_v52  ;;  %v1035_v48 = vmax.f32 %v961_v2, 0.0  ;;  %v1039_v49 = vmax.f32 %v967_v31, 0.0  ;;  %v977_v6 = vadd.f32 %v4209_v14, %v4201_v51  ;;  %v983_v25 = vadd.f32 %v4217_v59, %v4175_v12 }
 0x163   : > { %v1044_v52 = vmax.f32 %v973_v50, 0.0  ;;  %v1048_v53 = vmax.f32 %v979_v8, 0.0  ;;  %v1043_v41 = vmax.f32 %v971_v42, 0.0  ;;  %v989_v54 = vadd.f32 %v988_v13, %v4175_v12 }
 0x164   : > { %1280 = vmatmul.mubr.f32.gmra.mrb[46].mxu1 %v1065_v57  ;;  %v1047_v55 = vmax.f32 %v977_v6, 0.0  ;;  %v1052_v15 = vmax.f32 %v983_v25, 0.0  ;;  %v987_v58 = vadd.f32 %v4225_v62, %v4201_v51  ;;  %v993_v14 = vadd.f32 %v4231_v11, %v4175_v12 }
 0x165   : > { %3055 = vmatpush3.bf16.msra.mxu1 %v3054_v38  ;;  %1349 = vmatprep.mubr.f32.mxu1 %v1008_v40  ;;  %v981_v40 = vadd.f32 %v4213_v56, %v4201_v51  ;;  %v1056_v38 = vmax.f32 %v989_v54, 0.0  ;;  %v999_v59 = vadd.f32 %v998_v22, %v4175_v12  ;;  %v991_v0 = vadd.f32 %v4227_v4, %v4201_v51 }
 0x166   : > { %v1055_v60 = vmax.f32 %v987_v58, 0.0  ;;  %v1060_v56 = vmax.f32 %v993_v14, 0.0  ;;  %v1003_v62 = vadd.f32 %v1002_v26, %v4175_v12 }
 0x167   : > { %v1051_v57 = vmax.f32 %v981_v40, 0.0  ;;  %v1059_v3 = vmax.f32 %v991_v0, 0.0 }
 0x168   : > { %1350 = vmatmul.mubr.f32.vlgmr.msra.gmra.mrb[48].mxu1 %v1007_v1  ;;  %v1064_v1 = vmax.f32 %v999_v59, 0.0 }
 0x169   : > { %1354 = vmatprep.mubr.f32.mxu1 %v1012_v5  ;;  %v997_v5 = vadd.f32 %v4239_v21, %v4201_v51 }
 0x16b   : > { %v1063_v13 = vmax.f32 %v997_v5, 0.0 }
 0x16c   : > { %1355 = vmatmul.mubr.f32.gmra.mrb[50].mxu1 %v1011_v20  ;;  %v1068_v20 = vmax.f32 %v1003_v62, 0.0 }
 0x16d   : > { %1359 = vmatprep.mubr.f32.mxu1 %v1016_v9  ;;  %v1001_v9 = vadd.f32 %v4241_v23, %v4201_v51 }
 0x16f   : > { %v1067_v4 = vmax.f32 %v1001_v9, 0.0 }
 0x170   : > { %1360 = vmatmul.mubr.f32.gmra.mrb[52].mxu1 %v1015_v17 }
 0x171   : > { %1364 = vmatprep.mubr.f32.mxu1 %v1020_v19 }
 0x174   : > { %1365 = vmatmul.mubr.f32.gmra.mrb[54].mxu1 %v1019_v24 }
 0x175   : > { %1369 = vmatprep.mubr.f32.mxu1 %v1024_v29 }
 0x178   : > { %1370 = vmatmul.mubr.f32.gmra.mrb[56].mxu1 %v1023_v27 }
 0x179   : > { %1374 = vmatprep.mubr.f32.mxu1 %v1028_v34 }
 0x17c   : > { %1375 = vmatmul.mubr.f32.gmra.mrb[58].mxu1 %v1027_v43 }
 0x17d   : > { %1379 = vmatprep.mubr.f32.mxu1 %v1032_v35 }
 0x180   : > { %1380 = vmatmul.mubr.f32.gmra.mrb[60].mxu1 %v1031_v45 }
 0x181   : > { %1384 = vmatprep.mubr.f32.mxu1 %v1036_v46 }
 0x184   : > { %1385 = vmatmul.mubr.f32.gmra.mrb[62].mxu1 %v1035_v48 }
 0x185   : > { %1389 = vmatprep.mubr.f32.mxu1 %v1040_v47 }
 0x188   : > { %1390 = vmatmul.mubr.f32.gmra.mrb[64].mxu1 %v1039_v49 }
 0x189   : > { %1394 = vmatprep.mubr.f32.mxu1 %v1044_v52 }
 0x18c   : > { %1395 = vmatmul.mubr.f32.gmra.mrb[66].mxu1 %v1043_v41 }
 0x18d   : > { %1399 = vmatprep.mubr.f32.mxu1 %v1048_v53 }
 0x190   : > { %1400 = vmatmul.mubr.f32.gmra.mrb[68].mxu1 %v1047_v55 }
 0x191   : > { %1404 = vmatprep.mubr.f32.mxu1 %v1052_v15 }
 0x194   : > { %1405 = vmatmul.mubr.f32.gmra.mrb[70].mxu1 %v1051_v57 }
 0x195   : > { %1409 = vmatprep.mubr.f32.mxu1 %v1056_v38  ;;  %v4311_v38 = vld [vmem:[%s5396_s4] ss:$0 sm:$0xff] }
 0x198   : > { %1410 = vmatmul.mubr.f32.gmra.mrb[72].mxu1 %v1055_v60 }
 0x199   : > { %1414 = vmatprep.mubr.f32.mxu1 %v1060_v56 }
 0x19c   : > { %1415 = vmatmul.mubr.f32.gmra.mrb[74].mxu1 %v1059_v3 }
 0x19d   : > { %1419 = vmatprep.mubr.f32.mxu1 %v1064_v1 }
 0x1a0   : > { %1420 = vmatmul.mubr.f32.gmra.mrb[76].mxu1 %v1063_v13 }
 0x1a1   : > { %1424 = vmatprep.mubr.f32.mxu1 %v1068_v20 }
 0x1a4   : > { %1425 = vmatmul.mubr.f32.gmra.mrb[78].mxu1 %v1067_v4 }
 0x1fb   : > { %v2864_v10 = vpop.f32.mrb[32].mxu0 }
 0x1fc   : > { %v2865_v11 = vpop.f32.mrb[33].mxu0 }
 0x1fd   : > { %v2866_v30 = vadd.f32 %v2865_v11, %v2864_v10 }
 0x1ff   : > { %v2867_v16 = vpop.f32.mrb[34].mxu0  ;;  %v1207_v1 = vadd.f32 %v2866_v30, %v4311_v38 }
 0x200   : > { %v2868_v17 = vpop.f32.mrb[35].mxu0 }
 0x201   : > { %v2869_v18 = vadd.f32 %v2868_v17, %v2867_v16 }
 0x203   : > { %v2870_v19 = vpop.f32.mrb[36].mxu0  ;;  %v1212_v9 = vadd.f32 %v2869_v18, %v4311_v38 }
 0x204   : > { %v2871_v21 = vpop.f32.mrb[37].mxu0 }
 0x205   : > { %v2872_v12 = vadd.f32 %v2871_v21, %v2870_v19 }
 0x207   : > { %v2873_v22 = vpop.f32.mrb[38].mxu0  ;;  %v1217_v30 = vadd.f32 %v2872_v12, %v4311_v38 }
 0x208   : > { %v2874_v29 = vpop.f32.mrb[39].mxu0 }
 0x209   : > { %v4286_v24 = vadd.f32 %v2874_v29, %v2873_v22 }
 0x20b   : > { %v2876_v44 = vpop.f32.mrb[40].mxu0 }
 0x20c   : > { %v2877_v51 = vpop.f32.mrb[41].mxu0 }
 0x20d   : > { %v4288_v23 = vadd.f32 %v2877_v51, %v2876_v44 }
 0x20f   : > { %v2879_v26 = vpop.f32.mrb[42].mxu0 }
 0x210   : > { %v2880_v63 = vpop.f32.mrb[43].mxu0 }
 0x211   : > { %v4290_v32 = vadd.f32 %v2880_v63, %v2879_v26  ;;  %v1222_v26 = vadd.f32 %v4286_v24, %v4311_v38 }
 0x213   : > { %v2882_v27 = vpop.f32.mrb[44].mxu0 }
 0x214   : > { %v2883_v28 = vpop.f32.mrb[45].mxu0 }
 0x215   : > { %v4292_v34 = vadd.f32 %v2883_v28, %v2882_v27 }
 0x217   : > { %v2885_v35 = vpop.f32.mrb[46].mxu0 }
 0x218   : > { %v2886_v43 = vpop.f32.mrb[47].mxu0 }
 0x219   : > { %v4294_v61 = vadd.f32 %v2886_v43, %v2885_v35 }
 0x21b   : > { %v2888_v7 = vpop.f32.mrb[32].mxu1 }
 0x21c   : > { %v2889_v33 = vpop.f32.mrb[33].mxu1 }
 0x21d   : > { %v4296_v45 = vadd.f32 %v2889_v33, %v2888_v7  ;;  %v1227_v33 = vadd.f32 %v4288_v23, %v4311_v38 }
 0x21f   : > { %v2891_v2 = vpop.f32.mrb[34].mxu1 }
 0x220   : > { %v2892_v46 = vpop.f32.mrb[35].mxu1 }
 0x221   : > { %v4298_v47 = vadd.f32 %v2892_v46, %v2891_v2 }
 0x223   : > { %v2894_v48 = vpop.f32.mrb[36].mxu1 }
 0x224   : > { %v2895_v31 = vpop.f32.mrb[37].mxu1 }
 0x225   : > { %v4300_v50 = vadd.f32 %v2895_v31, %v2894_v48 }
 0x227   : > { %v2897_v8 = vpop.f32.mrb[38].mxu1 }
 0x228   : > { %v2898_v49 = vpop.f32.mrb[39].mxu1 }
 0x229   : > { %v4302_v42 = vadd.f32 %v2898_v49, %v2897_v8 }
 0x22b   : > { %v2900_v52 = vpop.f32.mrb[40].mxu1 }
 0x22c   : > { %v2901_v53 = vpop.f32.mrb[41].mxu1 }
 0x22d   : > { %v4304_v41 = vadd.f32 %v2901_v53, %v2900_v52 }
 0x22f   : > { %v2903_v6 = vpop.f32.mrb[42].mxu1 }
 0x230   : > { %v2904_v25 = vpop.f32.mrb[43].mxu1 }
 0x231   : > { %v4306_v54 = vadd.f32 %v2904_v25, %v2903_v6  ;;  %v1232_v25 = vadd.f32 %v4290_v32, %v4311_v38 }
 0x233   : > { %v2906_v55 = vpop.f32.mrb[44].mxu1 }
 0x234   : > { %v2907_v40 = vpop.f32.mrb[45].mxu1 }
 0x235   : > { %v2908_v15 = vadd.f32 %v2907_v40, %v2906_v55 }
 0x237   : > { %v4314_v57 = vadd.f32 %v2908_v15, %v4311_v38  ;;  %v2909_v58 = vpop.f32.mrb[46].mxu1 }
 0x238   : > { %v2910_v14 = vpop.f32.mrb[47].mxu1 }
 0x239   : > { %v2911_v59 = vadd.f32 %v2910_v14, %v2909_v58 }
 0x23b   : > { %v4317_v60 = vadd.f32 %v2911_v59, %v4311_v38  ;;  %v2944_v0 = vpop.f32.mrb[48].mxu1 }
 0x23c   : > { %v2945_v56 = vpop.f32.mrb[49].mxu1 }
 0x23d   : > { %v2946_v3 = vadd.f32 %v2945_v56, %v2944_v0 }
 0x23f   : > { %v4320_v5 = vadd.f32 %v2946_v3, %v1207_v1  ;;  %v2947_v62 = vpop.f32.mrb[50].mxu1  ;;  %v1237_v1 = vadd.f32 %v4292_v34, %v4311_v38  ;;  %v1247_v34 = vadd.f32 %v4296_v45, %v4311_v38 }
 0x240   : > { %v2948_v13 = vpop.f32.mrb[51].mxu1 }
 0x241   : > { %v1478_v20 = vand.u32 2147483647, %v4320_v5  ;;  %v2949_v4 = vadd.f32 %v2948_v13, %v2947_v62  ;;  %vm1446_vm1 = vcmp.ne.f32.partialorder %v4320_v5, %v4320_v5 }
 0x243   : > { %v1494_v10 = vsub.f32 0.0, %v1478_v20  ;;  %v4324_v11 = vadd.f32 %v2949_v4, %v1212_v9  ;;  %v2950_v16 = vpop.f32.mrb[52].mxu1 }
 0x244   : > { %v2951_v17 = vpop.f32.mrb[53].mxu1 }
 0x245   : > { %v1510_v19 = vmul.f32 1.442695, %v1494_v10  ;;  %v1479_v21 = vand.u32 2147483647, %v4324_v11  ;;  %v2952_v22 = vadd.f32 %v2951_v17, %v2950_v16  ;;  %v1242_v17 = vadd.f32 %v4294_v61, %v4311_v38 }
 0x246   : > { %vm1447_vm4 = vcmp.ne.f32.partialorder %v4324_v11, %v4324_v11 }
 0x247   : > { %3213 = vpow2.f32 %v1510_v19  ;;  %v1495_v29 = vsub.f32 0.0, %v1479_v21  ;;  %v2953_v44 = vpop.f32.mrb[54].mxu1  ;;  %v4328_v51 = vadd.f32 %v2952_v22, %v1217_v30  ;;  %v4362_v21 = vadd.f32 %v4298_v47, %v4311_v38 }
 0x248   : > { %v2954_v18 = vpop.f32.mrb[55].mxu1  ;;  %v4366_v30 = vadd.f32 %v4300_v50, %v4311_v38  ;;  %v4379_v47 = vadd.f32 %v4304_v41, %v4311_v38  ;;  %v4383_v50 = vadd.f32 %v4306_v54, %v4311_v38 }
 0x249   : > { %v1512_v63 = vmul.f32 1.442695, %v1495_v29  ;;  %v2955_v27 = vadd.f32 %v2954_v18, %v2953_v44  ;;  %v1480_v28 = vand.u32 2147483647, %v4328_v51  ;;  %vm1448_vm12 = vcmp.ne.f32.partialorder %v4328_v51, %v4328_v51 }
 0x24b   : > { %3215 = vpow2.f32 %v1512_v63  ;;  %v4333_v35 = vadd.f32 %v2955_v27, %v1222_v26  ;;  %v2956_v43 = vpop.f32.mrb[56].mxu1  ;;  %v1496_v7 = vsub.f32 0.0, %v1480_v28  ;;  %v4375_v27 = vadd.f32 %v4302_v42, %v4311_v38 }
 0x24c   : > { %v2957_v12 = vpop.f32.mrb[57].mxu1 }
 0x24d   : > { %v1481_v2 = vand.u32 2147483647, %v4333_v35  ;;  %v2958_v46 = vadd.f32 %v2957_v12, %v2956_v43  ;;  %v1514_v48 = vmul.f32 1.442695, %v1496_v7  ;;  %v1430_v12 = vmax.f32 %v4320_v5, 0.0 }
 0x24e   : > { %v1433_v38 = vmax.f32 %v4333_v35, 0.0  ;;  %vm1449_vm9 = vcmp.ne.f32.partialorder %v4333_v35, %v4333_v35 }
 0x24f   : > { %v1497_v31 = vsub.f32 0.0, %v1481_v2  ;;  %v4338_v8 = vadd.f32 %v2958_v46, %v1227_v33  ;;  %v2959_v24 = vpop.f32.mrb[58].mxu1  ;;  %3217 = vpow2.f32 %v1514_v48  ;;  %v1431_v33 = vmax.f32 %v4324_v11, 0.0 }
 0x250   : > { %v2960_v49 = vpop.f32.mrb[59].mxu1  ;;  %v1432_v46 = vmax.f32 %v4328_v51, 0.0 }
 0x251   : > { %v3214_v52 = vpop.eup %3213  ;;  %v1516_v53 = vmul.f32 1.442695, %v1497_v31  ;;  %v1482_v6 = vand.u32 2147483647, %v4338_v8  ;;  %v2961_v40 = vadd.f32 %v2960_v49, %v2959_v24  ;;  %vm1450_vm10 = vcmp.ne.f32.partialorder %v4338_v8, %v4338_v8 }
 0x252   : > { %v1542_v55 = vadd.f32 1.0, %v3214_v52  ;;  %v1545_v13 = vmul.f32 -0.5, %v3214_v52  ;;  %v1548_v18 = vand.u32 2147483647, %v3214_v52 }
 0x253   : > { %3219 = vpow2.f32 %v1516_v53  ;;  %v1498_v23 = vsub.f32 0.0, %v1482_v6  ;;  %v2962_v15 = vpop.f32.mrb[60].mxu1  ;;  %v4343_v58 = vadd.f32 %v2961_v40, %v1232_v25 }
 0x254   : > { %3221 = vlog2.f32 %v1542_v55  ;;  %v2963_v14 = vpop.f32.mrb[61].mxu1  ;;  %v1546_v44 = vadd.f32 1.0, %v1545_v13  ;;  %vm4390_vm0 = vcmp.lt.f32.partialorder %v1548_v18, 0.0004427343 }
 0x255   : > { %v4345_v59 = vpop.eup %3215  ;;  %v1518_v0 = vmul.f32 1.442695, %v1498_v23  ;;  %v2964_v56 = vadd.f32 %v2963_v14, %v2962_v15  ;;  %v1483_v32 = vand.u32 2147483647, %v4343_v58  ;;  %v1434_v23 = vmax.f32 %v4338_v8, 0.0 }
 0x256   : > { %v1551_v3 = vadd.f32 1.0, %v4345_v59  ;;  %v1554_v28 = vmul.f32 -0.5, %v4345_v59  ;;  %v1547_v31 = vmul.f32 %v3214_v52, %v1546_v44  ;;  %v1557_v14 = vand.u32 2147483647, %v4345_v59 }
 0x257   : > { %3223 = vpow2.f32 %v1518_v0  ;;  %v2965_v62 = vpop.f32.mrb[62].mxu1  ;;  %v4351_v9 = vadd.f32 %v2964_v56, %v1237_v1  ;;  %v1499_v4 = vsub.f32 0.0, %v1483_v32  ;;  %vm1451_vm15 = vcmp.ne.f32.partialorder %v4343_v58, %v4343_v58 }
 0x258   : > { %3225 = vlog2.f32 %v1551_v3  ;;  %v2966_v20 = vpop.f32.mrb[63].mxu1  ;;  %v1555_v53 = vadd.f32 1.0, %v1554_v28  ;;  %vm4422_vm5 = vcmp.lt.f32.partialorder %v1557_v14, 0.0004427343 }
 0x259   : > { %v2967_v10 = vadd.f32 %v2966_v20, %v2965_v62  ;;  %v4353_v16 = vpop.eup %3217  ;;  %v1484_v19 = vand.u32 2147483647, %v4351_v9  ;;  %v1520_v29 = vmul.f32 1.442695, %v1499_v4  ;;  %v1435_v62 = vmax.f32 %v4343_v58, 0.0 }
 0x25a   : > { %v1560_v22 = vadd.f32 1.0, %v4353_v16  ;;  %v1563_v40 = vmul.f32 -0.5, %v4353_v16  ;;  %v1566_v32 = vand.u32 2147483647, %v4353_v16 }
 0x25b   : > { %v1500_v26 = vsub.f32 0.0, %v1484_v19  ;;  %v4369_v61 = vadd.f32 %v2967_v10, %v1242_v17  ;;  %v2968_v63 = vpop.f32.mrb[64].mxu1  ;;  %3227 = vpow2.f32 %v1520_v29  ;;  %v1556_v17 = vmul.f32 %v4345_v59, %v1555_v53 }
 0x25c   : > { %v2969_v43 = vpop.f32.mrb[65].mxu1  ;;  %3229 = vlog2.f32 %v1560_v22  ;;  %v1564_v22 = vadd.f32 1.0, %v1563_v40  ;;  %vm4426_vm6 = vcmp.lt.f32.partialorder %v1566_v32, 0.0004427343  ;;  %v1436_v53 = vmax.f32 %v4351_v9, 0.0 }
 0x25d   : > { %v4371_v45 = vpop.eup %3219  ;;  %v1522_v41 = vmul.f32 1.442695, %v1500_v26  ;;  %v1485_v6 = vand.u32 2147483647, %v4369_v61  ;;  %v2970_v25 = vadd.f32 %v2969_v43, %v2968_v63 }
 0x25e   : > { %v3222_v7 = vpop.eup %3221  ;;  %v1569_v2 = vadd.f32 1.0, %v4371_v45  ;;  %v1572_v0 = vmul.f32 -0.5, %v4371_v45  ;;  %v1575_v29 = vand.u32 2147483647, %v4371_v45 }
 0x25f   : > { %v1544_v42 = vmul.f32 0.6931472, %v3222_v7  ;;  %v2971_v48 = vpop.f32.mrb[66].mxu1  ;;  %v1501_v56 = vsub.f32 0.0, %v1485_v6  ;;  %v4407_v1 = vadd.f32 %v2970_v25, %v1247_v34 }
 0x260   : > { %3231 = vlog2.f32 %v1569_v2  ;;  %v2972_v24 = vpop.f32.mrb[67].mxu1  ;;  %v1573_v18 = vadd.f32 1.0, %v1572_v0  ;;  %vm4446_vm7 = vcmp.lt.f32.partialorder %v1575_v29, 0.0004427343 }
 0x261   : > { %v4397_v49 = vpop.eup %3223  ;;  %3233 = vpow2.f32 %v1522_v41  ;;  %v1550_v52 = vsel %vm4390_vm0, %v1547_v31, %v1544_v42  ;;  %v2973_v13 = vadd.f32 %v2972_v24, %v2971_v48  ;;  %v1524_v19 = vmul.f32 1.442695, %v1501_v56 }
 0x262   : > { %v3226_v55 = vpop.eup %3225  ;;  %v1578_v15 = vadd.f32 1.0, %v4397_v49  ;;  %v1686_v4 = vadd.f32 %v1550_v52, %v1430_v12  ;;  %v1581_v34 = vmul.f32 -0.5, %v4397_v49  ;;  %v1486_v44 = vand.u32 2147483647, %v4407_v1 }
 0x263   : > { %v2974_v3 = vpop.f32.mrb[68].mxu1  ;;  %v1553_v10 = vmul.f32 0.6931472, %v3226_v55  ;;  %v4416_v26 = vadd.f32 %v2973_v13, %v4362_v21  ;;  %v1584_v41 = vand.u32 2147483647, %v4397_v49  ;;  %v1565_v52 = vmul.f32 %v4353_v16, %v1564_v22 }
 0x264   : > { %3235 = vlog2.f32 %v1578_v15  ;;  %v2975_v20 = vpop.f32.mrb[69].mxu1  ;;  %v1502_v12 = vsub.f32 0.0, %v1486_v44  ;;  %v4438_v31 = vsel %vm1446_vm1, %v4320_v5, %v1686_v4  ;;  %v1582_v24 = vadd.f32 1.0, %v1581_v34 }
 0x265   : > { %3237 = vpow2.f32 %v1524_v19  ;;  %v2976_v63 = vadd.f32 %v2975_v20, %v2974_v3  ;;  %v4418_v43 = vpop.eup %3227  ;;  %v1559_v21 = vsel %vm4422_vm5, %v1556_v17, %v1553_v10  ;;  %v1487_v25 = vand.u32 2147483647, %v4416_v26 }
 0x266   : > { %v3230_v42 = vpop.eup %3229  ;;  %v1587_v48 = vadd.f32 1.0, %v4418_v43  ;;  %v1526_v6 = vmul.f32 1.442695, %v1502_v12  ;;  %v1574_v40 = vmul.f32 %v4371_v45, %v1573_v18  ;;  %v1437_v5 = vmax.f32 %v4369_v61, 0.0 }
 0x267   : > { %v2977_v28 = vpop.f32.mrb[70].mxu1  ;;  %v1687_v0 = vadd.f32 %v1559_v21, %v1431_v33  ;;  %v1718_v3 = vmax.f32 %v4438_v31, 1e-05  ;;  %v1562_v32 = vmul.f32 0.6931472, %v3230_v42  ;;  %v1503_v45 = vsub.f32 0.0, %v1487_v25 }
 0x268   : > { %v2978_v2 = vpop.f32.mrb[71].mxu1  ;;  %3239 = vlog2.f32 %v1587_v48  ;;  %vm4456_vm8 = vcmp.lt.f32.partialorder %v1584_v41, 0.0004427343  ;;  %v1583_v10 = vmul.f32 %v4397_v49, %v1582_v24  ;;  %v1438_v33 = vmax.f32 %v4407_v1, 0.0 }
 0x269   : > { %3241 = vpow2.f32 %v1526_v6  ;;  %v1528_v19 = vmul.f32 1.442695, %v1503_v45  ;;  %v4468_v22 = vadd.f32 %v2976_v63, %v4366_v30  ;;  %v2979_v29 = vadd.f32 %v2978_v2, %v2977_v28 }
 0x26a   : > { %v3232_v54 = vpop.eup %3231  ;;  %v4474_v49 = vsel %vm1447_vm4, %v4324_v11, %v1687_v0  ;;  %v1590_v44 = vmul.f32 -0.5, %v4418_v43  ;;  %v1768_v18 = vmul.f32 0.5, %v1718_v3  ;;  %v1735_v59 = vsel %vm1734_vm2, %v4438_v31, %v1718_v3 }
 0x26b   : > { %v4442_v55 = vpop.eup %3233  ;;  %v2980_v14 = vpop.f32.mrb[72].mxu1  ;;  %v1571_v4 = vmul.f32 0.6931472, %v3232_v54  ;;  %v1568_v30 = vsel %vm4426_vm6, %v1565_v52, %v1562_v32  ;;  %v1593_v63 = vand.u32 2147483647, %v4418_v43  ;;  %v1439_v28 = vmax.f32 %v4416_v26, 0.0 }
 0x26c   : > { %v1596_v56 = vadd.f32 1.0, %v4442_v55  ;;  %v2981_v13 = vpop.f32.mrb[73].mxu1  ;;  %1752 = vst.msk [vmem:[%s4465_s21] sm:$0xff] %vm1751_vm3, %v1735_v59  ;;  %v1599_v2 = vmul.f32 -0.5, %v4442_v55  ;;  %v1488_v41 = vand.u32 2147483647, %v4468_v22  ;;  %v4496_v48 = vadd.f32 %v2979_v29, %v4375_v27 }
 0x26d   : > { %v1577_v11 = vsel %vm4446_vm7, %v1574_v40, %v1571_v4  ;;  %v1784_v54 = vmul.f32 %v1768_v18, %v1718_v3  ;;  %v2982_v24 = vadd.f32 %v2981_v13, %v2980_v14  ;;  %v1591_v25 = vadd.f32 1.0, %v1590_v44 }
 0x26e   : > { %v3236_v20 = vpop.eup %3235  ;;  %3243 = vlog2.f32 %v1596_v56  ;;  %v1602_v52 = vand.u32 2147483647, %v4442_v55  ;;  %v1688_v0 = vadd.f32 %v1568_v30, %v1432_v46  ;;  %vm4505_vm11 = vcmp.lt.f32.partialorder %v1593_v63, 0.0004427343 }
 0x26f   : > { %v1580_v17 = vmul.f32 0.6931472, %v3236_v20  ;;  %v2983_v34 = vpop.f32.mrb[74].mxu1  ;;  %v3238_v42 = vpop.eup %3237  ;;  %3245 = vpow2.f32 %v1528_v19  ;;  %v1504_v27 = vsub.f32 0.0, %v1488_v41  ;;  %v1489_v3 = vand.u32 2147483647, %v4496_v48  ;;  %1816 = vrot.lane.b32.xlu0 %v1784_v54, %s3533_s22 }
 0x270   : > { %v2984_v12 = vpop.f32.mrb[75].mxu1  ;;  %v1605_v21 = vadd.f32 1.0, %v3238_v42  ;;  %v1608_v40 = vmul.f32 -0.5, %v3238_v42  ;;  %v1689_v32 = vadd.f32 %v1577_v11, %v1433_v38  ;;  %v1600_v16 = vadd.f32 1.0, %v1599_v2 }
 0x271   : > { %v1586_v7 = vsel %vm4456_vm8, %v1583_v10, %v1580_v17  ;;  %v4518_v45 = vadd.f32 %v2982_v24, %v4379_v47  ;;  %v1611_v20 = vand.u32 2147483647, %v3238_v42  ;;  %v1530_v4 = vmul.f32 1.442695, %v1504_v27 }
 0x272   : > { %3247 = vlog2.f32 %v1605_v21  ;;  %v3240_v14 = vpop.eup %3239  ;;  %v1690_v46 = vadd.f32 %v1586_v7, %v1434_v23  ;;  %v1505_v10 = vsub.f32 0.0, %v1489_v3  ;;  %v2985_v17 = vadd.f32 %v2984_v12, %v2983_v34 }
 0x273   : > { %v4498_v6 = vpop.f32.mrb[76].mxu1  ;;  %v4520_v13 = vpop.eup %3241  ;;  %v1592_v44 = vmul.f32 %v4418_v43, %v1591_v25  ;;  %vm4523_vm13 = vcmp.lt.f32.partialorder %v1602_v52, 0.0004427343  ;;  %v1609_v38 = vadd.f32 1.0, %v1608_v40  ;;  %v1589_v47 = vmul.f32 0.6931472, %v3240_v14 }
 0x274   : > { %v4501_v15 = vpop.f32.mrb[77].mxu1  ;;  %v1614_v23 = vadd.f32 1.0, %v4520_v13  ;;  %3249 = vpow2.f32 %v1530_v4  ;;  %v1532_v30 = vmul.f32 1.442695, %v1505_v10  ;;  %v1719_v63 = vmax.f32 %v4474_v49, 1e-05 }
 0x275   : > { %v4533_v34 = vsel %vm1449_vm9, %v4333_v35, %v1689_v32  ;;  %v1601_v43 = vmul.f32 %v4442_v55, %v1600_v16  ;;  %v1440_v12 = vmax.f32 %v4468_v22, 0.0  ;;  %v4543_v7 = vsel %vm1450_vm10, %v4338_v8, %v1690_v46 }
 0x276   : > { %3251 = vlog2.f32 %v1614_v23  ;;  %vm4545_vm14 = vcmp.lt.f32.partialorder %v1611_v20, 0.0004427343  ;;  %v1610_v35 = vmul.f32 %v3238_v42, %v1609_v38  ;;  %v1617_v55 = vmul.f32 -0.5, %v4520_v13 }
 0x277   : > { %v2989_v19 = vpop.f32.mrb[78].mxu1  ;;  %3253 = vpow2.f32 %v1532_v30  ;;  %v1441_v54 = vmax.f32 %v4496_v48, 0.0  ;;  %v1595_v8 = vsel %vm4505_vm11, %v1592_v44, %v1589_v47  ;;  %v1490_v24 = vand.u32 2147483647, %v4518_v45 }
 0x278   : > { %v3244_v29 = vpop.eup %3243  ;;  %v2990_v59 = vpop.f32.mrb[79].mxu1  ;;  %v1736_v25 = vsel %vm1734_vm2, %v4474_v49, %v1719_v63  ;;  %v1769_v52 = vmul.f32 0.5, %v1719_v63  ;;  %vm1452_vm0 = vcmp.ne.f32.partialorder %v4351_v9, %v4351_v9  ;;  %v1620_v42 = vand.u32 2147483647, %v4520_v13 }
 0x279   : > { %v4537_v11 = vpop.eup %3245  ;;  %v1598_v2 = vmul.f32 0.6931472, %v3244_v29  ;;  %1753 = vst.msk [vmem:[%s4465_s21 + $0x8] sm:$0xff] %vm1751_vm3, %v1736_v25  ;;  %v4565_v27 = vadd.f32 %v2985_v17, %v4383_v50  ;;  %v4571_v56 = vsel %vm1448_vm12, %v4328_v51, %v1688_v0  ;;  %vm1453_vm1 = vcmp.ne.f32.partialorder %v4369_v61, %v4369_v61 }
 0x27a   : > { %v1623_v41 = vadd.f32 1.0, %v4537_v11  ;;  %v1506_v32 = vsub.f32 0.0, %v1490_v24  ;;  %v1785_v46 = vmul.f32 %v1769_v52, %v1719_v63  ;;  %v1691_v16 = vadd.f32 %v1595_v8, %v1435_v62 }
 0x27b   : > { %v1604_v3 = vsel %vm4523_vm13, %v1601_v43, %v1598_v2  ;;  %v1618_v50 = vadd.f32 1.0, %v1617_v55  ;;  %v1626_v20 = vmul.f32 -0.5, %v4537_v11  ;;  %v1491_v4 = vand.u32 2147483647, %v4565_v27 }
 0x27c   : > { %v3248_v40 = vpop.eup %3247  ;;  %3255 = vlog2.f32 %v1623_v41  ;;  %v1534_v0 = vmul.f32 1.442695, %v1506_v32  ;;  %1818 = vrot.lane.b32.xlu0 %v1785_v46, %s3533_s22  ;;  %v1720_v10 = vmax.f32 %v4571_v56, 1e-05  ;;  %v2988_v17 = vadd.f32 %v4501_v15, %v4498_v6 }
 0x27d   : > { %v1607_v14 = vmul.f32 0.6931472, %v3248_v40  ;;  %v1692_v62 = vadd.f32 %v1604_v3, %v1436_v53  ;;  %v1629_v29 = vand.u32 2147483647, %v4537_v11  ;;  %v1507_v44 = vsub.f32 0.0, %v1491_v4 }
 0x27e   : > { %v2991_v18 = vadd.f32 %v2990_v59, %v2989_v19  ;;  %v3250_v38 = vpop.eup %3249  ;;  %3257 = vpow2.f32 %v1534_v0  ;;  %v1770_v23 = vmul.f32 0.5, %v1720_v10  ;;  %v1737_v47 = vsel %vm1734_vm2, %v4571_v56, %v1720_v10 }
 0x27f   : > { %v1613_v51 = vsel %vm4545_vm14, %v1610_v35, %v1607_v14  ;;  %v4593_v30 = vadd.f32 %v2988_v17, %v4314_v57  ;;  %v1627_v15 = vadd.f32 1.0, %v1626_v20  ;;  %v1632_v43 = vadd.f32 1.0, %v3250_v38  ;;  %1754 = vst.msk [vmem:[%s4465_s21 + $0x10] sm:$0xff] %vm1751_vm3, %v1737_v47 }
 0x280   : > { %v3252_v63 = vpop.eup %3251  ;;  %v1693_v6 = vadd.f32 %v1613_v51, %v1437_v5  ;;  %v1721_v53 = vmax.f32 %v4533_v34, 1e-05  ;;  %v1635_v2 = vmul.f32 -0.5, %v3250_v38  ;;  %v1536_v21 = vmul.f32 1.442695, %v1507_v44 }
 0x281   : > { %v4600_v19 = vpop.eup %3253  ;;  %v1616_v59 = vmul.f32 0.6931472, %v3252_v63  ;;  %v1786_v35 = vmul.f32 %v1770_v23, %v1720_v10  ;;  %v4606_v57 = vsel %vm1451_vm15, %v4343_v58, %v1691_v16  ;;  %vm4608_vm4 = vcmp.lt.f32.partialorder %v1620_v42, 0.0004427343 }
 0x282   : > { %3259 = vlog2.f32 %v1632_v43  ;;  %v1641_v55 = vadd.f32 1.0, %v4600_v19  ;;  %v4617_v41 = vsel %vm1452_vm0, %v4351_v9, %v1692_v62  ;;  %v1619_v8 = vmul.f32 %v4520_v13, %v1618_v50 }
 0x283   : > { %v1638_v24 = vand.u32 2147483647, %v3250_v38  ;;  %3261 = vpow2.f32 %v1536_v21  ;;  %1820 = vrot.lane.b32.xlu1 %v1786_v35, %s3533_s22  ;;  %v4625_v25 = vsel %vm1453_vm1, %v4369_v61, %v1693_v6  ;;  %v1628_v52 = vmul.f32 %v4537_v11, %v1627_v15 }
 0x284   : > { %vm4628_vm5 = vcmp.lt.f32.partialorder %v1629_v29, 0.0004427343  ;;  %3263 = vlog2.f32 %v1641_v55  ;;  %vm1454_vm6 = vcmp.ne.f32.partialorder %v4407_v1, %v4407_v1  ;;  %v1622_v9 = vsel %vm4608_vm4, %v1619_v8, %v1616_v59 }
 0x285   : > { %vm1455_vm7 = vcmp.ne.f32.partialorder %v4416_v26, %v4416_v26  ;;  %v1636_v42 = vadd.f32 1.0, %v1635_v2  ;;  %v1738_v61 = vsel %vm1734_vm2, %v4533_v34, %v1721_v53  ;;  %v1644_v11 = vmul.f32 -0.5, %v4600_v19 }
 0x286   : > { %v3256_v58 = vpop.eup %3255  ;;  %v1492_v3 = vand.u32 2147483647, %v4593_v30  ;;  %1755 = vst.msk [vmem:[%s4465_s21 + $0x18] sm:$0xff] %vm1751_vm3, %v1738_v61  ;;  %v1771_v14 = vmul.f32 0.5, %v1721_v53  ;;  %v4645_v32 = vadd.f32 %v2991_v18, %v4317_v60  ;;  %vm4649_vm8 = vcmp.lt.f32.partialorder %v1638_v24, 0.0004427343 }
 0x287   : > { %v1625_v13 = vmul.f32 0.6931472, %v3256_v58  ;;  %v1722_v50 = vmax.f32 %v4543_v7, 1e-05  ;;  %v1723_v20 = vmax.f32 %v4606_v57, 1e-05  ;;  %v1694_v4 = vadd.f32 %v1622_v9, %v1438_v33 }
 0x288   : > { %v1647_v51 = vand.u32 2147483647, %v4600_v19  ;;  %v1508_v0 = vsub.f32 0.0, %v1492_v3  ;;  %v1787_v60 = vmul.f32 %v1771_v14, %v1721_v53  ;;  %v4658_v10 = vpop.eup %3257  ;;  %vm1456_vm9 = vcmp.ne.f32.partialorder %v4468_v22, %v4468_v22 }
 0x289   : > { %v1631_v46 = vsel %vm4628_vm5, %v1628_v52, %v1625_v13  ;;  %v1637_v17 = vmul.f32 %v3250_v38, %v1636_v42  ;;  %v1493_v62 = vand.u32 2147483647, %v4645_v32  ;;  %v1739_v29 = vsel %vm1734_vm2, %v4543_v7, %v1722_v50 }
 0x28a   : > { %v1772_v44 = vmul.f32 0.5, %v1722_v50  ;;  %v1695_v33 = vadd.f32 %v1631_v46, %v1439_v28  ;;  %v1645_v18 = vadd.f32 1.0, %v1644_v11  ;;  %v1650_v23 = vadd.f32 1.0, %v4658_v10  ;;  %1822 = vrot.lane.b32.xlu1 %v1787_v60, %s3533_s22  ;;  %1756 = vst.msk [vmem:[%s4465_s21 + $0x20] sm:$0xff] %vm1751_vm3, %v1739_v29 }
 0x28b   : > { %v1653_v47 = vmul.f32 -0.5, %v4658_v10  ;;  %vm1457_vm10 = vcmp.ne.f32.partialorder %v4496_v48, %v4496_v48  ;;  %v1538_v38 = vmul.f32 1.442695, %v1508_v0  ;;  %v1509_v63 = vsub.f32 0.0, %v1493_v62 }
 0x28c   : > { %v1788_v6 = vmul.f32 %v1772_v44, %v1722_v50  ;;  %v1740_v15 = vsel %vm1734_vm2, %v4606_v57, %v1723_v20  ;;  %v3260_v43 = vpop.eup %3259  ;;  %vm4676_vm11 = vcmp.lt.f32.partialorder %v1647_v51, 0.0004427343  ;;  %3265 = vlog2.f32 %v1650_v23 }
 0x28d   : > { %v1654_v53 = vadd.f32 1.0, %v1653_v47  ;;  %1757 = vst.msk [vmem:[%s4465_s21 + $0x28] sm:$0xff] %vm1751_vm3, %v1740_v15  ;;  %v1773_v59 = vmul.f32 0.5, %v1723_v20  ;;  %v4682_v2 = vpop.eup %3261  ;;  %v1634_v21 = vmul.f32 0.6931472, %v3260_v43  ;;  %3267 = vpow2.f32 %v1538_v38 }
 0x28e   : > { %v1540_v35 = vmul.f32 1.442695, %v1509_v63  ;;  %1824 = vrot.lane.b32.xlu0 %v1788_v6, %s3533_s22  ;;  %v1724_v5 = vmax.f32 %v4617_v41, 1e-05  ;;  %v3264_v55 = vpop.eup %3263  ;;  %v4690_v8 = vsel %vm1454_vm6, %v4407_v1, %v1694_v4  ;;  %v4696_v24 = vsel %vm1455_vm7, %v4416_v26, %v1695_v33 }
 0x28f   : > { %v1646_v58 = vmul.f32 %v4600_v19, %v1645_v18  ;;  %v1659_v52 = vadd.f32 1.0, %v4682_v2  ;;  %v1640_v40 = vsel %vm4649_vm8, %v1637_v17, %v1634_v21  ;;  %v1643_v9 = vmul.f32 0.6931472, %v3264_v55 }
 0x290   : > { %3269 = vpow2.f32 %v1540_v35  ;;  %v1789_v13 = vmul.f32 %v1773_v59, %v1723_v20  ;;  %v1696_v1 = vadd.f32 %v1640_v40, %v1440_v12  ;;  %v1655_v42 = vmul.f32 %v4658_v10, %v1654_v53 }
 0x291   : > { %v1656_v61 = vand.u32 2147483647, %v4658_v10  ;;  %3271 = vlog2.f32 %v1659_v52  ;;  %v1649_v26 = vsel %vm4676_vm11, %v1646_v58, %v1643_v9  ;;  %v1741_v19 = vsel %vm1734_vm2, %v4617_v41, %v1724_v5 }
 0x292   : > { %1826 = vrot.lane.b32.xlu1 %v1789_v13, %s3533_s22  ;;  %v1774_v11 = vmul.f32 0.5, %v1724_v5  ;;  %v1725_v3 = vmax.f32 %v4625_v25, 1e-05  ;;  %v4716_v12 = vsel %vm1456_vm9, %v4468_v22, %v1696_v1  ;;  %v1697_v14 = vadd.f32 %v1649_v26, %v1441_v54  ;;  %1758 = vst.msk [vmem:[%s4465_s21 + $0x30] sm:$0xff] %vm1751_vm3, %v1741_v19 }
 0x293   : > { %v1662_v46 = vmul.f32 -0.5, %v4682_v2  ;;  %v1726_v16 = vmax.f32 %v4690_v8, 1e-05  ;;  %v1727_v51 = vmax.f32 %v4696_v24, 1e-05  ;;  %v1442_v43 = vmax.f32 %v4518_v45, 0.0 }
 0x294   : > { %v1790_v50 = vmul.f32 %v1774_v11, %v1724_v5  ;;  %v1742_v20 = vsel %vm1734_vm2, %v4625_v25, %v1725_v3  ;;  %v1775_v4 = vmul.f32 0.5, %v1725_v3  ;;  %v4731_v22 = vsel %vm1457_vm10, %v4496_v48, %v1697_v14 }
 0x295   : > { %1759 = vst.msk [vmem:[%s4465_s21 + $0x38] sm:$0xff] %vm1751_vm3, %v1742_v20  ;;  %v1743_v54 = vsel %vm1734_vm2, %v4690_v8, %v1726_v16  ;;  %v1776_v0 = vmul.f32 0.5, %v1726_v16  ;;  %v1728_v60 = vmax.f32 %v4716_v12, 1e-05  ;;  %v1744_v17 = vsel %vm1734_vm2, %v4696_v24, %v1727_v51 }
 0x296   : > { %1828 = vrot.lane.b32.xlu0 %v1790_v50, %s3533_s22  ;;  %v1791_v10 = vmul.f32 %v1775_v4, %v1725_v3  ;;  %1760 = vst.msk [vmem:[%s4465_s21 + $0x40] sm:$0xff] %vm1751_vm3, %v1743_v54  ;;  %v1777_v62 = vmul.f32 0.5, %v1727_v51  ;;  %v1729_v48 = vmax.f32 %v4731_v22, 1e-05  ;;  %v3266_v29 = vpop.eup %3265  ;;  %v1663_v44 = vadd.f32 1.0, %v1662_v46  ;;  %1761 = vst.msk [vmem:[%s4465_s21 + $0x48] sm:$0xff] %vm1751_vm3, %v1744_v17 }
 0x297   : > { %v1792_v33 = vmul.f32 %v1776_v0, %v1726_v16  ;;  %v1745_v18 = vsel %vm1734_vm2, %v4716_v12, %v1728_v60  ;;  %v1778_v23 = vmul.f32 0.5, %v1728_v60  ;;  %v3268_v47 = vpop.eup %3267  ;;  %v1652_v38 = vmul.f32 0.6931472, %v3266_v29 }
 0x298   : > { %1830 = vrot.lane.b32.xlu1 %v1791_v10, %s3533_s22  ;;  %v1793_v63 = vmul.f32 %v1777_v62, %v1727_v51  ;;  %1762 = vst.msk [vmem:[%s4465_s21 + $0x50] sm:$0xff] %vm1751_vm3, %v1745_v18  ;;  %v1746_v6 = vsel %vm1734_vm2, %v4731_v22, %v1729_v48  ;;  %v1779_v15 = vmul.f32 0.5, %v1729_v48  ;;  %vm1657_vm12 = vcmp.lt.f32.partialorder %v1656_v61, 0.0004427343 }
 0x299   : > { %v1665_v28 = vand.u32 2147483647, %v4682_v2  ;;  %v1668_v53 = vadd.f32 1.0, %v3268_v47  ;;  %1763 = vst.msk [vmem:[%s4465_s21 + $0x58] sm:$0xff] %vm1751_vm3, %v1746_v6  ;;  %v1658_v21 = vsel %vm1657_vm12, %v1655_v42, %v1652_v38  ;;  %v1794_v35 = vmul.f32 %v1778_v23, %v1728_v60 }
 0x29a   : > { %v3270_v59 = vpop.eup %3269  ;;  %1832 = vrot.lane.b32.xlu0 %v1792_v33, %s3533_s22  ;;  %vm1458_vm13 = vcmp.ne.f32.partialorder %v4518_v45, %v4518_v45  ;;  %v1698_v55 = vadd.f32 %v1658_v21, %v1442_v43  ;;  %v1664_v52 = vmul.f32 %v4682_v2, %v1663_v44  ;;  %v1795_v9 = vmul.f32 %v1779_v15, %v1729_v48 }
 0x29b   : > { %v3272_v5 = vpop.eup %3271  ;;  %3273 = vlog2.f32 %v1668_v53  ;;  %v1677_v40 = vadd.f32 1.0, %v3270_v59  ;;  %v1443_v1 = vmax.f32 %v4565_v27, 0.0  ;;  %vm1666_vm14 = vcmp.lt.f32.partialorder %v1665_v28, 0.0004427343 }
 0x29c   : > { %v1661_v58 = vmul.f32 0.6931472, %v3272_v5  ;;  %1834 = vrot.lane.b32.xlu1 %v1793_v63, %s3533_s22  ;;  %v4763_v13 = vsel %vm1458_vm13, %v4518_v45, %v1698_v55  ;;  %v1671_v61 = vmul.f32 -0.5, %v3268_v47  ;;  %vm1459_vm15 = vcmp.ne.f32.partialorder %v4565_v27, %v4565_v27 }
 0x29d   : > { %3275 = vlog2.f32 %v1677_v40  ;;  %v1730_v19 = vmax.f32 %v4763_v13, 1e-05  ;;  %v1680_v2 = vmul.f32 -0.5, %v3270_v59  ;;  %v1674_v16 = vand.u32 2147483647, %v3268_v47 }
 0x29e   : > { %v1667_v42 = vsel %vm1666_vm14, %v1664_v52, %v1661_v58  ;;  %1836 = vrot.lane.b32.xlu0 %v1794_v35, %s3533_s22  ;;  %v1672_v14 = vadd.f32 1.0, %v1671_v61  ;;  %v1683_v60 = vand.u32 2147483647, %v3270_v59  ;;  %v1444_v17 = vmax.f32 %v4593_v30, 0.0 }
 0x29f   : > { %v1699_v26 = vadd.f32 %v1667_v42, %v1443_v1  ;;  %v1747_v11 = vsel %vm1734_vm2, %v4763_v13, %v1730_v19  ;;  %v1780_v3 = vmul.f32 0.5, %v1730_v19  ;;  %v1681_v54 = vadd.f32 1.0, %v1680_v2 }
 0x2a0   : > { %1838 = vrot.lane.b32.xlu1 %v1795_v9, %s3533_s22  ;;  %1764 = vst.msk [vmem:[%s4465_s21 + $0x60] sm:$0xff] %vm1751_vm3, %v1747_v11  ;;  %v1673_v0 = vmul.f32 %v3268_v47, %v1672_v14  ;;  %vm1675_vm0 = vcmp.lt.f32.partialorder %v1674_v16, 0.0004427343  ;;  %vm1460_vm1 = vcmp.ne.f32.partialorder %v4593_v30, %v4593_v30  ;;  %v1445_v18 = vmax.f32 %v4645_v32, 0.0 }
 0x2a1   : > { %v4772_v45 = vsel %vm1459_vm15, %v4565_v27, %v1699_v26  ;;  %v1796_v50 = vmul.f32 %v1780_v3, %v1730_v19  ;;  %v1682_v33 = vmul.f32 %v3270_v59, %v1681_v54  ;;  %vm1684_vm4 = vcmp.lt.f32.partialorder %v1683_v60, 0.0004427343 }
 0x2a2   : > { %v1731_v46 = vmax.f32 %v4772_v45, 1e-05  ;;  %vm1461_vm5 = vcmp.ne.f32.partialorder %v4645_v32, %v4645_v32 }
 0x2a3   : > { %1840 = vrot.lane.b32.xlu0 %v1796_v50, %s3533_s22 }
 0x2a4   : > { %v1748_v20 = vsel %vm1734_vm2, %v4772_v45, %v1731_v46  ;;  %v1781_v4 = vmul.f32 0.5, %v1731_v46 }
 0x2a5   : > { %v3274_v51 = vpop.eup %3273  ;;  %1765 = vst.msk [vmem:[%s4465_s21 + $0x68] sm:$0xff] %vm1751_vm3, %v1748_v20 }
 0x2a6   : > { %v1670_v27 = vmul.f32 0.6931472, %v3274_v51  ;;  %v1797_v10 = vmul.f32 %v1781_v4, %v1731_v46 }
 0x2a7   : > { %v3276_v62 = vpop.eup %3275 }
 0x2a8   : > { %v1676_v48 = vsel %vm1675_vm0, %v1673_v0, %v1670_v27  ;;  %1842 = vrot.lane.b32.xlu1 %v1797_v10, %s3533_s22  ;;  %v1679_v44 = vmul.f32 0.6931472, %v3276_v62 }
 0x2a9   : > { %v1700_v29 = vadd.f32 %v1676_v48, %v1444_v17 }
 0x2aa   : > { %v1685_v47 = vsel %vm1684_vm4, %v1682_v33, %v1679_v44 }
 0x2ab   : > { %v4790_v23 = vsel %vm1460_vm1, %v4593_v30, %v1700_v29  ;;  %v1701_v38 = vadd.f32 %v1685_v47, %v1445_v18 }
 0x2ac   : > { %v1732_v63 = vmax.f32 %v4790_v23, 1e-05 }
 0x2ad   : > { %v4796_v6 = vsel %vm1461_vm5, %v4645_v32, %v1701_v38 }
 0x2ae   : > { %v1749_v15 = vsel %vm1734_vm2, %v4790_v23, %v1732_v63  ;;  %v1782_v43 = vmul.f32 0.5, %v1732_v63  ;;  %v1733_v28 = vmax.f32 %v4796_v6, 1e-05 }
 0x2af   : > { %1766 = vst.msk [vmem:[%s4465_s21 + $0x70] sm:$0xff] %vm1751_vm3, %v1749_v15 }
 0x2b0   : > { %v1798_v30 = vmul.f32 %v1782_v43, %v1732_v63  ;;  %v1750_v53 = vsel %vm1734_vm2, %v4796_v6, %v1733_v28  ;;  %v1783_v59 = vmul.f32 0.5, %v1733_v28 }
 0x2b1   : > { %1767 = vst.msk [vmem:[%s4465_s21 + $0x78] sm:$0xff] %vm1751_vm3, %v1750_v53  ;;  %vm2186_vm3 = vcmask 1043456   ;;  %s5339_s21 = scalar_lea.hbm %s5399_s7, %s2831_s17 }
 0x2b2   : > { %1844 = vrot.lane.b32.xlu0 %v1798_v30, %s3533_s22  ;;  %v1799_v21 = vmul.f32 %v1783_v59, %v1733_v28 }
 0x2b4   : > { %1846 = vrot.lane.b32.xlu1 %v1799_v21, %s3533_s22  ;;  %s3469_s22 = scalar_lea.vmem %s5341_s18, 4096 }
 0x2b5   : > { %p3470_p11 = scmp.ne.s32.totalorder %s5341_s18, %s3469_s22  ;;  %p3477_p1 = scmp.lt.s32.totalorder %s3475_s25, %s3469_s22 }
 0x2b7   : > { %p3471_p12 = pnand %p3470_p11, %p3621_p5  ;;  %p3478_p2 = por %p3477_p1, %p3476_p0 }
 0x2b9   : > { %p3472_p13 = pneg %p3471_p12 }
 0x2bb   : > { %p3479_p3 = pnand %p3478_p2, %p3472_p13 }
 0x2e1   : > { %v1817_v32 = vpop.permute.xlu0 %1816 }
 0x2e2   : > { %v1864_v35 = vadd.f32 %v1817_v32, %v4438_v31 }
 0x2e4   : > { %v1880_v5 = vmul.f32 1.442695, %v1864_v35 }
 0x2e6   : > { %3277 = vpow2.f32 %v1880_v5 }
 0x2ee   : > { %v1819_v55 = vpop.permute.xlu0 %1818 }
 0x2ef   : > { %v1865_v58 = vadd.f32 %v1819_v55, %v4474_v49 }
 0x2f0   : > { %v4811_v52 = vpop.eup %3277 }
 0x2f1   : > { %v1882_v40 = vmul.f32 1.442695, %v1865_v58  ;;  %v1912_v9 = vsel %vm1734_vm2, %v4811_v52, -inf }
 0x2f2   : > { %1913 = vmax.xlane.f32.xlu0 %v1912_v9 }
 0x2f3   : > { %3279 = vpow2.f32 %v1882_v40 }
 0x2f5   : > { %v1821_v1 = vpop.permute.xlu1 %1820 }
 0x2f6   : > { %v1866_v42 = vadd.f32 %v1821_v1, %v4571_v56 }
 0x2f8   : > { %v1884_v61 = vmul.f32 1.442695, %v1866_v42 }
 0x2fa   : > { %3281 = vpow2.f32 %v1884_v61 }
 0x2fc   : > { %v1823_v26 = vpop.permute.xlu1 %1822 }
 0x2fd   : > { %v1867_v31 = vadd.f32 %v1823_v26, %v4533_v34  ;;  %v4817_v19 = vpop.eup %3279 }
 0x2fe   : > { %v1915_v11 = vsel %vm1734_vm2, %v4817_v19, -inf }
 0x2ff   : > { %v1886_v2 = vmul.f32 1.442695, %v1867_v31  ;;  %1916 = vmax.xlane.f32.xlu1 %v1915_v11 }
 0x300   : > { %v1825_v49 = vpop.permute.xlu0 %1824 }
 0x301   : > { %v1868_v3 = vadd.f32 %v1825_v49, %v4543_v7  ;;  %3283 = vpow2.f32 %v1886_v2 }
 0x303   : > { %v1888_v14 = vmul.f32 1.442695, %v1868_v3 }
 0x304   : > { %v1827_v46 = vpop.permute.xlu1 %1826  ;;  %v4822_v16 = vpop.eup %3281 }
 0x305   : > { %3285 = vpow2.f32 %v1888_v14  ;;  %v1869_v56 = vadd.f32 %v1827_v46, %v4606_v57  ;;  %v1918_v34 = vsel %vm1734_vm2, %v4822_v16, -inf }
 0x306   : > { %1919 = vmax.xlane.f32.xlu0 %v1918_v34  ;;  %v2144_v34 = vld [vmem:[%s5397_s5] sm:$0xff] }
 0x307   : > { %v1890_v50 = vmul.f32 1.442695, %v1869_v56 }
 0x308   : > { %v1829_v20 = vpop.permute.xlu0 %1828 }
 0x309   : > { %3287 = vpow2.f32 %v1890_v50  ;;  %v1870_v4 = vadd.f32 %v1829_v20, %v4617_v41  ;;  %v2813_v50 = vcombine.high %v2144_v34, %v2144_v34  ;;  %v2812_v20 = vcombine.low %v2144_v34, %v2144_v34 }
 0x30a   : > { %v1831_v51 = vpop.permute.xlu1 %1830 }
 0x30b   : > { %v1892_v7 = vmul.f32 1.442695, %v1870_v4  ;;  %v1871_v54 = vadd.f32 %v1831_v51, %v4625_v25  ;;  %v4829_v27 = vpop.eup %3283  ;;  %2814 = vmatprep.subr.msk.bf16.mxu0 %vm2186_vm3, %v2813_v50  ;;  %v2188_v4 = vsel %vm2186_vm3, %v2812_v20, 0 }
 0x30c   : > { %v1833_v0 = vpop.permute.xlu0 %1832  ;;  %v1921_v57 = vsel %vm1734_vm2, %v4829_v27, -inf  ;;  %2194 = vmatpush1.bf16.msra.mxu0 %v2188_v4 }
 0x30d   : > { %3289 = vpow2.f32 %v1892_v7  ;;  %v1894_v60 = vmul.f32 1.442695, %v1871_v54  ;;  %v1872_v10 = vadd.f32 %v1833_v0, %v4690_v8  ;;  %1922 = vmax.xlane.f32.xlu0 %v1921_v57 }
 0x30e   : > { %v1835_v17 = vpop.permute.xlu1 %1834 }
 0x30f   : > { %v4834_v62 = vpop.eup %3285  ;;  %3291 = vpow2.f32 %v1894_v60  ;;  %v1896_v41 = vmul.f32 1.442695, %v1872_v10  ;;  %v1873_v48 = vadd.f32 %v1835_v17, %v4696_v24 }
 0x310   : > { %v1924_v25 = vsel %vm1734_vm2, %v4834_v62, -inf  ;;  %v1837_v29 = vpop.permute.xlu0 %1836 }
 0x311   : > { %3293 = vpow2.f32 %v1896_v41  ;;  %1925 = vmax.xlane.f32.xlu1 %v1924_v25  ;;  %v1898_v44 = vmul.f32 1.442695, %v1873_v48  ;;  %v1874_v33 = vadd.f32 %v1837_v29, %v4716_v12 }
 0x312   : > { %v1839_v18 = vpop.permute.xlu1 %1838 }
 0x313   : > { %v4840_v47 = vpop.eup %3287  ;;  %3295 = vpow2.f32 %v1898_v44  ;;  %v1900_v8 = vmul.f32 1.442695, %v1874_v33  ;;  %v1875_v38 = vadd.f32 %v1839_v18, %v4731_v22 }
 0x314   : > { %v1927_v63 = vsel %vm1734_vm2, %v4840_v47, -inf }
 0x315   : > { %1928 = vmax.xlane.f32.xlu0 %v1927_v63  ;;  %3297 = vpow2.f32 %v1900_v8  ;;  %v1902_v24 = vmul.f32 1.442695, %v1875_v38  ;;  %v1841_v43 = vpop.permute.xlu0 %1840 }
 0x316   : > { %v1876_v28 = vadd.f32 %v1841_v43, %v4763_v13 }
 0x317   : > { %v4845_v15 = vpop.eup %3289  ;;  %3299 = vpow2.f32 %v1902_v24 }
 0x318   : > { %v1930_v12 = vsel %vm1734_vm2, %v4845_v15, -inf  ;;  %v1904_v53 = vmul.f32 1.442695, %v1876_v28 }
 0x319   : > { %v4850_v30 = vpop.eup %3291  ;;  %1931 = vmax.xlane.f32.xlu1 %v1930_v12 }
 0x31a   : > { %v1933_v22 = vsel %vm1734_vm2, %v4850_v30, -inf  ;;  %v1843_v59 = vpop.permute.xlu1 %1842  ;;  %3301 = vpow2.f32 %v1904_v53 }
 0x31b   : > { %v4854_v21 = vpop.eup %3293  ;;  %1934 = vmax.xlane.f32.xlu0 %v1933_v22  ;;  %v1877_v32 = vadd.f32 %v1843_v59, %v4772_v45 }
 0x31c   : > { %v1936_v35 = vsel %vm1734_vm2, %v4854_v21, -inf }
 0x31d   : > { %v4859_v5 = vpop.eup %3295  ;;  %1937 = vmax.xlane.f32.xlu1 %v1936_v35  ;;  %v1906_v13 = vmul.f32 1.442695, %v1877_v32 }
 0x31e   : > { %v1939_v55 = vsel %vm1734_vm2, %v4859_v5, -inf }
 0x31f   : > { %v4863_v58 = vpop.eup %3297  ;;  %3303 = vpow2.f32 %v1906_v13  ;;  %1940 = vmax.xlane.f32.xlu0 %v1939_v55 }
 0x320   : > { %v1942_v40 = vsel %vm1734_vm2, %v4863_v58, -inf }
 0x321   : > { %v4867_v9 = vpop.eup %3299  ;;  %1943 = vmax.xlane.f32.xlu1 %v1942_v40 }
 0x322   : > { %v1945_v45 = vsel %vm1734_vm2, %v4867_v9, -inf }
 0x323   : > { %1946 = vmax.xlane.f32.xlu0 %v1945_v45 }
 0x324   : > { %v1845_v1 = vpop.permute.xlu0 %1844  ;;  %v4872_v61 = vpop.eup %3301 }
 0x325   : > { %v1878_v42 = vadd.f32 %v1845_v1, %v4790_v23  ;;  %v1948_v2 = vsel %vm1734_vm2, %v4872_v61, -inf }
 0x326   : > { %v1847_v31 = vpop.permute.xlu1 %1846  ;;  %1949 = vmax.xlane.f32.xlu1 %v1948_v2 }
 0x327   : > { %v1908_v26 = vmul.f32 1.442695, %v1878_v42  ;;  %v1879_v49 = vadd.f32 %v1847_v31, %v4796_v6 }
 0x329   : > { %v4877_v11 = vpop.eup %3303  ;;  %3305 = vpow2.f32 %v1908_v26  ;;  %v1910_v3 = vmul.f32 1.442695, %v1879_v49 }
 0x32a   : > { %v1951_v14 = vsel %vm1734_vm2, %v4877_v11, -inf }
 0x32b   : > { %1952 = vmax.xlane.f32.xlu0 %v1951_v14  ;;  %3307 = vpow2.f32 %v1910_v3 }
 0x333   : > { %v4881_v23 = vpop.eup %3305 }
 0x334   : > { %v1954_v46 = vsel %vm1734_vm2, %v4881_v23, -inf }
 0x335   : > { %1955 = vmax.xlane.f32.xlu1 %v1954_v46  ;;  %v4885_v56 = vpop.eup %3307 }
 0x336   : > { %v1957_v6 = vsel %vm1734_vm2, %v4885_v56, -inf }
 0x337   : > { %1958 = vmax.xlane.f32.xlu0 %v1957_v6 }
 0x37f   : > { %v1914_v51 = vpop.xlane.xlu0 %1913 }
 0x380   : > { %v1960_v7 = vsub.f32 %v4811_v52, %v1914_v51 }
 0x382   : > { %v1976_v54 = vmul.f32 1.442695, %v1960_v7 }
 0x384   : > { %3309 = vpow2.f32 %v1976_v54 }
 0x38c   : > { %v1917_v0 = vpop.xlane.xlu1 %1916 }
 0x38d   : > { %v1961_v60 = vsub.f32 %v4817_v19, %v1917_v0 }
 0x38e   : > { %v4894_v57 = vpop.eup %3309 }
 0x38f   : > { %v1978_v10 = vmul.f32 1.442695, %v1961_v60  ;;  %v2008_v17 = vsel %vm1734_vm2, %v4894_v57, 0.0 }
 0x390   : > { %2009 = vadd.xlane.f32.xlu1 %v2008_v17 }
 0x391   : > { %3311 = vpow2.f32 %v1978_v10 }
 0x393   : > { %v1920_v41 = vpop.xlane.xlu0 %1919 }
 0x394   : > { %v1962_v48 = vsub.f32 %v4822_v16, %v1920_v41 }
 0x396   : > { %v1980_v25 = vmul.f32 1.442695, %v1962_v48 }
 0x398   : > { %3313 = vpow2.f32 %v1980_v25 }
 0x39a   : > { %v1923_v29 = vpop.xlane.xlu0 %1922 }
 0x39b   : > { %v1963_v52 = vsub.f32 %v4829_v27, %v1923_v29  ;;  %v4900_v44 = vpop.eup %3311 }
 0x39c   : > { %v2011_v18 = vsel %vm1734_vm2, %v4900_v44, 0.0 }
 0x39d   : > { %v1982_v33 = vmul.f32 1.442695, %v1963_v52  ;;  %2012 = vadd.xlane.f32.xlu0 %v2011_v18  ;;  %v3534_v18 = vmov 0  }
 0x39e   : > { %v1926_v19 = vpop.xlane.xlu1 %1925  ;;  %2225 = vmatprep.mubr.bf16.mxu0 %v3534_v18 }
 0x39f   : > { %v1964_v8 = vsub.f32 %v4834_v62, %v1926_v19  ;;  %3315 = vpow2.f32 %v1982_v33 }
 0x3a1   : > { %v1984_v38 = vmul.f32 1.442695, %v1964_v8 }
 0x3a2   : > { %v1929_v63 = vpop.xlane.xlu0 %1928  ;;  %v4905_v24 = vpop.eup %3313 }
 0x3a3   : > { %3317 = vpow2.f32 %v1984_v38  ;;  %v1965_v16 = vsub.f32 %v4840_v47, %v1929_v63  ;;  %v2014_v27 = vsel %vm1734_vm2, %v4905_v24, 0.0 }
 0x3a4   : > { %2015 = vadd.xlane.f32.xlu1 %v2014_v27 }
 0x3a5   : > { %v1986_v43 = vmul.f32 1.442695, %v1965_v16 }
 0x3a6   : > { %v1932_v12 = vpop.xlane.xlu1 %1931 }
 0x3a7   : > { %3319 = vpow2.f32 %v1986_v43  ;;  %v1966_v28 = vsub.f32 %v4845_v15, %v1932_v12 }
 0x3a8   : > { %v1935_v22 = vpop.xlane.xlu0 %1934 }
 0x3a9   : > { %v1988_v62 = vmul.f32 1.442695, %v1966_v28  ;;  %v1967_v53 = vsub.f32 %v4850_v30, %v1935_v22  ;;  %v4912_v59 = vpop.eup %3315 }
 0x3aa   : > { %v1938_v32 = vpop.xlane.xlu1 %1937  ;;  %v2017_v47 = vsel %vm1734_vm2, %v4912_v59, 0.0 }
 0x3ab   : > { %3321 = vpow2.f32 %v1988_v62  ;;  %v1990_v35 = vmul.f32 1.442695, %v1967_v53  ;;  %v1968_v13 = vsub.f32 %v4854_v21, %v1938_v32  ;;  %2018 = vadd.xlane.f32.xlu0 %v2017_v47 }
 0x3ac   : > { %v1941_v55 = vpop.xlane.xlu0 %1940 }
 0x3ad   : > { %v4917_v40 = vpop.eup %3317  ;;  %3323 = vpow2.f32 %v1990_v35  ;;  %v1992_v15 = vmul.f32 1.442695, %v1968_v13  ;;  %v1969_v45 = vsub.f32 %v4859_v5, %v1941_v55 }
 0x3ae   : > { %v2020_v30 = vsel %vm1734_vm2, %v4917_v40, 0.0  ;;  %v1944_v1 = vpop.xlane.xlu1 %1943 }
 0x3af   : > { %3325 = vpow2.f32 %v1992_v15  ;;  %2021 = vadd.xlane.f32.xlu1 %v2020_v30  ;;  %v1994_v42 = vmul.f32 1.442695, %v1969_v45  ;;  %v1970_v26 = vsub.f32 %v4863_v58, %v1944_v1 }
 0x3b0   : > { %v1947_v31 = vpop.xlane.xlu0 %1946 }
 0x3b1   : > { %v4923_v2 = vpop.eup %3319  ;;  %3327 = vpow2.f32 %v1994_v42  ;;  %v1996_v21 = vmul.f32 1.442695, %v1970_v26  ;;  %v1971_v49 = vsub.f32 %v4867_v9, %v1947_v31 }
 0x3b2   : > { %v2023_v3 = vsel %vm1734_vm2, %v4923_v2, 0.0 }
 0x3b3   : > { %2024 = vadd.xlane.f32.xlu0 %v2023_v3  ;;  %3329 = vpow2.f32 %v1996_v21  ;;  %v1998_v5 = vmul.f32 1.442695, %v1971_v49  ;;  %v1950_v46 = vpop.xlane.xlu1 %1949 }
 0x3b4   : > { %v1972_v6 = vsub.f32 %v4872_v61, %v1950_v46 }
 0x3b5   : > { %v4928_v14 = vpop.eup %3321  ;;  %3331 = vpow2.f32 %v1998_v5 }
 0x3b6   : > { %v2026_v58 = vsel %vm1734_vm2, %v4928_v14, 0.0  ;;  %v2000_v50 = vmul.f32 1.442695, %v1972_v6 }
 0x3b7   : > { %v4933_v34 = vpop.eup %3323  ;;  %2027 = vadd.xlane.f32.xlu1 %v2026_v58 }
 0x3b8   : > { %v2029_v9 = vsel %vm1734_vm2, %v4933_v34, 0.0  ;;  %v1953_v20 = vpop.xlane.xlu0 %1952  ;;  %3333 = vpow2.f32 %v2000_v50 }
 0x3b9   : > { %v4937_v4 = vpop.eup %3325  ;;  %2030 = vadd.xlane.f32.xlu0 %v2029_v9  ;;  %v1973_v51 = vsub.f32 %v4877_v11, %v1953_v20 }
 0x3ba   : > { %v2032_v7 = vsel %vm1734_vm2, %v4937_v4, 0.0 }
 0x3bb   : > { %v4942_v54 = vpop.eup %3327  ;;  %2033 = vadd.xlane.f32.xlu1 %v2032_v7  ;;  %v2002_v61 = vmul.f32 1.442695, %v1973_v51 }
 0x3bc   : > { %v2035_v0 = vsel %vm1734_vm2, %v4942_v54, 0.0 }
 0x3bd   : > { %v4946_v60 = vpop.eup %3329  ;;  %3335 = vpow2.f32 %v2002_v61  ;;  %2036 = vadd.xlane.f32.xlu0 %v2035_v0 }
 0x3be   : > { %v2038_v10 = vsel %vm1734_vm2, %v4946_v60, 0.0 }
 0x3bf   : > { %v4950_v17 = vpop.eup %3331  ;;  %2039 = vadd.xlane.f32.xlu1 %v2038_v10 }
 0x3c0   : > { %v2041_v11 = vsel %vm1734_vm2, %v4950_v17, 0.0 }
 0x3c1   : > { %2042 = vadd.xlane.f32.xlu0 %v2041_v11 }
 0x3c2   : > { %v1956_v41 = vpop.xlane.xlu1 %1955  ;;  %v4955_v25 = vpop.eup %3333 }
 0x3c3   : > { %v1974_v48 = vsub.f32 %v4881_v23, %v1956_v41  ;;  %v2044_v33 = vsel %vm1734_vm2, %v4955_v25, 0.0 }
 0x3c4   : > { %v1959_v52 = vpop.xlane.xlu0 %1958  ;;  %2045 = vadd.xlane.f32.xlu1 %v2044_v33 }
 0x3c5   : > { %v2004_v29 = vmul.f32 1.442695, %v1974_v48  ;;  %v1975_v19 = vsub.f32 %v4885_v56, %v1959_v52 }
 0x3c7   : > { %v4961_v8 = vpop.eup %3335  ;;  %3337 = vpow2.f32 %v2004_v29  ;;  %v2006_v38 = vmul.f32 1.442695, %v1975_v19 }
 0x3c8   : > { %v2047_v23 = vsel %vm1734_vm2, %v4961_v8, 0.0 }
 0x3c9   : > { %2048 = vadd.xlane.f32.xlu0 %v2047_v23  ;;  %3339 = vpow2.f32 %v2006_v38 }
 0x3d1   : > { %v4965_v63 = vpop.eup %3337 }
 0x3d2   : > { %v2050_v16 = vsel %vm1734_vm2, %v4965_v63, 0.0 }
 0x3d3   : > { %2051 = vadd.xlane.f32.xlu1 %v2050_v16  ;;  %v4969_v56 = vpop.eup %3339 }
 0x3d4   : > { %v2053_v27 = vsel %vm1734_vm2, %v4969_v56, 0.0 }
 0x3d5   : > { %2054 = vadd.xlane.f32.xlu0 %v2053_v27 }
 0x41d   : > { %v2010_v43 = vpop.xlane.xlu1 %2009 }
 0x41e   : > { %3341 = vrcp.f32 %v2010_v43 }
 0x428   : > { %v3342_v28 = vpop.eup %3341 }
 0x429   : > { %v2072_v22 = vmul.f32 %v3342_v28, %v2010_v43 }
 0x42a   : > { %v2013_v12 = vpop.xlane.xlu0 %2012 }
 0x42b   : > { %3343 = vrcp.f32 %v2013_v12  ;;  %v2088_v53 = vsub.f32 2.0, %v2072_v22 }
 0x42d   : > { %v2104_v13 = vmul.f32 %v3342_v28, %v2088_v53 }
 0x42f   : > { %v2120_v1 = vmul.f32 %v4894_v57, %v2104_v13 }
 0x431   : > { %v2016_v62 = vpop.xlane.xlu1 %2015 }
 0x432   : > { %3345 = vrcp.f32 %v2016_v62 }
 0x435   : > { %v3344_v32 = vpop.eup %3343 }
 0x436   : > { %v2073_v35 = vmul.f32 %v3344_v32, %v2013_v12 }
 0x438   : > { %v2019_v47 = vpop.xlane.xlu0 %2018  ;;  %v2089_v55 = vsub.f32 2.0, %v2073_v35 }
 0x439   : > { %3347 = vrcp.f32 %v2019_v47 }
 0x43a   : > { %v2105_v15 = vmul.f32 %v3344_v32, %v2089_v55 }
 0x43c   : > { %v2022_v45 = vpop.xlane.xlu1 %2021  ;;  %v3346_v30 = vpop.eup %3345  ;;  %v2121_v42 = vmul.f32 %v4900_v44, %v2105_v15 }
 0x43d   : > { %3349 = vrcp.f32 %v2022_v45  ;;  %v2074_v26 = vmul.f32 %v3346_v30, %v2016_v62 }
 0x43e   : > { %v2136_v31 = vpack.c.bf16 %v2121_v42, %v2120_v1 }
 0x43f   : > { %v2090_v49 = vsub.f32 2.0, %v2074_v26 }
 0x440   : > { %v2025_v21 = vpop.xlane.xlu0 %2024  ;;  %2815 = vmatmul.mubr.msk.bf16.vlgmr.msra.gmra.mrb[48].mxu0 %vm1734_vm2, %v2136_v31 }
 0x441   : > { %3351 = vrcp.f32 %v2025_v21  ;;  %2235 = vmatprep.mubr.bf16.mxu0 %v3534_v18  ;;  %v2106_v9 = vmul.f32 %v3346_v30, %v2090_v49 }
 0x443   : > { %v3348_v3 = vpop.eup %3347  ;;  %v2122_v0 = vmul.f32 %v4905_v24, %v2106_v9 }
 0x444   : > { %v2028_v5 = vpop.xlane.xlu1 %2027  ;;  %v2075_v46 = vmul.f32 %v3348_v3, %v2019_v47 }
 0x445   : > { %3353 = vrcp.f32 %v2028_v5 }
 0x446   : > { %v2031_v58 = vpop.xlane.xlu0 %2030  ;;  %v2091_v50 = vsub.f32 2.0, %v2075_v46 }
 0x447   : > { %v3350_v6 = vpop.eup %3349  ;;  %3355 = vrcp.f32 %v2031_v58 }
 0x448   : > { %v2076_v57 = vmul.f32 %v3350_v6, %v2022_v45  ;;  %v2034_v44 = vpop.xlane.xlu1 %2033  ;;  %v2107_v20 = vmul.f32 %v3348_v3, %v2091_v50 }
 0x449   : > { %3357 = vrcp.f32 %v2034_v44 }
 0x44a   : > { %v2092_v51 = vsub.f32 2.0, %v2076_v57  ;;  %v2037_v7 = vpop.xlane.xlu0 %2036  ;;  %v2123_v10 = vmul.f32 %v4912_v59, %v2107_v20 }
 0x44b   : > { %v3352_v61 = vpop.eup %3351  ;;  %3359 = vrcp.f32 %v2037_v7 }
 0x44c   : > { %v2077_v11 = vmul.f32 %v3352_v61, %v2025_v21  ;;  %v2137_v41 = vpack.c.bf16 %v2123_v10, %v2122_v0  ;;  %v2040_v48 = vpop.xlane.xlu1 %2039  ;;  %v2108_v29 = vmul.f32 %v3350_v6, %v2092_v51 }
 0x44e   : > { %v2093_v52 = vsub.f32 2.0, %v2077_v11  ;;  %v2043_v33 = vpop.xlane.xlu0 %2042  ;;  %2816 = vmatmul.mubr.msk.bf16.gmra.mrb[52].mxu0 %vm1734_vm2, %v2137_v41  ;;  %v2124_v24 = vmul.f32 %v4917_v40, %v2108_v29 }
 0x44f   : > { %v3354_v19 = vpop.eup %3353  ;;  %3361 = vrcp.f32 %v2043_v33  ;;  %2245 = vmatprep.mubr.bf16.mxu0 %v3534_v18 }
 0x450   : > { %v2109_v38 = vmul.f32 %v3352_v61, %v2093_v52  ;;  %v2078_v23 = vmul.f32 %v3354_v19, %v2028_v5  ;;  %3363 = vrcp.f32 %v2040_v48 }
 0x451   : > { %v3356_v16 = vpop.eup %3355  ;;  %v2046_v35 = vpop.xlane.xlu1 %2045 }
 0x452   : > { %v2125_v59 = vmul.f32 %v4923_v2, %v2109_v38  ;;  %v2094_v27 = vsub.f32 2.0, %v2078_v23  ;;  %v2079_v43 = vmul.f32 %v3356_v16, %v2031_v58 }
 0x453   : > { %v3358_v12 = vpop.eup %3357 }
 0x454   : > { %v2095_v28 = vsub.f32 2.0, %v2079_v43  ;;  %v2138_v22 = vpack.c.bf16 %v2125_v59, %v2124_v24  ;;  %v2110_v53 = vmul.f32 %v3354_v19, %v2094_v27  ;;  %v2080_v32 = vmul.f32 %v3358_v12, %v2034_v44 }
 0x455   : > { %v3360_v62 = vpop.eup %3359 }
 0x456   : > { %v2111_v47 = vmul.f32 %v3356_v16, %v2095_v28  ;;  %v2081_v13 = vmul.f32 %v3360_v62, %v2037_v7  ;;  %v2049_v55 = vpop.xlane.xlu0 %2048  ;;  %2817 = vmatmul.mubr.msk.bf16.gmra.mrb[56].mxu0 %vm1734_vm2, %v2138_v22  ;;  %v2126_v45 = vmul.f32 %v4928_v14, %v2110_v53  ;;  %v2096_v30 = vsub.f32 2.0, %v2080_v32 }
 0x457   : > { %3365 = vrcp.f32 %v2049_v55  ;;  %2255 = vmatprep.mubr.bf16.mxu0 %v3534_v18 }
 0x458   : > { %v2127_v15 = vmul.f32 %v4933_v34, %v2111_v47  ;;  %v2097_v40 = vsub.f32 2.0, %v2081_v13  ;;  %3367 = vrcp.f32 %v2046_v35  ;;  %v2112_v21 = vmul.f32 %v3358_v12, %v2096_v30 }
 0x459   : > { %v3362_v2 = vpop.eup %3361 }
 0x45a   : > { %v3364_v1 = vpop.eup %3363  ;;  %v2113_v42 = vmul.f32 %v3360_v62, %v2097_v40  ;;  %v2083_v26 = vmul.f32 %v3362_v2, %v2043_v33  ;;  %v2139_v31 = vpack.c.bf16 %v2127_v15, %v2126_v45  ;;  %v2128_v58 = vmul.f32 %v4937_v4, %v2112_v21 }
 0x45b   : > { %v2082_v49 = vmul.f32 %v3364_v1, %v2040_v48 }
 0x45c   : > { %v2129_v3 = vmul.f32 %v4942_v54, %v2113_v42  ;;  %v2099_v5 = vsub.f32 2.0, %v2083_v26 }
 0x45d   : > { %v2098_v6 = vsub.f32 2.0, %v2082_v49 }
 0x45e   : > { %2818 = vmatmul.mubr.msk.bf16.gmra.mrb[60].mxu0 %vm1734_vm2, %v2139_v31  ;;  %v2115_v9 = vmul.f32 %v3362_v2, %v2099_v5  ;;  %v2140_v57 = vpack.c.bf16 %v2129_v3, %v2128_v58 }
 0x45f   : > { %2265 = vmatprep.mubr.bf16.mxu0 %v3534_v18  ;;  %v2114_v20 = vmul.f32 %v3364_v1, %v2098_v6 }
 0x460   : > { %v2052_v34 = vpop.xlane.xlu1 %2051  ;;  %v2131_v54 = vmul.f32 %v4950_v17, %v2115_v9 }
 0x461   : > { %v3366_v46 = vpop.eup %3365  ;;  %3369 = vrcp.f32 %v2052_v34  ;;  %v2130_v61 = vmul.f32 %v4946_v60, %v2114_v20 }
 0x462   : > { %v3368_v14 = vpop.eup %3367  ;;  %v2085_v50 = vmul.f32 %v3366_v46, %v2049_v55  ;;  %v2055_v44 = vpop.xlane.xlu0 %2054 }
 0x463   : > { %3371 = vrcp.f32 %v2055_v44  ;;  %v2084_v51 = vmul.f32 %v3368_v14, %v2046_v35  ;;  %v2141_v11 = vpack.c.bf16 %v2131_v54, %v2130_v61 }
 0x464   : > { %v2101_v7 = vsub.f32 2.0, %v2085_v50 }
 0x465   : > { %v2100_v4 = vsub.f32 2.0, %v2084_v51 }
 0x466   : > { %2819 = vmatmul.mubr.msk.bf16.gmra.mrb[64].mxu0 %vm1734_vm2, %v2140_v57  ;;  %v2117_v10 = vmul.f32 %v3366_v46, %v2101_v7 }
 0x467   : > { %2275 = vmatprep.mubr.bf16.mxu0 %v3534_v18  ;;  %v2116_v41 = vmul.f32 %v3368_v14, %v2100_v4 }
 0x468   : > { %v2133_v52 = vmul.f32 %v4961_v8, %v2117_v10 }
 0x469   : > { %v2132_v17 = vmul.f32 %v4955_v25, %v2116_v41  ;;  %v2145_v25 = vld [vmem:[%s5398_s6] sm:$0x3] }
 0x46a   : > { %v5009_v27 = vrot.slane %v2145_v25, %v441_v37 }
 0x46b   : > { %v3370_v0 = vpop.eup %3369  ;;  %v2142_v60 = vpack.c.bf16 %v2133_v52, %v2132_v17 }
 0x46c   : > { %v2086_v48 = vmul.f32 %v3370_v0, %v2052_v34 }
 0x46d   : > { %v3372_v29 = vpop.eup %3371 }
 0x46e   : > { %v2087_v33 = vmul.f32 %v3372_v29, %v2055_v44  ;;  %2820 = vmatmul.mubr.msk.bf16.gmra.mrb[68].mxu0 %vm1734_vm2, %v2141_v11  ;;  %v2102_v19 = vsub.f32 2.0, %v2086_v48 }
 0x46f   : > { %2285 = vmatprep.mubr.bf16.mxu0 %v3534_v18 }
 0x470   : > { %v2103_v38 = vsub.f32 2.0, %v2087_v33  ;;  %v2118_v16 = vmul.f32 %v3370_v0, %v2102_v19 }
 0x472   : > { %v2119_v23 = vmul.f32 %v3372_v29, %v2103_v38  ;;  %v2134_v8 = vmul.f32 %v4965_v63, %v2118_v16 }
 0x474   : > { %v2135_v24 = vmul.f32 %v4969_v56, %v2119_v23  ;;  %v5013_v56 = vrot.slane %v2145_v25, %v445_v39 }
 0x476   : > { %2821 = vmatmul.mubr.msk.bf16.gmra.mrb[72].mxu0 %vm1734_vm2, %v2142_v60  ;;  %v2143_v59 = vpack.c.bf16 %v2135_v24, %v2134_v8 }
 0x477   : > { %2295 = vmatprep.mubr.bf16.mxu0 %v3534_v18 }
 0x47e   : > { %2822 = vmatmul.mubr.msk.bf16.gmra.mrb[76].mxu0 %vm1734_vm2, %v2143_v59 }
 0x513   : > { %v2227_v43 = vpop.f32.mrb[48].mxu0 }
 0x514   : > { %v5016_v18 = vadd.f32 %v2227_v43, %v5009_v27  ;;  %v2229_v63 = vpop.f32.mrb[49].mxu0 }
 0x515   : > { %v5019_v12 = vadd.f32 %v2229_v63, %v5013_v56  ;;  %v2231_v28 = vpop.f32.mrb[50].mxu0 }
 0x516   : > { %v5022_v22 = vadd.f32 %v2231_v28, %v5009_v27  ;;  %v2233_v62 = vpop.f32.mrb[51].mxu0 }
 0x517   : > { %v5025_v37 = vadd.f32 %v2233_v62, %v5013_v56  ;;  %v2306_v36 = vmax.f32 %v5016_v18, %v5019_v12 }
 0x519   : > { %2307 = vmax.xlane.f32.xlu1 %v2306_v36  ;;  %v2309_v39 = vmax.f32 %v5022_v22, %v5025_v37 }
 0x51b   : > { %2310 = vmax.xlane.f32.xlu0 %v2309_v39 }
 0x521   : > { %v2237_v53 = vpop.f32.mrb[52].mxu0 }
 0x522   : > { %v5032_v32 = vadd.f32 %v2237_v53, %v5009_v27  ;;  %v2239_v35 = vpop.f32.mrb[53].mxu0 }
 0x523   : > { %v5035_v47 = vadd.f32 %v2239_v35, %v5013_v56  ;;  %v2241_v13 = vpop.f32.mrb[54].mxu0 }
 0x524   : > { %v5038_v55 = vadd.f32 %v2241_v13, %v5009_v27  ;;  %v2243_v15 = vpop.f32.mrb[55].mxu0 }
 0x525   : > { %v5041_v40 = vadd.f32 %v2243_v15, %v5013_v56  ;;  %v2312_v2 = vmax.f32 %v5032_v32, %v5035_v47 }
 0x527   : > { %2313 = vmax.xlane.f32.xlu1 %v2312_v2  ;;  %v2315_v45 = vmax.f32 %v5038_v55, %v5041_v40 }
 0x529   : > { %2316 = vmax.xlane.f32.xlu0 %v2315_v45  ;;  %v2247_v30 = vpop.f32.mrb[56].mxu0 }
 0x52a   : > { %v5048_v1 = vadd.f32 %v2247_v30, %v5009_v27  ;;  %v2249_v42 = vpop.f32.mrb[57].mxu0 }
 0x52b   : > { %v5051_v26 = vadd.f32 %v2249_v42, %v5013_v56  ;;  %v2251_v31 = vpop.f32.mrb[58].mxu0 }
 0x52c   : > { %v5054_v21 = vadd.f32 %v2251_v31, %v5009_v27  ;;  %v2253_v49 = vpop.f32.mrb[59].mxu0 }
 0x52d   : > { %v5057_v3 = vadd.f32 %v2253_v49, %v5013_v56  ;;  %v2318_v5 = vmax.f32 %v5048_v1, %v5051_v26 }
 0x52f   : > { %2319 = vmax.xlane.f32.xlu1 %v2318_v5  ;;  %v2321_v34 = vmax.f32 %v5054_v21, %v5057_v3 }
 0x531   : > { %2322 = vmax.xlane.f32.xlu0 %v2321_v34  ;;  %v2257_v46 = vpop.f32.mrb[60].mxu0 }
 0x532   : > { %v5064_v58 = vadd.f32 %v2257_v46, %v5009_v27  ;;  %v2259_v6 = vpop.f32.mrb[61].mxu0 }
 0x533   : > { %v5067_v14 = vadd.f32 %v2259_v6, %v5013_v56  ;;  %v2261_v9 = vpop.f32.mrb[62].mxu0 }
 0x534   : > { %v5070_v50 = vadd.f32 %v2261_v9, %v5009_v27  ;;  %v2263_v57 = vpop.f32.mrb[63].mxu0 }
 0x535   : > { %v5073_v44 = vadd.f32 %v2263_v57, %v5013_v56  ;;  %v2324_v20 = vmax.f32 %v5064_v58, %v5067_v14 }
 0x537   : > { %2325 = vmax.xlane.f32.xlu1 %v2324_v20  ;;  %v2327_v51 = vmax.f32 %v5070_v50, %v5073_v44 }
 0x539   : > { %2328 = vmax.xlane.f32.xlu0 %v2327_v51  ;;  %v2267_v54 = vpop.f32.mrb[64].mxu0 }
 0x53a   : > { %v5080_v7 = vadd.f32 %v2267_v54, %v5009_v27  ;;  %v2269_v61 = vpop.f32.mrb[65].mxu0 }
 0x53b   : > { %v5083_v4 = vadd.f32 %v2269_v61, %v5013_v56  ;;  %v2271_v0 = vpop.f32.mrb[66].mxu0 }
 0x53c   : > { %v5086_v10 = vadd.f32 %v2271_v0, %v5009_v27  ;;  %v2273_v11 = vpop.f32.mrb[67].mxu0 }
 0x53d   : > { %v5089_v41 = vadd.f32 %v2273_v11, %v5013_v56  ;;  %v2330_v48 = vmax.f32 %v5080_v7, %v5083_v4 }
 0x53f   : > { %2331 = vmax.xlane.f32.xlu1 %v2330_v48  ;;  %v2333_v29 = vmax.f32 %v5086_v10, %v5089_v41 }
 0x541   : > { %2334 = vmax.xlane.f32.xlu0 %v2333_v29  ;;  %v2277_v52 = vpop.f32.mrb[68].mxu0 }
 0x542   : > { %v5096_v33 = vadd.f32 %v2277_v52, %v5009_v27  ;;  %v2279_v17 = vpop.f32.mrb[69].mxu0 }
 0x543   : > { %v5099_v19 = vadd.f32 %v2279_v17, %v5013_v56  ;;  %v2281_v38 = vpop.f32.mrb[70].mxu0 }
 0x544   : > { %v5102_v23 = vadd.f32 %v2281_v38, %v5009_v27  ;;  %v2283_v60 = vpop.f32.mrb[71].mxu0 }
 0x545   : > { %v5105_v16 = vadd.f32 %v2283_v60, %v5013_v56  ;;  %v2336_v24 = vmax.f32 %v5096_v33, %v5099_v19 }
 0x547   : > { %2337 = vmax.xlane.f32.xlu1 %v2336_v24  ;;  %v2339_v8 = vmax.f32 %v5102_v23, %v5105_v16 }
 0x549   : > { %2340 = vmax.xlane.f32.xlu0 %v2339_v8  ;;  %v2287_v59 = vpop.f32.mrb[72].mxu0 }
 0x54a   : > { %v5112_v25 = vadd.f32 %v2287_v59, %v5009_v27  ;;  %v2289_v43 = vpop.f32.mrb[73].mxu0 }
 0x54b   : > { %v5115_v63 = vadd.f32 %v2289_v43, %v5013_v56  ;;  %v2291_v28 = vpop.f32.mrb[74].mxu0 }
 0x54c   : > { %v5118_v62 = vadd.f32 %v2291_v28, %v5009_v27  ;;  %v2293_v36 = vpop.f32.mrb[75].mxu0 }
 0x54d   : > { %v5121_v39 = vadd.f32 %v2293_v36, %v5013_v56  ;;  %v2342_v53 = vmax.f32 %v5112_v25, %v5115_v63 }
 0x54f   : > { %2343 = vmax.xlane.f32.xlu1 %v2342_v53  ;;  %v2345_v35 = vmax.f32 %v5118_v62, %v5121_v39 }
 0x551   : > { %2346 = vmax.xlane.f32.xlu0 %v2345_v35  ;;  %v2297_v13 = vpop.f32.mrb[76].mxu0 }
 0x552   : > { %v5128_v15 = vadd.f32 %v2297_v13, %v5009_v27  ;;  %v2299_v2 = vpop.f32.mrb[77].mxu0 }
 0x553   : > { %v5131_v45 = vadd.f32 %v2299_v2, %v5013_v56  ;;  %v2301_v30 = vpop.f32.mrb[78].mxu0 }
 0x554   : > { %v5134_v42 = vadd.f32 %v2301_v30, %v5009_v27  ;;  %v2303_v31 = vpop.f32.mrb[79].mxu0 }
 0x555   : > { %v5137_v49 = vadd.f32 %v2303_v31, %v5013_v56  ;;  %v2348_v5 = vmax.f32 %v5128_v15, %v5131_v45 }
 0x557   : > { %2349 = vmax.xlane.f32.xlu1 %v2348_v5  ;;  %v2351_v34 = vmax.f32 %v5134_v42, %v5137_v49 }
 0x559   : > { %2352 = vmax.xlane.f32.xlu0 %v2351_v34 }
 0x5a6   : > { %v2308_v46 = vpop.xlane.xlu1 %2307 }
 0x5a7   : > { %v2354_v6 = vsub.f32 %v5016_v18, %v2308_v46  ;;  %v2355_v9 = vsub.f32 %v5019_v12, %v2308_v46 }
 0x5a8   : > { %v2311_v57 = vpop.xlane.xlu0 %2310 }
 0x5a9   : > { %v2386_v27 = vmul.f32 1.442695, %v2354_v6  ;;  %v2388_v20 = vmul.f32 1.442695, %v2355_v9  ;;  %v2356_v51 = vsub.f32 %v5022_v22, %v2311_v57  ;;  %v2357_v56 = vsub.f32 %v5025_v37, %v2311_v57 }
 0x5ab   : > { %3373 = vpow2.f32 %v2386_v27  ;;  %v2390_v54 = vmul.f32 1.442695, %v2356_v51  ;;  %v2392_v61 = vmul.f32 1.442695, %v2357_v56 }
 0x5ac   : > { %3375 = vpow2.f32 %v2388_v20 }
 0x5ad   : > { %3377 = vpow2.f32 %v2390_v54 }
 0x5ae   : > { %3379 = vpow2.f32 %v2392_v61 }
 0x5b4   : > { %v2314_v0 = vpop.xlane.xlu1 %2313 }
 0x5b5   : > { %v2358_v11 = vsub.f32 %v5032_v32, %v2314_v0  ;;  %v2359_v18 = vsub.f32 %v5035_v47, %v2314_v0  ;;  %v5149_v48 = vpop.eup %3373 }
 0x5b6   : > { %v2317_v12 = vpop.xlane.xlu0 %2316  ;;  %v5151_v29 = vpop.eup %3375 }
 0x5b7   : > { %v2394_v52 = vmul.f32 1.442695, %v2358_v11  ;;  %v2396_v22 = vmul.f32 1.442695, %v2359_v18  ;;  %v2360_v37 = vsub.f32 %v5038_v55, %v2317_v12  ;;  %v2361_v17 = vsub.f32 %v5041_v40, %v2317_v12  ;;  %v5155_v38 = vpop.eup %3377 }
 0x5b8   : > { %v2450_v60 = vadd.f32 %v5151_v29, %v5149_v48  ;;  %v5159_v24 = vpop.eup %3379 }
 0x5b9   : > { %3381 = vpow2.f32 %v2394_v52  ;;  %v2398_v32 = vmul.f32 1.442695, %v2360_v37  ;;  %v2400_v47 = vmul.f32 1.442695, %v2361_v17  ;;  %v2453_v8 = vadd.f32 %v5159_v24, %v5155_v38 }
 0x5ba   : > { %3383 = vpow2.f32 %v2396_v22  ;;  %2451 = vadd.xlane.f32.xlu1 %v2450_v60 }
 0x5bb   : > { %3385 = vpow2.f32 %v2398_v32  ;;  %2454 = vadd.xlane.f32.xlu0 %v2453_v8 }
 0x5bc   : > { %3387 = vpow2.f32 %v2400_v47  ;;  %v2320_v55 = vpop.xlane.xlu1 %2319 }
 0x5bd   : > { %v2362_v40 = vsub.f32 %v5048_v1, %v2320_v55  ;;  %v2363_v59 = vsub.f32 %v5051_v26, %v2320_v55 }
 0x5be   : > { %v2323_v43 = vpop.xlane.xlu0 %2322 }
 0x5bf   : > { %v2402_v28 = vmul.f32 1.442695, %v2362_v40  ;;  %v2404_v36 = vmul.f32 1.442695, %v2363_v59  ;;  %v2364_v53 = vsub.f32 %v5054_v21, %v2323_v43  ;;  %v2365_v35 = vsub.f32 %v5057_v3, %v2323_v43 }
 0x5c1   : > { %3389 = vpow2.f32 %v2402_v28  ;;  %v2406_v13 = vmul.f32 1.442695, %v2364_v53  ;;  %v2408_v2 = vmul.f32 1.442695, %v2365_v35 }
 0x5c2   : > { %3391 = vpow2.f32 %v2404_v36 }
 0x5c3   : > { %v5167_v30 = vpop.eup %3381  ;;  %3393 = vpow2.f32 %v2406_v13 }
 0x5c4   : > { %v5169_v31 = vpop.eup %3383  ;;  %3395 = vpow2.f32 %v2408_v2  ;;  %v2326_v1 = vpop.xlane.xlu1 %2325 }
 0x5c5   : > { %v5171_v5 = vpop.eup %3385  ;;  %v2366_v26 = vsub.f32 %v5064_v58, %v2326_v1  ;;  %v2367_v34 = vsub.f32 %v5067_v14, %v2326_v1  ;;  %v2456_v21 = vadd.f32 %v5169_v31, %v5167_v30 }
 0x5c6   : > { %v5177_v3 = vpop.eup %3387  ;;  %v2329_v46 = vpop.xlane.xlu0 %2328 }
 0x5c7   : > { %v2410_v6 = vmul.f32 1.442695, %v2366_v26  ;;  %v2412_v9 = vmul.f32 1.442695, %v2367_v34  ;;  %2457 = vadd.xlane.f32.xlu1 %v2456_v21  ;;  %v2368_v57 = vsub.f32 %v5070_v50, %v2329_v46  ;;  %v2369_v27 = vsub.f32 %v5073_v44, %v2329_v46 }
 0x5c8   : > { %v2459_v20 = vadd.f32 %v5177_v3, %v5171_v5 }
 0x5c9   : > { %3397 = vpow2.f32 %v2410_v6  ;;  %v2414_v58 = vmul.f32 1.442695, %v2368_v57  ;;  %v2416_v51 = vmul.f32 1.442695, %v2369_v27 }
 0x5ca   : > { %3399 = vpow2.f32 %v2412_v9  ;;  %2460 = vadd.xlane.f32.xlu0 %v2459_v20 }
 0x5cb   : > { %v5183_v14 = vpop.eup %3389  ;;  %3401 = vpow2.f32 %v2414_v58 }
 0x5cc   : > { %v5185_v56 = vpop.eup %3391  ;;  %3403 = vpow2.f32 %v2416_v51  ;;  %v2332_v54 = vpop.xlane.xlu1 %2331 }
 0x5cd   : > { %v5187_v61 = vpop.eup %3393  ;;  %v2370_v50 = vsub.f32 %v5080_v7, %v2332_v54  ;;  %v2371_v44 = vsub.f32 %v5083_v4, %v2332_v54  ;;  %v2462_v0 = vadd.f32 %v5185_v56, %v5183_v14 }
 0x5ce   : > { %v5193_v11 = vpop.eup %3395  ;;  %v2335_v18 = vpop.xlane.xlu0 %2334 }
 0x5cf   : > { %v2418_v12 = vmul.f32 1.442695, %v2370_v50  ;;  %v2420_v52 = vmul.f32 1.442695, %v2371_v44  ;;  %2463 = vadd.xlane.f32.xlu1 %v2462_v0  ;;  %v2372_v22 = vsub.f32 %v5086_v10, %v2335_v18  ;;  %v2373_v37 = vsub.f32 %v5089_v41, %v2335_v18 }
 0x5d0   : > { %v2465_v17 = vadd.f32 %v5193_v11, %v5187_v61 }
 0x5d1   : > { %3405 = vpow2.f32 %v2418_v12  ;;  %v2422_v7 = vmul.f32 1.442695, %v2372_v22  ;;  %v2424_v60 = vmul.f32 1.442695, %v2373_v37 }
 0x5d2   : > { %3407 = vpow2.f32 %v2420_v52  ;;  %2466 = vadd.xlane.f32.xlu0 %v2465_v17 }
 0x5d3   : > { %v5199_v4 = vpop.eup %3397  ;;  %3409 = vpow2.f32 %v2422_v7 }
 0x5d4   : > { %v5201_v32 = vpop.eup %3399  ;;  %3411 = vpow2.f32 %v2424_v60  ;;  %v2338_v47 = vpop.xlane.xlu1 %2337 }
 0x5d5   : > { %v5203_v8 = vpop.eup %3401  ;;  %v2374_v10 = vsub.f32 %v5096_v33, %v2338_v47  ;;  %v2375_v41 = vsub.f32 %v5099_v19, %v2338_v47  ;;  %v2468_v55 = vadd.f32 %v5201_v32, %v5199_v4 }
 0x5d6   : > { %v5209_v40 = vpop.eup %3403  ;;  %v2341_v59 = vpop.xlane.xlu0 %2340 }
 0x5d7   : > { %v2426_v43 = vmul.f32 1.442695, %v2374_v10  ;;  %v2428_v28 = vmul.f32 1.442695, %v2375_v41  ;;  %2469 = vadd.xlane.f32.xlu1 %v2468_v55  ;;  %v2376_v36 = vsub.f32 %v5102_v23, %v2341_v59  ;;  %v2377_v53 = vsub.f32 %v5105_v16, %v2341_v59 }
 0x5d8   : > { %v2471_v35 = vadd.f32 %v5209_v40, %v5203_v8 }
 0x5d9   : > { %3413 = vpow2.f32 %v2426_v43  ;;  %v2430_v33 = vmul.f32 1.442695, %v2376_v36  ;;  %v2432_v13 = vmul.f32 1.442695, %v2377_v53 }
 0x5da   : > { %3415 = vpow2.f32 %v2428_v28  ;;  %2472 = vadd.xlane.f32.xlu0 %v2471_v35 }
 0x5db   : > { %v5215_v19 = vpop.eup %3405  ;;  %3417 = vpow2.f32 %v2430_v33 }
 0x5dc   : > { %v5217_v2 = vpop.eup %3407  ;;  %3419 = vpow2.f32 %v2432_v13  ;;  %v2344_v1 = vpop.xlane.xlu1 %2343 }
 0x5dd   : > { %v5219_v26 = vpop.eup %3409  ;;  %v2378_v23 = vsub.f32 %v5112_v25, %v2344_v1  ;;  %v2379_v16 = vsub.f32 %v5115_v63, %v2344_v1  ;;  %v2474_v34 = vadd.f32 %v5217_v2, %v5215_v19 }
 0x5de   : > { %v5225_v21 = vpop.eup %3411  ;;  %v2347_v46 = vpop.xlane.xlu0 %2346 }
 0x5df   : > { %v2434_v6 = vmul.f32 1.442695, %v2378_v23  ;;  %v2436_v9 = vmul.f32 1.442695, %v2379_v16  ;;  %2475 = vadd.xlane.f32.xlu1 %v2474_v34  ;;  %v2380_v57 = vsub.f32 %v5118_v62, %v2347_v46  ;;  %v2381_v27 = vsub.f32 %v5121_v39, %v2347_v46 }
 0x5e0   : > { %v2477_v20 = vadd.f32 %v5225_v21, %v5219_v26 }
 0x5e1   : > { %3421 = vpow2.f32 %v2434_v6  ;;  %v2438_v25 = vmul.f32 1.442695, %v2380_v57  ;;  %v2440_v58 = vmul.f32 1.442695, %v2381_v27 }
 0x5e2   : > { %3423 = vpow2.f32 %v2436_v9  ;;  %2478 = vadd.xlane.f32.xlu0 %v2477_v20 }
 0x5e3   : > { %v5231_v63 = vpop.eup %3413  ;;  %3425 = vpow2.f32 %v2438_v25 }
 0x5e4   : > { %v5233_v51 = vpop.eup %3415  ;;  %3427 = vpow2.f32 %v2440_v58  ;;  %v2350_v54 = vpop.xlane.xlu1 %2349 }
 0x5e5   : > { %v5235_v50 = vpop.eup %3417  ;;  %v2382_v62 = vsub.f32 %v5128_v15, %v2350_v54  ;;  %v2383_v39 = vsub.f32 %v5131_v45, %v2350_v54  ;;  %v2480_v44 = vadd.f32 %v5233_v51, %v5231_v63 }
 0x5e6   : > { %v5241_v0 = vpop.eup %3419  ;;  %v2353_v18 = vpop.xlane.xlu0 %2352 }
 0x5e7   : > { %v2442_v12 = vmul.f32 1.442695, %v2382_v62  ;;  %v2444_v52 = vmul.f32 1.442695, %v2383_v39  ;;  %2481 = vadd.xlane.f32.xlu1 %v2480_v44  ;;  %v2384_v22 = vsub.f32 %v5134_v42, %v2353_v18  ;;  %v2385_v37 = vsub.f32 %v5137_v49, %v2353_v18 }
 0x5e8   : > { %v2483_v17 = vadd.f32 %v5241_v0, %v5235_v50 }
 0x5e9   : > { %3429 = vpow2.f32 %v2442_v12  ;;  %v2446_v15 = vmul.f32 1.442695, %v2384_v22  ;;  %v2448_v7 = vmul.f32 1.442695, %v2385_v37 }
 0x5ea   : > { %3431 = vpow2.f32 %v2444_v52  ;;  %2484 = vadd.xlane.f32.xlu0 %v2483_v17 }
 0x5eb   : > { %v5247_v45 = vpop.eup %3421  ;;  %3433 = vpow2.f32 %v2446_v15 }
 0x5ec   : > { %v5249_v60 = vpop.eup %3423  ;;  %3435 = vpow2.f32 %v2448_v7 }
 0x5ed   : > { %v5251_v47 = vpop.eup %3425  ;;  %v2486_v42 = vadd.f32 %v5249_v60, %v5247_v45 }
 0x5ee   : > { %v5255_v49 = vpop.eup %3427 }
 0x5ef   : > { %2487 = vadd.xlane.f32.xlu1 %v2486_v42  ;;  %v2489_v10 = vadd.f32 %v5255_v49, %v5251_v47 }
 0x5f1   : > { %2490 = vadd.xlane.f32.xlu0 %v2489_v10 }
 0x5f3   : > { %v5259_v41 = vpop.eup %3429 }
 0x5f4   : > { %v5261_v55 = vpop.eup %3431 }
 0x5f5   : > { %v5263_v59 = vpop.eup %3433  ;;  %v2492_v43 = vadd.f32 %v5261_v55, %v5259_v41 }
 0x5f6   : > { %v5267_v28 = vpop.eup %3435 }
 0x5f7   : > { %2493 = vadd.xlane.f32.xlu1 %v2492_v43  ;;  %v2495_v36 = vadd.f32 %v5267_v28, %v5263_v59 }
 0x5f9   : > { %2496 = vadd.xlane.f32.xlu0 %v2495_v36 }
 0x647   : > { %v2452_v53 = vpop.xlane.xlu1 %2451 }
 0x648   : > { %3437 = vrcp.f32 %v2452_v53  ;;  %v2455_v35 = vpop.xlane.xlu0 %2454 }
 0x649   : > { %3439 = vrcp.f32 %v2455_v35 }
 0x652   : > { %v3438_v33 = vpop.eup %3437 }
 0x653   : > { %v2514_v13 = vmul.f32 %v3438_v33, %v2452_v53  ;;  %v3440_v1 = vpop.eup %3439 }
 0x654   : > { %v2458_v23 = vpop.xlane.xlu1 %2457  ;;  %v2515_v34 = vmul.f32 %v3440_v1, %v2455_v35 }
 0x655   : > { %v2530_v16 = vsub.f32 2.0, %v2514_v13  ;;  %3441 = vrcp.f32 %v2458_v23 }
 0x656   : > { %v2531_v6 = vsub.f32 2.0, %v2515_v34 }
 0x657   : > { %v2546_v46 = vmul.f32 %v3438_v33, %v2530_v16  ;;  %v2461_v9 = vpop.xlane.xlu0 %2460 }
 0x658   : > { %3443 = vrcp.f32 %v2461_v9  ;;  %v2547_v20 = vmul.f32 %v3440_v1, %v2531_v6 }
 0x659   : > { %v2562_v57 = vmul.f32 %v5149_v48, %v2546_v46  ;;  %v2563_v27 = vmul.f32 %v5151_v29, %v2546_v46 }
 0x65a   : > { %v2564_v25 = vmul.f32 %v5155_v38, %v2547_v20  ;;  %v2565_v58 = vmul.f32 %v5159_v24, %v2547_v20 }
 0x65b   : > { %2594 = vst [vmem:[%s5276_s12] sm:$0xff] %v2562_v57  ;;  %2595 = vst [vmem:[%s5276_s12 + $0x8] sm:$0xff] %v2563_v27 }
 0x65c   : > { %v2464_v54 = vpop.xlane.xlu1 %2463  ;;  %2596 = vst [vmem:[%s5276_s12 + $0x10] sm:$0xff] %v2564_v25  ;;  %2597 = vst [vmem:[%s5276_s12 + $0x18] sm:$0xff] %v2565_v58 }
 0x65d   : > { %3445 = vrcp.f32 %v2464_v54 }
 0x65f   : > { %v3442_v48 = vpop.eup %3441  ;;  %v2467_v29 = vpop.xlane.xlu0 %2466 }
 0x660   : > { %v2516_v62 = vmul.f32 %v3442_v48, %v2458_v23  ;;  %3447 = vrcp.f32 %v2467_v29 }
 0x662   : > { %v3444_v39 = vpop.eup %3443  ;;  %v2532_v44 = vsub.f32 2.0, %v2516_v62 }
 0x663   : > { %v2517_v18 = vmul.f32 %v3444_v39, %v2461_v9 }
 0x664   : > { %v2548_v12 = vmul.f32 %v3442_v48, %v2532_v44  ;;  %v2470_v52 = vpop.xlane.xlu1 %2469 }
 0x665   : > { %v2533_v22 = vsub.f32 2.0, %v2517_v18  ;;  %3449 = vrcp.f32 %v2470_v52 }
 0x666   : > { %v2566_v38 = vmul.f32 %v5167_v30, %v2548_v12  ;;  %v2567_v24 = vmul.f32 %v5169_v31, %v2548_v12 }
 0x667   : > { %v3446_v37 = vpop.eup %3445  ;;  %v2549_v17 = vmul.f32 %v3444_v39, %v2533_v22  ;;  %v2473_v15 = vpop.xlane.xlu0 %2472 }
 0x668   : > { %2598 = vst [vmem:[%s5276_s12 + $0x20] sm:$0xff] %v2566_v38  ;;  %2599 = vst [vmem:[%s5276_s12 + $0x28] sm:$0xff] %v2567_v24  ;;  %v2518_v7 = vmul.f32 %v3446_v37, %v2464_v54  ;;  %3451 = vrcp.f32 %v2473_v15 }
 0x669   : > { %v2568_v42 = vmul.f32 %v5171_v5, %v2549_v17  ;;  %v2569_v10 = vmul.f32 %v5177_v3, %v2549_v17 }
 0x66a   : > { %v3448_v43 = vpop.eup %3447  ;;  %v2534_v36 = vsub.f32 2.0, %v2518_v7 }
 0x66b   : > { %2600 = vst [vmem:[%s5276_s12 + $0x30] sm:$0xff] %v2568_v42  ;;  %2601 = vst [vmem:[%s5276_s12 + $0x38] sm:$0xff] %v2569_v10  ;;  %v2519_v30 = vmul.f32 %v3448_v43, %v2467_v29 }
 0x66c   : > { %v2550_v53 = vmul.f32 %v3446_v37, %v2534_v36  ;;  %v2476_v31 = vpop.xlane.xlu1 %2475 }
 0x66d   : > { %v2535_v35 = vsub.f32 2.0, %v2519_v30  ;;  %3453 = vrcp.f32 %v2476_v31 }
 0x66e   : > { %v2570_v33 = vmul.f32 %v5183_v14, %v2550_v53  ;;  %v2571_v13 = vmul.f32 %v5185_v56, %v2550_v53 }
 0x66f   : > { %v3450_v5 = vpop.eup %3449  ;;  %v2551_v1 = vmul.f32 %v3448_v43, %v2535_v35  ;;  %v2479_v23 = vpop.xlane.xlu0 %2478 }
 0x670   : > { %2602 = vst [vmem:[%s5276_s12 + $0x40] sm:$0xff] %v2570_v33  ;;  %2603 = vst [vmem:[%s5276_s12 + $0x48] sm:$0xff] %v2571_v13  ;;  %v2520_v3 = vmul.f32 %v3450_v5, %v2470_v52  ;;  %3455 = vrcp.f32 %v2479_v23 }
 0x671   : > { %v2572_v16 = vmul.f32 %v5187_v61, %v2551_v1  ;;  %v2573_v34 = vmul.f32 %v5193_v11, %v2551_v1 }
 0x672   : > { %v3452_v46 = vpop.eup %3451  ;;  %v2536_v6 = vsub.f32 2.0, %v2520_v3 }
 0x673   : > { %2604 = vst [vmem:[%s5276_s12 + $0x50] sm:$0xff] %v2572_v16  ;;  %2605 = vst [vmem:[%s5276_s12 + $0x58] sm:$0xff] %v2573_v34  ;;  %v2521_v14 = vmul.f32 %v3452_v46, %v2473_v15 }
 0x674   : > { %v2552_v9 = vmul.f32 %v3450_v5, %v2536_v6  ;;  %v2482_v56 = vpop.xlane.xlu1 %2481 }
 0x675   : > { %v2537_v57 = vsub.f32 2.0, %v2521_v14  ;;  %3457 = vrcp.f32 %v2482_v56 }
 0x676   : > { %v2574_v27 = vmul.f32 %v5199_v4, %v2552_v9  ;;  %v2575_v20 = vmul.f32 %v5201_v32, %v2552_v9 }
 0x677   : > { %v3454_v61 = vpop.eup %3453  ;;  %v2553_v25 = vmul.f32 %v3452_v46, %v2537_v57  ;;  %v2485_v58 = vpop.xlane.xlu0 %2484 }
 0x678   : > { %2606 = vst [vmem:[%s5276_s12 + $0x60] sm:$0xff] %v2574_v27  ;;  %2607 = vst [vmem:[%s5276_s12 + $0x68] sm:$0xff] %v2575_v20  ;;  %v2522_v11 = vmul.f32 %v3454_v61, %v2476_v31  ;;  %3459 = vrcp.f32 %v2485_v58 }
 0x679   : > { %v2576_v54 = vmul.f32 %v5203_v8, %v2553_v25  ;;  %v2577_v48 = vmul.f32 %v5209_v40, %v2553_v25 }
 0x67a   : > { %v3456_v29 = vpop.eup %3455  ;;  %v2538_v62 = vsub.f32 2.0, %v2522_v11 }
 0x67b   : > { %2608 = vst [vmem:[%s5276_s12 + $0x70] sm:$0xff] %v2576_v54  ;;  %2609 = vst [vmem:[%s5276_s12 + $0x78] sm:$0xff] %v2577_v48  ;;  %v2523_v4 = vmul.f32 %v3456_v29, %v2479_v23 }
 0x67c   : > { %v2554_v39 = vmul.f32 %v3454_v61, %v2538_v62  ;;  %v2488_v32 = vpop.xlane.xlu1 %2487 }
 0x67d   : > { %v2539_v44 = vsub.f32 2.0, %v2523_v4  ;;  %3461 = vrcp.f32 %v2488_v32 }
 0x67e   : > { %v2578_v18 = vmul.f32 %v5215_v19, %v2554_v39  ;;  %v2579_v12 = vmul.f32 %v5217_v2, %v2554_v39  ;;  %v2491_v8 = vpop.xlane.xlu0 %2490 }
 0x67f   : > { %v3458_v52 = vpop.eup %3457  ;;  %v2555_v40 = vmul.f32 %v3456_v29, %v2539_v44  ;;  %3463 = vrcp.f32 %v2491_v8 }
 0x680   : > { %2610 = vst [vmem:[%s5276_s12 + $0x80] sm:$0xff] %v2578_v18  ;;  %2611 = vst [vmem:[%s5276_s12 + $0x88] sm:$0xff] %v2579_v12  ;;  %v2524_v22 = vmul.f32 %v3458_v52, %v2482_v56 }
 0x681   : > { %v2580_v38 = vmul.f32 %v5219_v26, %v2555_v40  ;;  %v2581_v24 = vmul.f32 %v5225_v21, %v2555_v40 }
 0x682   : > { %v3460_v37 = vpop.eup %3459  ;;  %v2540_v17 = vsub.f32 2.0, %v2524_v22 }
 0x683   : > { %2612 = vst [vmem:[%s5276_s12 + $0x90] sm:$0xff] %v2580_v38  ;;  %2613 = vst [vmem:[%s5276_s12 + $0x98] sm:$0xff] %v2581_v24  ;;  %v2525_v19 = vmul.f32 %v3460_v37, %v2485_v58 }
 0x684   : > { %v2556_v15 = vmul.f32 %v3458_v52, %v2540_v17  ;;  %v2494_v2 = vpop.xlane.xlu1 %2493 }
 0x685   : > { %v2541_v7 = vsub.f32 2.0, %v2525_v19  ;;  %3465 = vrcp.f32 %v2494_v2 }
 0x686   : > { %v2582_v42 = vmul.f32 %v5231_v63, %v2556_v15  ;;  %v2583_v10 = vmul.f32 %v5233_v51, %v2556_v15  ;;  %v2497_v26 = vpop.xlane.xlu0 %2496 }
 0x687   : > { %v3462_v43 = vpop.eup %3461  ;;  %v2557_v21 = vmul.f32 %v3460_v37, %v2541_v7  ;;  %3467 = vrcp.f32 %v2497_v26 }
 0x688   : > { %2614 = vst [vmem:[%s5276_s12 + $0xa0] sm:$0xff] %v2582_v42  ;;  %2615 = vst [vmem:[%s5276_s12 + $0xa8] sm:$0xff] %v2583_v10  ;;  %v2526_v36 = vmul.f32 %v3462_v43, %v2488_v32 }
 0x689   : > { %v3464_v30 = vpop.eup %3463  ;;  %v2584_v53 = vmul.f32 %v5235_v50, %v2557_v21  ;;  %v2585_v31 = vmul.f32 %v5241_v0, %v2557_v21 }
 0x68a   : > { %v2542_v35 = vsub.f32 2.0, %v2526_v36  ;;  %v2527_v33 = vmul.f32 %v3464_v30, %v2491_v8 }
 0x68b   : > { %2616 = vst [vmem:[%s5276_s12 + $0xb0] sm:$0xff] %v2584_v53  ;;  %2617 = vst [vmem:[%s5276_s12 + $0xb8] sm:$0xff] %v2585_v31 }
 0x68c   : > { %v2558_v63 = vmul.f32 %v3462_v43, %v2542_v35  ;;  %v2543_v51 = vsub.f32 2.0, %v2527_v33 }
 0x68e   : > { %v2586_v13 = vmul.f32 %v5247_v45, %v2558_v63  ;;  %v2587_v5 = vmul.f32 %v5249_v60, %v2558_v63  ;;  %v2559_v1 = vmul.f32 %v3464_v30, %v2543_v51 }
 0x68f   : > { %v3466_v23 = vpop.eup %3465 }
 0x690   : > { %2618 = vst [vmem:[%s5276_s12 + $0xc0] sm:$0xff] %v2586_v13  ;;  %2619 = vst [vmem:[%s5276_s12 + $0xc8] sm:$0xff] %v2587_v5  ;;  %v2588_v50 = vmul.f32 %v5251_v47, %v2559_v1  ;;  %v2589_v0 = vmul.f32 %v5255_v49, %v2559_v1  ;;  %v2528_v3 = vmul.f32 %v3466_v23, %v2494_v2 }
 0x691   : > { %v3468_v16 = vpop.eup %3467 }
 0x692   : > { %2620 = vst [vmem:[%s5276_s12 + $0xd0] sm:$0xff] %v2588_v50  ;;  %2621 = vst [vmem:[%s5276_s12 + $0xd8] sm:$0xff] %v2589_v0  ;;  %v2544_v45 = vsub.f32 2.0, %v2528_v3  ;;  %v2529_v34 = vmul.f32 %v3468_v16, %v2497_v26 }
 0x694   : > { %v2560_v60 = vmul.f32 %v3466_v23, %v2544_v45  ;;  %v2545_v46 = vsub.f32 2.0, %v2529_v34 }
 0x696   : > { %v2590_v47 = vmul.f32 %v5259_v41, %v2560_v60  ;;  %v2591_v49 = vmul.f32 %v5261_v55, %v2560_v60  ;;  %v2561_v6 = vmul.f32 %v3468_v16, %v2545_v46 }
 0x698   : > { %2622 = vst [vmem:[%s5276_s12 + $0xe0] sm:$0xff] %v2590_v47  ;;  %2623 = vst [vmem:[%s5276_s12 + $0xe8] sm:$0xff] %v2591_v49  ;;  %v2592_v14 = vmul.f32 %v5263_v59, %v2561_v6  ;;  %v2593_v9 = vmul.f32 %v5267_v28, %v2561_v6 }
 0x69a   : > { %2624 = vst [vmem:[%s5276_s12 + $0xf0] sm:$0xff] %v2592_v14  ;;  %2625 = vst [vmem:[%s5276_s12 + $0xf8] sm:$0xff] %v2593_v9 }
 0x69b   : > { %3482 = shalt.err (!%p3479_p3)
}
 0x69c   : > { %s3483_s26 = scalar_lea.hbm %s5339_s21, 4096  ;;  %s3487_s12 = scalar_lea.hbm %s5399_s7, 8192 }
 0x69d   : > { %p3484_p4 = scmp.ne.s32.totalorder %s5339_s21, %s3483_s26  ;;  %p3488_p9 = scmp.lt.u32.totalorder %s5339_s21, %s5399_s7 }
 0x69e   : > { %p3489_p10 = scmp.lt.u32.totalorder %s3487_s12, %s3483_s26  ;;  %p3491_p12 = scmp.lt.u32.totalorder %s3483_s26, %s5339_s21 }
 0x69f   : > { %p3485_p7 = pnand %p3484_p4, %p3621_p5 }
 0x6a0   : > { %p3490_p11 = por %p3489_p10, %p3488_p9 }
 0x6a1   : > { %p3486_p8 = pneg %p3485_p7 }
 0x6a2   : > { %p3492_p13 = por %p3491_p12, %p3490_p11 }
 0x6a4   : > { %p3493_p0 = pnand %p3492_p13, %p3486_p8 }
 0x6a6   : > { %3496 = shalt.err (!%p3493_p0)
}
 0x6a7   : > { %s3536_s19 = smov 256   ;;  %s3537_s22 = smov 16  }
 0x6a8   : > { %3072 = dma.vmem_to_hbm [thread:$0]  (%p3621_p5), %s5341_s18, 4096, %s5339_s21, %s5351_s9, %s3536_s19, %s3536_s19, %s3537_s22  }
 0x6a9 PF: > { %p3078_p1 = scmp.ge.s32.totalorder %s3531_s30, 2  ;;  %s2665_s23 = sand.u32 1, %s3519_s27  }
 0x6aa   : > { %s2666_s24 = scalar_lea.sflag [#allocation3], %s2665_s23 }
 0x6ab   : > { %p3075_p2 = pnand %p3078_p1, %p3625_p6 }
 0x6ad   : > { %3514 = dma.done.wait (!%p3075_p2), %s2666_s24, 4096  }
 0x6ae   : > { %3516 = vsyncadd (!%p3075_p2), %s2666_s24, 4294963200  ;;  %p19_p3 = scmp.ge.s32.totalorder %s3608_s11, 4   ;;  %s5427_s27 = smov %s3523_s28 }
 0x6af   : > { %s5428_s28 = smov %s3527_s29  ;;  %s5429_s29 = smov %s3619_s14 }
 0x6b0   : > { %s5430_s30 = smov %s3608_s11  ;;  %21 = sbr.rel (!%p19_p3) target bundleno = 3 (0x3), region = 95 }
 0x6b7   :  { %2679 = vsyncpa [#allocation3], 1 }
 0x6b8   :  { %2681 = vsyncpa [#allocation3 + $0x1], 1 }

</bundles_post_ra>
